<compile_context>
chip_gen: v7x
topology: tpu7x:2x2x1
jax: 0.10.0
libtpu: 0.0.40
codegen_flags: <defaults>
</compile_context>

<pallas_src>
import functools

import jax
import jax.numpy as jnp
import numpy as np
from jax.experimental import pallas as pl
from jax.experimental.pallas import tpu as pltpu


def _layernorm(x, gamma, beta, eps=1e-5):
    mu = jnp.mean(x, axis=-1, keepdims=True)
    xc = x - mu
    var = jnp.mean(xc * xc, axis=-1, keepdims=True)
    return xc * jax.lax.rsqrt(var + eps) * gamma + beta


def _self_attn_kernel(num_heads, model_dim, approx_recip,
                      x_ref, bias_ref, gate_ref,
                      wbig_ref, bbig_ref, bo_ref,
                      w1_ref, bf1_ref, w2_ref, bf2_ref,
                      g1_ref, be1_ref, g2_ref, be2_ref,
                      o_ref):
    H, D = num_heads, model_dim
    hd = D // H
    scale = 1.0 / (hd ** 0.5)

    x = x_ref[...].astype(jnp.float32)            # (R, D), R = Gs groups of N rows
    bias = bias_ref[...]                          # (R, R) block-diag 0 / -1e30
    gate = gate_ref[...]                          # (R, R) sigmoid gate, tiled

    # ---- one fused projection: [q | k | v@Wo per head] ------------------
    proj = jnp.dot(x, wbig_ref[...],
                   preferred_element_type=jnp.float32) + bbig_ref[...]   # (R, 2D+H*D)

    attn = jnp.zeros(x.shape, jnp.float32)
    for h in range(H):                            # static unroll, H small
        q_h = proj[:, h * hd:(h + 1) * hd]                      # (R, hd)
        k_h = proj[:, D + h * hd: D + (h + 1) * hd]             # (R, hd)
        vo_h = proj[:, 2 * D + h * D: 2 * D + (h + 1) * D]      # (R, D) = v_h @ Wo_h

        # scores over all rows, cross-group entries killed by the bias
        s = jax.lax.dot_general(q_h, k_h, (((1,), (1,)), ((), ())),
                                preferred_element_type=jnp.float32) * scale + bias
        s = s - jnp.max(s, axis=-1, keepdims=True)
        e = jnp.exp(s)                                           # masked -> exactly 0
        p = e * pl.reciprocal(jnp.sum(e, axis=-1, keepdims=True),
                              approx=approx_recip)
        # post-softmax sigmoid gate, NOT re-normalized (matches PyTorch module)
        p = p * gate

        # PV with out_proj already folded in: fat K=R contraction, D-wide output
        attn = attn + jax.lax.dot_general(p, vo_h, (((1,), (0,)), ((), ())),
                                          preferred_element_type=jnp.float32)

    attn = attn + bo_ref[...]

    # dropout p=0 => identity.
    h1 = _layernorm(x + attn, g1_ref[...], be1_ref[...])

    # ---- feed-forward: Linear -> ReLU -> Linear (fat 2-D matmuls) --------
    ff = jnp.dot(h1, w1_ref[...], preferred_element_type=jnp.float32) + bf1_ref[...]
    ff = jnp.maximum(ff, 0.0)
    ff = jnp.dot(ff, w2_ref[...], preferred_element_type=jnp.float32) + bf2_ref[...]

    out = _layernorm(h1 + ff, g2_ref[...], be2_ref[...])
    o_ref[...] = out.astype(o_ref.dtype)


def self_attention_layer(x, attn_embedding, params, num_heads, *,
                         grid_blocks=None, max_rows_per_step=512,
                         approx_softmax_recip=False):
    B, T, N, D = x.shape
    H = num_heads
    assert D % H == 0
    hd = D // H
    F = params["w1"].shape[1]
    groups = B * T

    # One fat grid step by default (v5e/v6e: single TensorCore, extra steps are
    # pure overhead).  Pass grid_blocks=2 on v7x to shard across both cores.
    if grid_blocks is None:
        grid_blocks = 1
        while (groups % grid_blocks != 0
               or (groups // grid_blocks) * N > max_rows_per_step):
            grid_blocks += 1
            if grid_blocks >= groups:
                grid_blocks = groups
                break
    assert groups % grid_blocks == 0
    Gs = groups // grid_blocks                  # groups per grid step
    R = Gs * N                                  # rows per grid step

    x2 = x.reshape(B * T * N, D).astype(jnp.float32)
    # TODO(synk): for large B*T*N a lane-dense (B*T, N*D) I/O slab would avoid
    # masked sub-128-lane stores; at D=32 and this size the cost is negligible.

    # Grid-invariant gate / block-diagonal bias, computed once outside the kernel.
    gate = jax.nn.sigmoid(attn_embedding @ attn_embedding.T).astype(jnp.float32)  # (N,N)
    gate_tiled = jnp.tile(gate, (Gs, Gs))                                          # (R,R)
    gid = jnp.repeat(jnp.arange(Gs, dtype=jnp.int32), N)
    same_group = gid[:, None] == gid[None, :]
    mask_bias = jnp.where(same_group, 0.0, -1e30).astype(jnp.float32)              # (R,R)

    # Fused projection weights: [Wq | Wk | Wv_h @ Wo_h per head]  -> (D, 2D + H*D)
    wv, wo = params["wv"], params["wo"]
    bv = params["bv"]
    wvo = jnp.concatenate(
        [wv[:, h * hd:(h + 1) * hd] @ wo[h * hd:(h + 1) * hd, :] for h in range(H)],
        axis=1)                                                  # (D, H*D)
    bvo = jnp.concatenate(
        [bv[:, h * hd:(h + 1) * hd] @ wo[h * hd:(h + 1) * hd, :] for h in range(H)],
        axis=1)                                                  # (1, H*D)
    w_big = jnp.concatenate([params["wq"], params["wk"], wvo], axis=1)  # (D, 2D+H*D)
    b_big = jnp.concatenate([params["bq"], params["bk"], bvo], axis=1)  # (1, 2D+H*D)
    P = 2 * D + H * D

    def inv2(shape):                            # grid-invariant 2-D input
        return pl.BlockSpec(shape, lambda i: (0, 0))

    in_specs = [
        pl.BlockSpec((R, D), lambda i: (i, 0)),     # x rows for this step
        inv2((R, R)),                               # block-diag -inf bias
        inv2((R, R)),                               # sigmoid gate (tiled)
        inv2((D, P)), inv2((1, P)),                 # fused projection
        inv2((1, D)),                               # out_proj bias
        inv2((D, F)), inv2((1, F)),                 # FFN 1
        inv2((F, D)), inv2((1, D)),                 # FFN 2
        inv2((1, D)), inv2((1, D)),                 # ln1 gamma, beta
        inv2((1, D)), inv2((1, D)),                 # ln2 gamma, beta
    ]
    out_spec = pl.BlockSpec((R, D), lambda i: (i, 0))

    # VMEM budget: double-buffered I/O + invariants + live intermediates.
    weight_elems = D * P + P + D + D * F + F + F * D + D + 4 * D
    est_bytes = 4 * (4 * R * D + 4 * R * R        # x/out + bias/gate (dbl-buffered)
                     + 2 * weight_elems
                     + R * P + 3 * R * R + 2 * R * F + 6 * R * D)
    vmem_limit = int(min(max(2 * est_bytes, 8 << 20), 64 << 20))

    kernel = functools.partial(_self_attn_kernel, H, D, approx_softmax_recip)
    out2 = pl.pallas_call(
        kernel,
        out_shape=jax.ShapeDtypeStruct((B * T * N, D), x.dtype),
        grid_spec=pltpu.PrefetchScalarGridSpec(
            num_scalar_prefetch=0,
            grid=(grid_blocks,),
            in_specs=in_specs,
            out_specs=out_spec,
        ),
        compiler_params=pltpu.CompilerParams(
            dimension_semantics=("parallel",),
            vmem_limit_bytes=vmem_limit),
    )(x2, mask_bias, gate_tiled,
      w_big, b_big, params["bo"],
      params["w1"], params["bf1"], params["w2"], params["bf2"],
      params["g1"], params["be1"], params["g2"], params["be2"])
    return out2.reshape(B, T, N, D)


def reference(x, emb, params, num_heads):
    """Pure-JAX reference mirroring the PyTorch forward."""
    B, T, N, D = x.shape
    hd = D // num_heads
    q = x @ params["wq"] + params["bq"]
    k = x @ params["wk"] + params["bk"]
    v = x @ params["wv"] + params["bv"]
    attn1 = jax.nn.sigmoid(emb @ emb.T)
    outs = []
    for h in range(num_heads):
        sl = slice(h * hd, (h + 1) * hd)
        s = jnp.einsum('btnd,btmd->btnm', q[..., sl], k[..., sl]) / hd ** 0.5
        p = jax.nn.softmax(s, axis=-1) * attn1
        outs.append(jnp.einsum('btnm,btmd->btnd', p, v[..., sl]))
    a = jnp.concatenate(outs, axis=-1) @ params["wo"] + params["bo"]
    h1 = _layernorm(x + a, params["g1"], params["be1"])
    ff = jax.nn.relu(h1 @ params["w1"] + params["bf1"]) @ params["w2"] + params["bf2"]
    return _layernorm(h1 + ff, params["g2"], params["be2"])


def make_params(key, model_dim, ffn_dim):
    D, F = model_dim, ffn_dim
    ks = jax.random.split(key, 8)
    s = 0.1
    params = {
        "wq": s * jax.random.normal(ks[0], (D, D), jnp.float32),
        "bq": s * jax.random.normal(ks[1], (1, D), jnp.float32),
        "wk": s * jax.random.normal(ks[2], (D, D), jnp.float32),
        "bk": s * jax.random.normal(ks[3], (1, D), jnp.float32),
        "wv": s * jax.random.normal(ks[4], (D, D), jnp.float32),
        "bv": s * jax.random.normal(ks[5], (1, D), jnp.float32),
        "wo": s * jax.random.normal(ks[6], (D, D), jnp.float32),
        "bo": s * jax.random.normal(ks[7], (1, D), jnp.float32),
    }
    ks2 = jax.random.split(jax.random.fold_in(key, 1), 4)
    params.update({
        "w1": s * jax.random.normal(ks2[0], (D, F), jnp.float32),
        "bf1": s * jax.random.normal(ks2[1], (1, F), jnp.float32),
        "w2": s * jax.random.normal(ks2[2], (F, D), jnp.float32),
        "bf2": s * jax.random.normal(ks2[3], (1, D), jnp.float32),
        # LayerNorm affine params (PyTorch init: gamma=1, beta=0).
        "g1": jnp.ones((1, D), jnp.float32),
        "be1": jnp.zeros((1, D), jnp.float32),
        "g2": jnp.ones((1, D), jnp.float32),
        "be2": jnp.zeros((1, D), jnp.float32),
    })
    return params


if __name__ == "__main__":
    B, T, N, D = 2, 4, 16, 32          # batch, in_steps, num_nodes, model_dim
    H, F, E = 4, 64, 8                 # num_heads, feed_forward_dim, emb dim

    key = jax.random.PRNGKey(0)
    kx, ke, kp = jax.random.split(key, 3)
    x = jax.random.normal(kx, (B, T, N, D), jnp.float32)
    attn_embedding = jax.random.normal(ke, (N, E), jnp.float32)
    params = make_params(kp, D, F)

    ref = jax.block_until_ready(reference(x, attn_embedding, params, H))

    # Default path: f32 everywhere, exact reciprocal.
    out = jax.block_until_ready(
        self_attention_layer(x, attn_embedding, params, H))
    np.testing.assert_allclose(np.asarray(out), np.asarray(ref),
                               rtol=1e-3, atol=1e-3)

    # Optional EUP approx-reciprocal softmax denominator (independent knob).
    out_ap = jax.block_until_ready(
        self_attention_layer(x, attn_embedding, params, H,
                             approx_softmax_recip=True))
    np.testing.assert_allclose(np.asarray(out_ap), np.asarray(ref),
                               rtol=2e-2, atol=2e-2)

    print("KERNEL_OK")
</pallas_src>

<mosaic_0001>
module attributes {stable_mosaic.version = 11 : i64} {
  func.func @_self_attn_kernel(%arg0: i32, %arg1: memref<128x32xf32, #tpu.memory_space<vmem>>, %arg2: memref<128x128xf32, #tpu.memory_space<vmem>>, %arg3: memref<128x128xf32, #tpu.memory_space<vmem>>, %arg4: memref<32x192xf32, #tpu.memory_space<vmem>>, %arg5: memref<1x192xf32, #tpu.memory_space<vmem>>, %arg6: memref<1x32xf32, #tpu.memory_space<vmem>>, %arg7: memref<32x64xf32, #tpu.memory_space<vmem>>, %arg8: memref<1x64xf32, #tpu.memory_space<vmem>>, %arg9: memref<64x32xf32, #tpu.memory_space<vmem>>, %arg10: memref<1x32xf32, #tpu.memory_space<vmem>>, %arg11: memref<1x32xf32, #tpu.memory_space<vmem>>, %arg12: memref<1x32xf32, #tpu.memory_space<vmem>>, %arg13: memref<1x32xf32, #tpu.memory_space<vmem>>, %arg14: memref<1x32xf32, #tpu.memory_space<vmem>>, %arg15: memref<128x32xf32, #tpu.memory_space<vmem>>) attributes {dimension_semantics = [#tpu.dimension_semantics<parallel>], iteration_bounds = array<i64: 1>, scalar_prefetch = 0 : i64, scratch_operands = 0 : i64, tpu.core_type = #tpu.core_type<tc>, window_params = [{transform_indices = @transform_0, window_bounds = array<i64: 128, 32>}, {pipeline_mode = #tpu.pipeline_mode<synchronous>, transform_indices = @transform_1, window_bounds = array<i64: 128, 128>}, {pipeline_mode = #tpu.pipeline_mode<synchronous>, transform_indices = @transform_2, window_bounds = array<i64: 128, 128>}, {pipeline_mode = #tpu.pipeline_mode<synchronous>, transform_indices = @transform_3, window_bounds = array<i64: 32, 192>}, {pipeline_mode = #tpu.pipeline_mode<synchronous>, transform_indices = @transform_4, window_bounds = array<i64: 1, 192>}, {pipeline_mode = #tpu.pipeline_mode<synchronous>, transform_indices = @transform_5, window_bounds = array<i64: 1, 32>}, {pipeline_mode = #tpu.pipeline_mode<synchronous>, transform_indices = @transform_6, window_bounds = array<i64: 32, 64>}, {pipeline_mode = #tpu.pipeline_mode<synchronous>, transform_indices = @transform_7, window_bounds = array<i64: 1, 64>}, {pipeline_mode = #tpu.pipeline_mode<synchronous>, transform_indices = @transform_8, window_bounds = array<i64: 64, 32>}, {pipeline_mode = #tpu.pipeline_mode<synchronous>, transform_indices = @transform_9, window_bounds = array<i64: 1, 32>}, {pipeline_mode = #tpu.pipeline_mode<synchronous>, transform_indices = @transform_10, window_bounds = array<i64: 1, 32>}, {pipeline_mode = #tpu.pipeline_mode<synchronous>, transform_indices = @transform_11, window_bounds = array<i64: 1, 32>}, {pipeline_mode = #tpu.pipeline_mode<synchronous>, transform_indices = @transform_12, window_bounds = array<i64: 1, 32>}, {pipeline_mode = #tpu.pipeline_mode<synchronous>, transform_indices = @transform_13, window_bounds = array<i64: 1, 32>}, {transform_indices = @transform_14, window_bounds = array<i64: 128, 32>}]} {
    %c0 = arith.constant 0 : index
    %c0_0 = arith.constant 0 : index
    %0 = vector.load %arg1[%c0, %c0_0] : memref<128x32xf32, #tpu.memory_space<vmem>>, vector<128x32xf32>
    %c0_1 = arith.constant 0 : index
    %c0_2 = arith.constant 0 : index
    %1 = vector.load %arg2[%c0_1, %c0_2] : memref<128x128xf32, #tpu.memory_space<vmem>>, vector<128x128xf32>
    %c0_3 = arith.constant 0 : index
    %c0_4 = arith.constant 0 : index
    %2 = vector.load %arg3[%c0_3, %c0_4] : memref<128x128xf32, #tpu.memory_space<vmem>>, vector<128x128xf32>
    %c0_5 = arith.constant 0 : index
    %c0_6 = arith.constant 0 : index
    %3 = vector.load %arg4[%c0_5, %c0_6] : memref<32x192xf32, #tpu.memory_space<vmem>>, vector<32x192xf32>
    %cst = arith.constant dense<0.000000e+00> : vector<128x192xf32>
    %4 = tpu.matmul %0, %3, %cst {dimension_numbers = #tpu.dot_dimension_numbers<[1], [0], [0], [1], [0, 0, 1, 1], [], []>} : vector<128x32xf32>, vector<32x192xf32>, vector<128x192xf32> -> vector<128x192xf32>
    %c0_7 = arith.constant 0 : index
    %c0_8 = arith.constant 0 : index
    %5 = vector.load %arg5[%c0_7, %c0_8] : memref<1x192xf32, #tpu.memory_space<vmem>>, vector<1x192xf32>
    %6 = vector.broadcast %5 : vector<1x192xf32> to vector<128x192xf32>
    %7 = arith.addf %4, %6 : vector<128x192xf32>
    %cst_9 = arith.constant 0.000000e+00 : f32
    %8 = vector.broadcast %cst_9 : f32 to vector<128x32xf32>
    %9 = vector.extract_strided_slice %7 {offsets = [0, 0], sizes = [128, 8], strides = [1, 1]} : vector<128x192xf32> to vector<128x8xf32>
    %10 = vector.extract_strided_slice %7 {offsets = [0, 32], sizes = [128, 8], strides = [1, 1]} : vector<128x192xf32> to vector<128x8xf32>
    %11 = vector.extract_strided_slice %7 {offsets = [0, 64], sizes = [128, 32], strides = [1, 1]} : vector<128x192xf32> to vector<128x32xf32>
    %cst_10 = arith.constant dense<0.000000e+00> : vector<128x128xf32>
    %12 = tpu.matmul %9, %10, %cst_10 {dimension_numbers = #tpu.dot_dimension_numbers<[1], [1], [0], [0], [0, 0, 1, 0], [], []>} : vector<128x8xf32>, vector<128x8xf32>, vector<128x128xf32> -> vector<128x128xf32>
    %cst_11 = arith.constant 0.353553385 : f32
    %13 = vector.broadcast %cst_11 : f32 to vector<128x128xf32>
    %14 = arith.mulf %12, %13 : vector<128x128xf32>
    %15 = arith.addf %14, %1 : vector<128x128xf32>
    %cst_12 = arith.constant dense<0xFF800000> : vector<128xf32>
    %16 = vector.multi_reduction <maximumf>, %15, %cst_12 [1] : vector<128x128xf32> to vector<128xf32>
    %17 = vector.shape_cast %16 : vector<128xf32> to vector<128x1xf32>
    %18 = vector.broadcast %17 : vector<128x1xf32> to vector<128x128xf32>
    %19 = arith.subf %15, %18 : vector<128x128xf32>
    %20 = math.exp %19 : vector<128x128xf32>
    %cst_13 = arith.constant dense<0.000000e+00> : vector<128xf32>
    %21 = vector.multi_reduction <add>, %20, %cst_13 [1] : vector<128x128xf32> to vector<128xf32>
    %22 = vector.shape_cast %21 : vector<128xf32> to vector<128x1xf32>
    %23 = tpu.reciprocal %22 : vector<128x1xf32> -> vector<128x1xf32>
    %24 = vector.broadcast %23 : vector<128x1xf32> to vector<128x128xf32>
    %25 = arith.mulf %20, %24 : vector<128x128xf32>
    %26 = arith.mulf %25, %2 : vector<128x128xf32>
    %cst_14 = arith.constant dense<0.000000e+00> : vector<128x32xf32>
    %27 = tpu.matmul %26, %11, %cst_14 {dimension_numbers = #tpu.dot_dimension_numbers<[1], [0], [0], [1], [0, 0, 1, 1], [], []>} : vector<128x128xf32>, vector<128x32xf32>, vector<128x32xf32> -> vector<128x32xf32>
    %28 = arith.addf %8, %27 : vector<128x32xf32>
    %29 = vector.extract_strided_slice %7 {offsets = [0, 8], sizes = [128, 8], strides = [1, 1]} : vector<128x192xf32> to vector<128x8xf32>
    %30 = vector.extract_strided_slice %7 {offsets = [0, 40], sizes = [128, 8], strides = [1, 1]} : vector<128x192xf32> to vector<128x8xf32>
    %31 = vector.extract_strided_slice %7 {offsets = [0, 96], sizes = [128, 32], strides = [1, 1]} : vector<128x192xf32> to vector<128x32xf32>
    %cst_15 = arith.constant dense<0.000000e+00> : vector<128x128xf32>
    %32 = tpu.matmul %29, %30, %cst_15 {dimension_numbers = #tpu.dot_dimension_numbers<[1], [1], [0], [0], [0, 0, 1, 0], [], []>} : vector<128x8xf32>, vector<128x8xf32>, vector<128x128xf32> -> vector<128x128xf32>
    %cst_16 = arith.constant 0.353553385 : f32
    %33 = vector.broadcast %cst_16 : f32 to vector<128x128xf32>
    %34 = arith.mulf %32, %33 : vector<128x128xf32>
    %35 = arith.addf %34, %1 : vector<128x128xf32>
    %cst_17 = arith.constant dense<0xFF800000> : vector<128xf32>
    %36 = vector.multi_reduction <maximumf>, %35, %cst_17 [1] : vector<128x128xf32> to vector<128xf32>
    %37 = vector.shape_cast %36 : vector<128xf32> to vector<128x1xf32>
    %38 = vector.broadcast %37 : vector<128x1xf32> to vector<128x128xf32>
    %39 = arith.subf %35, %38 : vector<128x128xf32>
    %40 = math.exp %39 : vector<128x128xf32>
    %cst_18 = arith.constant dense<0.000000e+00> : vector<128xf32>
    %41 = vector.multi_reduction <add>, %40, %cst_18 [1] : vector<128x128xf32> to vector<128xf32>
    %42 = vector.shape_cast %41 : vector<128xf32> to vector<128x1xf32>
    %43 = tpu.reciprocal %42 : vector<128x1xf32> -> vector<128x1xf32>
    %44 = vector.broadcast %43 : vector<128x1xf32> to vector<128x128xf32>
    %45 = arith.mulf %40, %44 : vector<128x128xf32>
    %46 = arith.mulf %45, %2 : vector<128x128xf32>
    %cst_19 = arith.constant dense<0.000000e+00> : vector<128x32xf32>
    %47 = tpu.matmul %46, %31, %cst_19 {dimension_numbers = #tpu.dot_dimension_numbers<[1], [0], [0], [1], [0, 0, 1, 1], [], []>} : vector<128x128xf32>, vector<128x32xf32>, vector<128x32xf32> -> vector<128x32xf32>
    %48 = arith.addf %28, %47 : vector<128x32xf32>
    %49 = vector.extract_strided_slice %7 {offsets = [0, 16], sizes = [128, 8], strides = [1, 1]} : vector<128x192xf32> to vector<128x8xf32>
    %50 = vector.extract_strided_slice %7 {offsets = [0, 48], sizes = [128, 8], strides = [1, 1]} : vector<128x192xf32> to vector<128x8xf32>
    %51 = vector.extract_strided_slice %7 {offsets = [0, 128], sizes = [128, 32], strides = [1, 1]} : vector<128x192xf32> to vector<128x32xf32>
    %cst_20 = arith.constant dense<0.000000e+00> : vector<128x128xf32>
    %52 = tpu.matmul %49, %50, %cst_20 {dimension_numbers = #tpu.dot_dimension_numbers<[1], [1], [0], [0], [0, 0, 1, 0], [], []>} : vector<128x8xf32>, vector<128x8xf32>, vector<128x128xf32> -> vector<128x128xf32>
    %cst_21 = arith.constant 0.353553385 : f32
    %53 = vector.broadcast %cst_21 : f32 to vector<128x128xf32>
    %54 = arith.mulf %52, %53 : vector<128x128xf32>
    %55 = arith.addf %54, %1 : vector<128x128xf32>
    %cst_22 = arith.constant dense<0xFF800000> : vector<128xf32>
    %56 = vector.multi_reduction <maximumf>, %55, %cst_22 [1] : vector<128x128xf32> to vector<128xf32>
    %57 = vector.shape_cast %56 : vector<128xf32> to vector<128x1xf32>
    %58 = vector.broadcast %57 : vector<128x1xf32> to vector<128x128xf32>
    %59 = arith.subf %55, %58 : vector<128x128xf32>
    %60 = math.exp %59 : vector<128x128xf32>
    %cst_23 = arith.constant dense<0.000000e+00> : vector<128xf32>
    %61 = vector.multi_reduction <add>, %60, %cst_23 [1] : vector<128x128xf32> to vector<128xf32>
    %62 = vector.shape_cast %61 : vector<128xf32> to vector<128x1xf32>
    %63 = tpu.reciprocal %62 : vector<128x1xf32> -> vector<128x1xf32>
    %64 = vector.broadcast %63 : vector<128x1xf32> to vector<128x128xf32>
    %65 = arith.mulf %60, %64 : vector<128x128xf32>
    %66 = arith.mulf %65, %2 : vector<128x128xf32>
    %cst_24 = arith.constant dense<0.000000e+00> : vector<128x32xf32>
    %67 = tpu.matmul %66, %51, %cst_24 {dimension_numbers = #tpu.dot_dimension_numbers<[1], [0], [0], [1], [0, 0, 1, 1], [], []>} : vector<128x128xf32>, vector<128x32xf32>, vector<128x32xf32> -> vector<128x32xf32>
    %68 = arith.addf %48, %67 : vector<128x32xf32>
    %69 = vector.extract_strided_slice %7 {offsets = [0, 24], sizes = [128, 8], strides = [1, 1]} : vector<128x192xf32> to vector<128x8xf32>
    %70 = vector.extract_strided_slice %7 {offsets = [0, 56], sizes = [128, 8], strides = [1, 1]} : vector<128x192xf32> to vector<128x8xf32>
    %71 = vector.extract_strided_slice %7 {offsets = [0, 160], sizes = [128, 32], strides = [1, 1]} : vector<128x192xf32> to vector<128x32xf32>
    %cst_25 = arith.constant dense<0.000000e+00> : vector<128x128xf32>
    %72 = tpu.matmul %69, %70, %cst_25 {dimension_numbers = #tpu.dot_dimension_numbers<[1], [1], [0], [0], [0, 0, 1, 0], [], []>} : vector<128x8xf32>, vector<128x8xf32>, vector<128x128xf32> -> vector<128x128xf32>
    %cst_26 = arith.constant 0.353553385 : f32
    %73 = vector.broadcast %cst_26 : f32 to vector<128x128xf32>
    %74 = arith.mulf %72, %73 : vector<128x128xf32>
    %75 = arith.addf %74, %1 : vector<128x128xf32>
    %cst_27 = arith.constant dense<0xFF800000> : vector<128xf32>
    %76 = vector.multi_reduction <maximumf>, %75, %cst_27 [1] : vector<128x128xf32> to vector<128xf32>
    %77 = vector.shape_cast %76 : vector<128xf32> to vector<128x1xf32>
    %78 = vector.broadcast %77 : vector<128x1xf32> to vector<128x128xf32>
    %79 = arith.subf %75, %78 : vector<128x128xf32>
    %80 = math.exp %79 : vector<128x128xf32>
    %cst_28 = arith.constant dense<0.000000e+00> : vector<128xf32>
    %81 = vector.multi_reduction <add>, %80, %cst_28 [1] : vector<128x128xf32> to vector<128xf32>
    %82 = vector.shape_cast %81 : vector<128xf32> to vector<128x1xf32>
    %83 = tpu.reciprocal %82 : vector<128x1xf32> -> vector<128x1xf32>
    %84 = vector.broadcast %83 : vector<128x1xf32> to vector<128x128xf32>
    %85 = arith.mulf %80, %84 : vector<128x128xf32>
    %86 = arith.mulf %85, %2 : vector<128x128xf32>
    %cst_29 = arith.constant dense<0.000000e+00> : vector<128x32xf32>
    %87 = tpu.matmul %86, %71, %cst_29 {dimension_numbers = #tpu.dot_dimension_numbers<[1], [0], [0], [1], [0, 0, 1, 1], [], []>} : vector<128x128xf32>, vector<128x32xf32>, vector<128x32xf32> -> vector<128x32xf32>
    %88 = arith.addf %68, %87 : vector<128x32xf32>
    %c0_30 = arith.constant 0 : index
    %c0_31 = arith.constant 0 : index
    %89 = vector.load %arg6[%c0_30, %c0_31] : memref<1x32xf32, #tpu.memory_space<vmem>>, vector<1x32xf32>
    %90 = vector.broadcast %89 : vector<1x32xf32> to vector<128x32xf32>
    %91 = arith.addf %88, %90 : vector<128x32xf32>
    %92 = arith.addf %0, %91 : vector<128x32xf32>
    %c0_32 = arith.constant 0 : index
    %c0_33 = arith.constant 0 : index
    %93 = vector.load %arg11[%c0_32, %c0_33] : memref<1x32xf32, #tpu.memory_space<vmem>>, vector<1x32xf32>
    %c0_34 = arith.constant 0 : index
    %c0_35 = arith.constant 0 : index
    %94 = vector.load %arg12[%c0_34, %c0_35] : memref<1x32xf32, #tpu.memory_space<vmem>>, vector<1x32xf32>
    %cst_36 = arith.constant dense<0.000000e+00> : vector<128xf32>
    %95 = vector.multi_reduction <add>, %92, %cst_36 [1] : vector<128x32xf32> to vector<128xf32>
    %96 = vector.shape_cast %95 : vector<128xf32> to vector<128x1xf32>
    %cst_37 = arith.constant 3.200000e+01 : f32
    %97 = vector.broadcast %cst_37 : f32 to vector<128x1xf32>
    %98 = arith.divf %96, %97 : vector<128x1xf32>
    %99 = vector.broadcast %98 : vector<128x1xf32> to vector<128x32xf32>
    %100 = arith.subf %92, %99 : vector<128x32xf32>
    %101 = arith.mulf %100, %100 : vector<128x32xf32>
    %cst_38 = arith.constant dense<0.000000e+00> : vector<128xf32>
    %102 = vector.multi_reduction <add>, %101, %cst_38 [1] : vector<128x32xf32> to vector<128xf32>
    %103 = vector.shape_cast %102 : vector<128xf32> to vector<128x1xf32>
    %cst_39 = arith.constant 3.200000e+01 : f32
    %104 = vector.broadcast %cst_39 : f32 to vector<128x1xf32>
    %105 = arith.divf %103, %104 : vector<128x1xf32>
    %cst_40 = arith.constant 9.99999974E-6 : f32
    %106 = vector.broadcast %cst_40 : f32 to vector<128x1xf32>
    %107 = arith.addf %105, %106 : vector<128x1xf32>
    %108 = math.rsqrt %107 : vector<128x1xf32>
    %109 = vector.broadcast %108 : vector<128x1xf32> to vector<128x32xf32>
    %110 = arith.mulf %100, %109 : vector<128x32xf32>
    %111 = vector.broadcast %93 : vector<1x32xf32> to vector<128x32xf32>
    %112 = arith.mulf %110, %111 : vector<128x32xf32>
    %113 = vector.broadcast %94 : vector<1x32xf32> to vector<128x32xf32>
    %114 = arith.addf %112, %113 : vector<128x32xf32>
    %c0_41 = arith.constant 0 : index
    %c0_42 = arith.constant 0 : index
    %115 = vector.load %arg7[%c0_41, %c0_42] : memref<32x64xf32, #tpu.memory_space<vmem>>, vector<32x64xf32>
    %cst_43 = arith.constant dense<0.000000e+00> : vector<128x64xf32>
    %116 = tpu.matmul %114, %115, %cst_43 {dimension_numbers = #tpu.dot_dimension_numbers<[1], [0], [0], [1], [0, 0, 1, 1], [], []>} : vector<128x32xf32>, vector<32x64xf32>, vector<128x64xf32> -> vector<128x64xf32>
    %c0_44 = arith.constant 0 : index
    %c0_45 = arith.constant 0 : index
    %117 = vector.load %arg8[%c0_44, %c0_45] : memref<1x64xf32, #tpu.memory_space<vmem>>, vector<1x64xf32>
    %118 = vector.broadcast %117 : vector<1x64xf32> to vector<128x64xf32>
    %119 = arith.addf %116, %118 : vector<128x64xf32>
    %cst_46 = arith.constant 0.000000e+00 : f32
    %120 = vector.broadcast %cst_46 : f32 to vector<128x64xf32>
    %121 = arith.maximumf %119, %120 : vector<128x64xf32>
    %c0_47 = arith.constant 0 : index
    %c0_48 = arith.constant 0 : index
    %122 = vector.load %arg9[%c0_47, %c0_48] : memref<64x32xf32, #tpu.memory_space<vmem>>, vector<64x32xf32>
    %cst_49 = arith.constant dense<0.000000e+00> : vector<128x32xf32>
    %123 = tpu.matmul %121, %122, %cst_49 {dimension_numbers = #tpu.dot_dimension_numbers<[1], [0], [0], [1], [0, 0, 1, 1], [], []>} : vector<128x64xf32>, vector<64x32xf32>, vector<128x32xf32> -> vector<128x32xf32>
    %c0_50 = arith.constant 0 : index
    %c0_51 = arith.constant 0 : index
    %124 = vector.load %arg10[%c0_50, %c0_51] : memref<1x32xf32, #tpu.memory_space<vmem>>, vector<1x32xf32>
    %125 = vector.broadcast %124 : vector<1x32xf32> to vector<128x32xf32>
    %126 = arith.addf %123, %125 : vector<128x32xf32>
    %127 = arith.addf %114, %126 : vector<128x32xf32>
    %c0_52 = arith.constant 0 : index
    %c0_53 = arith.constant 0 : index
    %128 = vector.load %arg13[%c0_52, %c0_53] : memref<1x32xf32, #tpu.memory_space<vmem>>, vector<1x32xf32>
    %c0_54 = arith.constant 0 : index
    %c0_55 = arith.constant 0 : index
    %129 = vector.load %arg14[%c0_54, %c0_55] : memref<1x32xf32, #tpu.memory_space<vmem>>, vector<1x32xf32>
    %cst_56 = arith.constant dense<0.000000e+00> : vector<128xf32>
    %130 = vector.multi_reduction <add>, %127, %cst_56 [1] : vector<128x32xf32> to vector<128xf32>
    %131 = vector.shape_cast %130 : vector<128xf32> to vector<128x1xf32>
    %cst_57 = arith.constant 3.200000e+01 : f32
    %132 = vector.broadcast %cst_57 : f32 to vector<128x1xf32>
    %133 = arith.divf %131, %132 : vector<128x1xf32>
    %134 = vector.broadcast %133 : vector<128x1xf32> to vector<128x32xf32>
    %135 = arith.subf %127, %134 : vector<128x32xf32>
    %136 = arith.mulf %135, %135 : vector<128x32xf32>
    %cst_58 = arith.constant dense<0.000000e+00> : vector<128xf32>
    %137 = vector.multi_reduction <add>, %136, %cst_58 [1] : vector<128x32xf32> to vector<128xf32>
    %138 = vector.shape_cast %137 : vector<128xf32> to vector<128x1xf32>
    %cst_59 = arith.constant 3.200000e+01 : f32
    %139 = vector.broadcast %cst_59 : f32 to vector<128x1xf32>
    %140 = arith.divf %138, %139 : vector<128x1xf32>
    %cst_60 = arith.constant 9.99999974E-6 : f32
    %141 = vector.broadcast %cst_60 : f32 to vector<128x1xf32>
    %142 = arith.addf %140, %141 : vector<128x1xf32>
    %143 = math.rsqrt %142 : vector<128x1xf32>
    %144 = vector.broadcast %143 : vector<128x1xf32> to vector<128x32xf32>
    %145 = arith.mulf %135, %144 : vector<128x32xf32>
    %146 = vector.broadcast %128 : vector<1x32xf32> to vector<128x32xf32>
    %147 = arith.mulf %145, %146 : vector<128x32xf32>
    %148 = vector.broadcast %129 : vector<1x32xf32> to vector<128x32xf32>
    %149 = arith.addf %147, %148 : vector<128x32xf32>
    %c0_61 = arith.constant 0 : index
    %c0_62 = arith.constant 0 : index
    %150 = vector.load %arg15[%c0_61, %c0_62] : memref<128x32xf32, #tpu.memory_space<vmem>>, vector<128x32xf32>
    tpu.vector_store %arg15[%c0_61, %c0_62], %149 {strides = array<i32>} : memref<128x32xf32, #tpu.memory_space<vmem>>, vector<128x32xf32>,
    return
  }
  func.func @transform_0(%arg0: i32) -> (i32, i32) {
    %c0_i32 = arith.constant 0 : i32
    %c0_i32_0 = arith.constant 0 : i32
    return %arg0, %c0_i32 : i32, i32
  }
  func.func @transform_1(%arg0: i32) -> (i32, i32) {
    %c0_i32 = arith.constant 0 : i32
    %c0_i32_0 = arith.constant 0 : i32
    %c0_i32_1 = arith.constant 0 : i32
    return %c0_i32, %c0_i32_0 : i32, i32
  }
  func.func @transform_2(%arg0: i32) -> (i32, i32) {
    %c0_i32 = arith.constant 0 : i32
    %c0_i32_0 = arith.constant 0 : i32
    %c0_i32_1 = arith.constant 0 : i32
    return %c0_i32, %c0_i32_0 : i32, i32
  }
  func.func @transform_3(%arg0: i32) -> (i32, i32) {
    %c0_i32 = arith.constant 0 : i32
    %c0_i32_0 = arith.constant 0 : i32
    %c0_i32_1 = arith.constant 0 : i32
    return %c0_i32, %c0_i32_0 : i32, i32
  }
  func.func @transform_4(%arg0: i32) -> (i32, i32) {
    %c0_i32 = arith.constant 0 : i32
    %c0_i32_0 = arith.constant 0 : i32
    %c0_i32_1 = arith.constant 0 : i32
    return %c0_i32, %c0_i32_0 : i32, i32
  }
  func.func @transform_5(%arg0: i32) -> (i32, i32) {
    %c0_i32 = arith.constant 0 : i32
    %c0_i32_0 = arith.constant 0 : i32
    %c0_i32_1 = arith.constant 0 : i32
    return %c0_i32, %c0_i32_0 : i32, i32
  }
  func.func @transform_6(%arg0: i32) -> (i32, i32) {
    %c0_i32 = arith.constant 0 : i32
    %c0_i32_0 = arith.constant 0 : i32
    %c0_i32_1 = arith.constant 0 : i32
    return %c0_i32, %c0_i32_0 : i32, i32
  }
  func.func @transform_7(%arg0: i32) -> (i32, i32) {
    %c0_i32 = arith.constant 0 : i32
    %c0_i32_0 = arith.constant 0 : i32
    %c0_i32_1 = arith.constant 0 : i32
    return %c0_i32, %c0_i32_0 : i32, i32
  }
  func.func @transform_8(%arg0: i32) -> (i32, i32) {
    %c0_i32 = arith.constant 0 : i32
    %c0_i32_0 = arith.constant 0 : i32
    %c0_i32_1 = arith.constant 0 : i32
    return %c0_i32, %c0_i32_0 : i32, i32
  }
  func.func @transform_9(%arg0: i32) -> (i32, i32) {
    %c0_i32 = arith.constant 0 : i32
    %c0_i32_0 = arith.constant 0 : i32
    %c0_i32_1 = arith.constant 0 : i32
    return %c0_i32, %c0_i32_0 : i32, i32
  }
  func.func @transform_10(%arg0: i32) -> (i32, i32) {
    %c0_i32 = arith.constant 0 : i32
    %c0_i32_0 = arith.constant 0 : i32
    %c0_i32_1 = arith.constant 0 : i32
    return %c0_i32, %c0_i32_0 : i32, i32
  }
  func.func @transform_11(%arg0: i32) -> (i32, i32) {
    %c0_i32 = arith.constant 0 : i32
    %c0_i32_0 = arith.constant 0 : i32
    %c0_i32_1 = arith.constant 0 : i32
    return %c0_i32, %c0_i32_0 : i32, i32
  }
  func.func @transform_12(%arg0: i32) -> (i32, i32) {
    %c0_i32 = arith.constant 0 : i32
    %c0_i32_0 = arith.constant 0 : i32
    %c0_i32_1 = arith.constant 0 : i32
    return %c0_i32, %c0_i32_0 : i32, i32
  }
  func.func @transform_13(%arg0: i32) -> (i32, i32) {
    %c0_i32 = arith.constant 0 : i32
    %c0_i32_0 = arith.constant 0 : i32
    %c0_i32_1 = arith.constant 0 : i32
    return %c0_i32, %c0_i32_0 : i32, i32
  }
  func.func @transform_14(%arg0: i32) -> (i32, i32) {
    %c0_i32 = arith.constant 0 : i32
    %c0_i32_0 = arith.constant 0 : i32
    return %arg0, %c0_i32 : i32, i32
  }
}

</mosaic_0001>

<bundles_post_ra>
// kernel: tpu_custom_call.1
= control target key start
LH: loop header
LB: loop body
LE: loop exit
PB: predicated region body
PF: predicated region fallthrough
CT: control target
= control target key end

     0   :  { %19 = vsyncpa [#allocation3], 0  ;;  %s8881_s0 = inlined_call_operand.vmem [shape: f32[128,32], index: 0, kind: input, shape index: {}]   ;;  %s8882_s1 = inlined_call_operand.vmem [shape: f32[128,128], index: 1, kind: input, shape index: {}]   ;;  %s8883_s2 = inlined_call_operand.vmem [shape: f32[128,128], index: 2, kind: input, shape index: {}]   ;;  %s8884_s3 = inlined_call_operand.hbm [shape: f32[32,192], index: 3, kind: input, shape index: {}]   ;;  %s8885_s4 = inlined_call_operand.vmem [shape: f32[1,192], index: 4, kind: input, shape index: {}]   ;;  %s8886_s5 = inlined_call_operand.vmem [shape: f32[1,32], index: 5, kind: input, shape index: {}]   ;;  %s8887_s6 = inlined_call_operand.hbm [shape: f32[32,64], index: 6, kind: input, shape index: {}]   ;;  %s8888_s7 = inlined_call_operand.vmem [shape: f32[1,64], index: 7, kind: input, shape index: {}]   ;;  %s8889_s8 = inlined_call_operand.vmem [shape: f32[64,32], index: 8, kind: input, shape index: {}]   ;;  %s8890_s9 = inlined_call_operand.vmem [shape: f32[1,32], index: 9, kind: input, shape index: {}]   ;;  %s8891_s10 = inlined_call_operand.vmem [shape: f32[1,32], index: 10, kind: input, shape index: {}]   ;;  %s8892_s11 = inlined_call_operand.vmem [shape: f32[1,32], index: 11, kind: input, shape index: {}]   ;;  %s8893_s12 = inlined_call_operand.vmem [shape: f32[1,32], index: 12, kind: input, shape index: {}]   ;;  %s8894_s13 = inlined_call_operand.vmem [shape: f32[1,32], index: 13, kind: input, shape index: {}]   ;;  %s8895_s14 = inlined_call_operand.vmem [shape: f32[128,32], index: 14, kind: output, shape index: {}]  }
   0x1   :  { %20 = vsyncpa [#allocation5], 0  ;;  %s6076_s29 = smov [#allocation2]   ;;  %s6028_s17 = scalar_lea.hbm %s8884_s3, 1024 }
   0x2   :  { %s32_s30 = sshll.u32 %s6076_s29, 4  ;;  %p6029_p0 = scmp.ne.s32.totalorder %s8884_s3, %s6028_s17  ;;  %s33_s30 = int_to_ptr.vmem [resolvable:$true] %s32_s30 }
   0x3   :  { %p6032_p1 = scmp.lt.u32.totalorder %s6028_s17, %s8884_s3 }
   0x5   :  { %p6034_p2 = pnand %p6032_p1, %p6029_p0 }
   0x7   :  { %6037 = shalt.err (!%p6034_p2)
}
   0x8   :  { %s6038_s22 = scalar_lea.vmem %s33_s30, 1024  ;;  %p6043_p4 = scmp.lt.s32.totalorder %s33_s30, %s33_s30 }
   0x9   :  { %p6039_p3 = scmp.ne.s32.totalorder %s33_s30, %s6038_s22  ;;  %p6044_p5 = scmp.lt.s32.totalorder %s6038_s22, %s6038_s22 }
   0xb   :  { %p6045_p6 = por %p6044_p5, %p6043_p4 }
   0xd   :  { %p6046_p7 = pnand %p6045_p6, %p6039_p3 }
   0xf   :  { %6049 = shalt.err (!%p6046_p7)
}
  0x10   :  { %s6077_s23 = smov 256   ;;  %s6078_s24 = smov 16  }
  0x11   :  { %38 = dma.hbm_to_vmem [thread:$0]  %s8884_s3, 1024, %s33_s30, [#allocation3], %s6077_s23, %s6077_s23, %s6078_s24  }
  0x12   :  { %s6079_s27 = smov [#allocation4]   ;;  %s6050_s16 = scalar_lea.hbm %s8887_s6, 512 }
  0x13   :  { %s48_s28 = sshll.u32 %s6079_s27, 4  ;;  %p6051_p8 = scmp.ne.s32.totalorder %s8887_s6, %s6050_s16  ;;  %s49_s28 = int_to_ptr.vmem [resolvable:$true] %s48_s28 }
  0x14   :  { %p6054_p9 = scmp.lt.u32.totalorder %s6050_s16, %s8887_s6 }
  0x16   :  { %p6056_p10 = pnand %p6054_p9, %p6051_p8 }
  0x18   :  { %6059 = shalt.err (!%p6056_p10)
}
  0x19   :  { %s6060_s21 = scalar_lea.vmem %s49_s28, 512  ;;  %p6065_p12 = scmp.lt.s32.totalorder %s49_s28, %s49_s28 }
  0x1a   :  { %p6061_p11 = scmp.ne.s32.totalorder %s49_s28, %s6060_s21  ;;  %p6066_p13 = scmp.lt.s32.totalorder %s6060_s21, %s6060_s21 }
  0x1c   :  { %p6067_p0 = por %p6066_p13, %p6065_p12 }
  0x1e   :  { %p6068_p1 = pnand %p6067_p0, %p6061_p11 }
  0x20   :  { %6071 = shalt.err (!%p6068_p1)
}
  0x21   :  { %s6080_s3 = smov 128   ;;  %s6081_s30 = smov 8  }
  0x22   :  { %54 = dma.hbm_to_vmem [thread:$0]  %s8887_s6, 512, %s49_s28, [#allocation5], %s6080_s3, %s6080_s3, %s6081_s30  }
  0x23   :  { %6072 = dma.done.wait [#allocation3], 1024  }
  0x24   :  { %6073 = vsyncadd [#allocation3], 4294966272 }
  0x25   :  { %6074 = dma.done.wait [#allocation5], 512  }
  0x26   :  { %6075 = vsyncadd [#allocation5], 4294966784  ;;  %v6082_v0 = vmov 0.0   ;;  %v124_v1 = vld [vmem:[#allocation2 + $0x8] sm:$0xff]  ;;  %v126_v2 = vld [vmem:[#allocation2 + $0x18] sm:$0xff]  ;;  %vm143_vm0 = vcmask 261120   ;;  %v133_v29 = vlaneseq }
  0x27   :  { %256 = vmatprep.mubr.f32.mxu0 %v6082_v0  ;;  %v123_v3 = vld [vmem:[#allocation2] sm:$0xff]  ;;  %v4988_v4 = vpack.c.bf16 %v126_v2, %v124_v1  ;;  %v125_v5 = vld [vmem:[#allocation2 + $0x10] sm:$0xff]  ;;  %v128_v6 = vld [vmem:[#allocation2 + $0x28] sm:$0xff]  ;;  %vm401_vm1 = vcmask 64512   ;;  %s6084_s22 = smov 96   ;;  %s6085_s23 = smov 120  }
  0x28   :  { %v130_v7 = vld [vmem:[#allocation2 + $0x38] sm:$0xff]  ;;  %v4990_v8 = vpack.c.bf16 %v125_v5, %v123_v3  ;;  %v127_v10 = vld [vmem:[#allocation2 + $0x20] sm:$0xff]  ;;  %v129_v11 = vld [vmem:[#allocation2 + $0x30] sm:$0xff]  ;;  %v134_v30 = vshrl.u32 %v133_v29, 7  ;;  %s6086_s6 = smov 80   ;;  %s6087_s24 = smov 72  }
  0x29   :  { %v4992_v9 = vpack.c.bf16 %v130_v7, %v128_v6  ;;  %4989 = vmatprep.subr.bf16.mxu0 %v4988_v4  ;;  %v4994_v12 = vpack.c.bf16 %v129_v11, %v127_v10  ;;  %v75_v13 = vld [vmem:[%s8881_s0] sm:$0xff]  ;;  %v76_v14 = vld [vmem:[%s8881_s0 + $0x8] sm:$0xff]  ;;  %v77_v15 = vld [vmem:[%s8881_s0 + $0x10] sm:$0xff]  ;;  %s6088_s25 = smov 112   ;;  %s6089_s26 = smov 104   ;;  %vm3499_vm3 = vcmask 523264  }
  0x2a   :  { %4991 = vmatpush1.bf16.msra.mxu0 %v4990_v8  ;;  %v78_v16 = vld [vmem:[%s8881_s0 + $0x18] sm:$0xff]  ;;  %v79_v17 = vld [vmem:[%s8881_s0 + $0x20] sm:$0xff]  ;;  %v80_v18 = vld [vmem:[%s8881_s0 + $0x28] sm:$0xff]  ;;  %v135_v31 = vsub.s32 0, %v134_v30  ;;  %v139_v34 = vsub.s32 1, %v134_v30  ;;  %s6090_s27 = smov 32  }
  0x2b   :  { %4993 = vmatprep.subr.bf16.mxu0 %v4992_v9  ;;  %v81_v19 = vld [vmem:[%s8881_s0 + $0x30] sm:$0xff]  ;;  %v82_v20 = vld [vmem:[%s8881_s0 + $0x38] sm:$0xff]  ;;  %v83_v21 = vld [vmem:[%s8881_s0 + $0x40] sm:$0xff]  ;;  %s6091_s28 = smov 64  }
  0x2c   :  { %v84_v22 = vld [vmem:[%s8881_s0 + $0x48] sm:$0xff]  ;;  %v85_v23 = vld [vmem:[%s8881_s0 + $0x50] sm:$0xff]  ;;  %v86_v24 = vld [vmem:[%s8881_s0 + $0x58] sm:$0xff] }
  0x2d   :  { %v87_v25 = vld [vmem:[%s8881_s0 + $0x60] sm:$0xff]  ;;  %v88_v26 = vld [vmem:[%s8881_s0 + $0x68] sm:$0xff]  ;;  %v89_v27 = vld [vmem:[%s8881_s0 + $0x70] sm:$0xff] }
  0x2e   :  { %4995 = vmatpush1.bf16.msra.mxu0 %v4994_v12  ;;  %v90_v28 = vld [vmem:[%s8881_s0 + $0x78] sm:$0xff]  ;;  %v131_v32 = vld [vmem:[%s8885_s4] sm:$0x3]  ;;  %s6083_s4 = smov 88   ;;  %vm6568_vm2 = vmpackc.low %vm401_vm1, %vm401_vm1 }
  0x2f   :  { %v6274_v33 = vrot.slane %v131_v32, %v135_v31  ;;  %v6279_v38 = vrot.slane %v131_v32, %v139_v34 }
  0x31   :  { %3985 = vmatmul.mubr.msk.f32.vlgmr.msra.gmra.mrb[0].mxu0 %vm143_vm0, %v75_v13 }
  0x32   :  { %262 = vmatprep.mubr.f32.mxu0 %v6082_v0 }
  0x35   :  { %3986 = vmatmul.mubr.msk.f32.gmra.mrb[2].mxu0 %vm143_vm0, %v76_v14 }
  0x36   :  { %268 = vmatprep.mubr.f32.mxu0 %v6082_v0 }
  0x39   :  { %3987 = vmatmul.mubr.msk.f32.gmra.mrb[4].mxu0 %vm143_vm0, %v77_v15 }
  0x3a   :  { %274 = vmatprep.mubr.f32.mxu0 %v6082_v0 }
  0x3d   :  { %3988 = vmatmul.mubr.msk.f32.gmra.mrb[6].mxu0 %vm143_vm0, %v78_v16 }
  0x3e   :  { %280 = vmatprep.mubr.f32.mxu0 %v6082_v0 }
  0x41   :  { %3989 = vmatmul.mubr.msk.f32.gmra.mrb[8].mxu0 %vm143_vm0, %v79_v17 }
  0x42   :  { %286 = vmatprep.mubr.f32.mxu0 %v6082_v0 }
  0x45   :  { %3990 = vmatmul.mubr.msk.f32.gmra.mrb[10].mxu0 %vm143_vm0, %v80_v18 }
  0x46   :  { %292 = vmatprep.mubr.f32.mxu0 %v6082_v0 }
  0x49   :  { %3991 = vmatmul.mubr.msk.f32.gmra.mrb[12].mxu0 %vm143_vm0, %v81_v19 }
  0x4a   :  { %298 = vmatprep.mubr.f32.mxu0 %v6082_v0 }
  0x4d   :  { %3992 = vmatmul.mubr.msk.f32.gmra.mrb[14].mxu0 %vm143_vm0, %v82_v20 }
  0x4e   :  { %304 = vmatprep.mubr.f32.mxu0 %v6082_v0 }
  0x51   :  { %3993 = vmatmul.mubr.msk.f32.gmra.mrb[16].mxu0 %vm143_vm0, %v83_v21 }
  0x52   :  { %310 = vmatprep.mubr.f32.mxu0 %v6082_v0 }
  0x55   :  { %3994 = vmatmul.mubr.msk.f32.gmra.mrb[18].mxu0 %vm143_vm0, %v84_v22 }
  0x56   :  { %316 = vmatprep.mubr.f32.mxu0 %v6082_v0 }
  0x59   :  { %3995 = vmatmul.mubr.msk.f32.gmra.mrb[20].mxu0 %vm143_vm0, %v85_v23 }
  0x5a   :  { %322 = vmatprep.mubr.f32.mxu0 %v6082_v0 }
  0x5d   :  { %3996 = vmatmul.mubr.msk.f32.gmra.mrb[22].mxu0 %vm143_vm0, %v86_v24 }
  0x5e   :  { %328 = vmatprep.mubr.f32.mxu0 %v6082_v0 }
  0x61   :  { %3997 = vmatmul.mubr.msk.f32.gmra.mrb[24].mxu0 %vm143_vm0, %v87_v25 }
  0x62   :  { %334 = vmatprep.mubr.f32.mxu0 %v6082_v0 }
  0x65   :  { %3998 = vmatmul.mubr.msk.f32.gmra.mrb[26].mxu0 %vm143_vm0, %v88_v26 }
  0x66   :  { %340 = vmatprep.mubr.f32.mxu0 %v6082_v0 }
  0x69   :  { %3999 = vmatmul.mubr.msk.f32.gmra.mrb[28].mxu0 %vm143_vm0, %v89_v27 }
  0x6a   :  { %346 = vmatprep.mubr.f32.mxu0 %v6082_v0 }
  0x6d   :  { %4000 = vmatmul.mubr.msk.f32.gmra.mrb[30].mxu0 %vm143_vm0, %v90_v28 }
 0x104   :  { %v258_v35 = vpop.f32.mrb[0].mxu0 }
 0x105   :  { %v6277_v36 = vadd.f32 %v258_v35, %v6274_v33  ;;  %v260_v37 = vpop.f32.mrb[1].mxu0 }
 0x106   :  { %v6287_v42 = vadd.f32 %v260_v37, %v6279_v38 }
 0x107   :  { %4500 = vmatprep.mubr.msk.f32.mxu1 %vm401_vm1, %v6277_v36 }
 0x108   :  { %v264_v39 = vpop.f32.mrb[2].mxu0 }
 0x109   :  { %v6284_v40 = vadd.f32 %v264_v39, %v6274_v33  ;;  %v266_v41 = vpop.f32.mrb[3].mxu0 }
 0x10a   :  { %v6290_v43 = vadd.f32 %v266_v41, %v6279_v38 }
 0x10b   :  { %v6294_v44 = vpack.i.bf16 %v6284_v40, %v6277_v36 }
 0x10c   :  { %v6300_v46 = vpack.c.bf16 %v6290_v43, %v6287_v42  ;;  %v270_v47 = vpop.f32.mrb[4].mxu0 }
 0x10d   :  { %v272_v48 = vpop.f32.mrb[5].mxu0  ;;  %5413 = vrot.lane.b32.xlu0 %v6294_v44, %s6083_s4  ;;  %v6305_v50 = vadd.f32 %v270_v47, %v6274_v33 }
 0x10e   :  { %8983 = vst [vmem:[#allocation8_spill] sm:$0xff] %v6300_v46  ;;  %v6313_v53 = vadd.f32 %v272_v48, %v6279_v38  ;;  %v7136_v46 = vld [vmem:[%s8882_s1 + $0x40] sm:$0xff] }
 0x110   :  { %v276_v49 = vpop.f32.mrb[6].mxu0 }
 0x111   :  { %v6308_v51 = vadd.f32 %v276_v49, %v6274_v33  ;;  %v278_v52 = vpop.f32.mrb[7].mxu0  ;;  %5418 = vrot.lane.b32.xlu0 %v6294_v44, %s6084_s22 }
 0x112   :  { %v6316_v54 = vadd.f32 %v278_v52, %v6279_v38 }
 0x113   :  { %v6320_v55 = vpack.i.bf16 %v6308_v51, %v6305_v50 }
 0x114   :  { %v6326_v57 = vpack.c.bf16 %v6316_v54, %v6313_v53  ;;  %v282_v58 = vpop.f32.mrb[8].mxu0 }
 0x115   :  { %v284_v59 = vpop.f32.mrb[9].mxu0  ;;  %5423 = vrot.lane.b32.xlu0 %v6320_v55, %s6083_s4  ;;  %v6334_v62 = vadd.f32 %v282_v58, %v6274_v33 }
 0x116   :  { %8984 = vst [vmem:[#allocation9_spill] sm:$0xff] %v6326_v57  ;;  %v6331_v60 = vadd.f32 %v284_v59, %v6279_v38 }
 0x118   :  { %8985 = vst [vmem:[#allocation10_spill] sm:$0xff] %v6331_v60  ;;  %v288_v61 = vpop.f32.mrb[10].mxu0 }
 0x119   :  { %v6337_v63 = vadd.f32 %v288_v61, %v6274_v33  ;;  %v290_v0 = vpop.f32.mrb[11].mxu0  ;;  %803 = vrot.lane.b32.xlu0 %v6277_v36, %s6085_s23 }
 0x11a   :  { %v6342_v1 = vadd.f32 %v290_v0, %v6279_v38 }
 0x11b   :  { %v6346_v2 = vpack.i.bf16 %v6337_v63, %v6334_v62 }
 0x11c   :  { %8986 = vst [vmem:[#allocation11_spill] sm:$0xff] %v6342_v1  ;;  %v6352_v4 = vpack.c.bf16 %v6342_v1, %v6331_v60  ;;  %v294_v5 = vpop.f32.mrb[12].mxu0 }
 0x11d   :  { %v296_v6 = vpop.f32.mrb[13].mxu0  ;;  %5428 = vrot.lane.b32.xlu1 %v6346_v2, %s6083_s4  ;;  %5443 = vrot.lane.b32.xlu0 %v6320_v55, %s6084_s22  ;;  %v6362_v9 = vadd.f32 %v294_v5, %v6274_v33 }
 0x11e   :  { %8987 = vst [vmem:[#allocation12_spill] sm:$0xff] %v6352_v4  ;;  %v6359_v7 = vadd.f32 %v296_v6, %v6279_v38 }
 0x120   :  { %8988 = vst [vmem:[#allocation13_spill] sm:$0xff] %v6359_v7  ;;  %v300_v8 = vpop.f32.mrb[14].mxu0 }
 0x121   :  { %v6365_v10 = vadd.f32 %v300_v8, %v6274_v33  ;;  %v302_v11 = vpop.f32.mrb[15].mxu0  ;;  %5433 = vrot.lane.b32.xlu1 %v6294_v44, %s6086_s6  ;;  %5453 = vrot.lane.b32.xlu0 %v6346_v2, %s6084_s22 }
 0x122   :  { %v6372_v12 = vadd.f32 %v302_v11, %v6279_v38 }
 0x123   :  { %v6376_v13 = vpack.i.bf16 %v6365_v10, %v6362_v9 }
 0x124   :  { %8989 = vst [vmem:[#allocation14_spill] sm:$0xff] %v6372_v12  ;;  %v6382_v15 = vpack.c.bf16 %v6372_v12, %v6359_v7  ;;  %v306_v16 = vpop.f32.mrb[16].mxu0  ;;  %v7200_v12 = vld [vmem:[%s8882_s1 + $0x60] sm:$0xff] }
 0x125   :  { %v308_v17 = vpop.f32.mrb[17].mxu0  ;;  %5438 = vrot.lane.b32.xlu1 %v6376_v13, %s6083_s4  ;;  %5463 = vrot.lane.b32.xlu0 %v6376_v13, %s6084_s22  ;;  %v6392_v20 = vadd.f32 %v306_v16, %v6274_v33 }
 0x126   :  { %8990 = vst [vmem:[#allocation15_spill] sm:$0xff] %v6382_v15  ;;  %v6389_v18 = vadd.f32 %v308_v17, %v6279_v38 }
 0x128   :  { %8991 = vst [vmem:[#allocation16_spill] sm:$0xff] %v6389_v18  ;;  %v312_v19 = vpop.f32.mrb[18].mxu0 }
 0x129   :  { %v6395_v21 = vadd.f32 %v312_v19, %v6274_v33  ;;  %v314_v22 = vpop.f32.mrb[19].mxu0  ;;  %805 = vrot.lane.b32.xlu1 %v6284_v40, %s6085_s23 }
 0x12a   :  { %v6400_v23 = vadd.f32 %v314_v22, %v6279_v38 }
 0x12b   :  { %v6404_v24 = vpack.i.bf16 %v6395_v21, %v6392_v20 }
 0x12c   :  { %8992 = vst [vmem:[#allocation17_spill] sm:$0xff] %v6400_v23  ;;  %v6410_v26 = vpack.c.bf16 %v6400_v23, %v6389_v18  ;;  %v318_v27 = vpop.f32.mrb[20].mxu0 }
 0x12d   :  { %v320_v28 = vpop.f32.mrb[21].mxu0  ;;  %5448 = vrot.lane.b32.xlu1 %v6320_v55, %s6086_s6  ;;  %5468 = vrot.lane.b32.xlu0 %v6404_v24, %s6083_s4  ;;  %v6420_v31 = vadd.f32 %v318_v27, %v6274_v33 }
 0x12e   :  { %8993 = vst [vmem:[#allocation18_spill] sm:$0xff] %v6410_v26  ;;  %v6417_v29 = vadd.f32 %v320_v28, %v6279_v38 }
 0x130   :  { %8994 = vst [vmem:[#allocation19_spill] sm:$0xff] %v6417_v29  ;;  %v324_v30 = vpop.f32.mrb[22].mxu0 }
 0x131   :  { %v6423_v32 = vadd.f32 %v324_v30, %v6274_v33  ;;  %v326_v34 = vpop.f32.mrb[23].mxu0  ;;  %5458 = vrot.lane.b32.xlu1 %v6346_v2, %s6086_s6  ;;  %5483 = vrot.lane.b32.xlu0 %v6404_v24, %s6084_s22 }
 0x132   :  { %v6430_v35 = vadd.f32 %v326_v34, %v6279_v38 }
 0x133   :  { %v6434_v37 = vpack.i.bf16 %v6423_v32, %v6420_v31 }
 0x134   :  { %8995 = vst [vmem:[#allocation20_spill] sm:$0xff] %v6430_v35  ;;  %v6440_v41 = vpack.c.bf16 %v6430_v35, %v6417_v29  ;;  %v330_v47 = vpop.f32.mrb[24].mxu0 }
 0x135   :  { %v332_v48 = vpop.f32.mrb[25].mxu0  ;;  %5473 = vrot.lane.b32.xlu1 %v6434_v37, %s6083_s4  ;;  %807 = vrot.lane.b32.xlu0 %v6305_v50, %s6085_s23  ;;  %v6450_v58 = vadd.f32 %v330_v47, %v6274_v33 }
 0x136   :  { %8996 = vst [vmem:[#allocation21_spill] sm:$0xff] %v6440_v41  ;;  %v6447_v49 = vadd.f32 %v332_v48, %v6279_v38 }
 0x138   :  { %8997 = vst [vmem:[#allocation22_spill] sm:$0xff] %v6447_v49  ;;  %v336_v52 = vpop.f32.mrb[26].mxu0 }
 0x139   :  { %v6453_v59 = vadd.f32 %v336_v52, %v6274_v33  ;;  %v338_v61 = vpop.f32.mrb[27].mxu0  ;;  %5478 = vrot.lane.b32.xlu1 %v6376_v13, %s6086_s6  ;;  %5493 = vrot.lane.b32.xlu0 %v6434_v37, %s6084_s22 }
 0x13a   :  { %v6460_v0 = vadd.f32 %v338_v61, %v6279_v38 }
 0x13b   :  { %v6464_v5 = vpack.i.bf16 %v6453_v59, %v6450_v58 }
 0x13c   :  { %8998 = vst [vmem:[#allocation23_spill] sm:$0xff] %v6460_v0  ;;  %v6470_v8 = vpack.c.bf16 %v6460_v0, %v6447_v49  ;;  %v342_v11 = vpop.f32.mrb[28].mxu0 }
 0x13d   :  { %5488 = vrot.lane.b32.xlu1 %v6404_v24, %s6086_s6  ;;  %5498 = vrot.lane.b32.xlu0 %v6464_v5, %s6083_s4  ;;  %v344_v16 = vpop.f32.mrb[29].mxu0  ;;  %v6480_v19 = vadd.f32 %v342_v11, %v6274_v33 }
 0x13e   :  { %8999 = vst [vmem:[#allocation24_spill] sm:$0xff] %v6470_v8  ;;  %v6477_v17 = vadd.f32 %v344_v16, %v6279_v38 }
 0x140   :  { %9000 = vst [vmem:[#allocation25_spill] sm:$0xff] %v6477_v17  ;;  %v348_v22 = vpop.f32.mrb[30].mxu0 }
 0x141   :  { %v6483_v27 = vadd.f32 %v348_v22, %v6274_v33  ;;  %809 = vrot.lane.b32.xlu1 %v6308_v51, %s6085_s23  ;;  %811 = vrot.lane.b32.xlu0 %v6334_v62, %s6085_s23  ;;  %v350_v28 = vpop.f32.mrb[31].mxu0 }
 0x142   :  { %v6490_v30 = vadd.f32 %v350_v28, %v6279_v38 }
 0x143   :  { %v6494_v34 = vpack.i.bf16 %v6483_v27, %v6480_v19 }
 0x144   :  { %9001 = vst [vmem:[#allocation26_spill] sm:$0xff] %v6490_v30  ;;  %v6500_v33 = vpack.c.bf16 %v6490_v30, %v6477_v17 }
 0x145   :  { %5503 = vrot.lane.b32.xlu1 %v6494_v34, %s6083_s4  ;;  %815 = vrot.lane.b32.xlu0 %v6362_v9, %s6085_s23 }
 0x146   :  { %9002 = vst [vmem:[#allocation27_spill] sm:$0xff] %v6500_v33 }
 0x149   :  { %5508 = vrot.lane.b32.xlu1 %v6434_v37, %s6086_s6  ;;  %5513 = vrot.lane.b32.xlu0 %v6464_v5, %s6084_s22 }
 0x14d   :  { %813 = vrot.lane.b32.xlu1 %v6337_v63, %s6085_s23  ;;  %819 = vrot.lane.b32.xlu0 %v6392_v20, %s6085_s23 }
 0x151   :  { %817 = vrot.lane.b32.xlu1 %v6365_v10, %s6085_s23  ;;  %823 = vrot.lane.b32.xlu0 %v6420_v31, %s6085_s23 }
 0x155   :  { %5518 = vrot.lane.b32.xlu1 %v6464_v5, %s6086_s6  ;;  %827 = vrot.lane.b32.xlu0 %v6450_v58, %s6085_s23 }
 0x159   :  { %821 = vrot.lane.b32.xlu1 %v6395_v21, %s6085_s23  ;;  %831 = vrot.lane.b32.xlu0 %v6480_v19, %s6085_s23 }
 0x15d   :  { %825 = vrot.lane.b32.xlu1 %v6423_v32, %s6085_s23  ;;  %5523 = vrot.lane.b32.xlu0 %v6294_v44, %s6087_s24 }
 0x161   :  { %829 = vrot.lane.b32.xlu1 %v6453_v59, %s6085_s23  ;;  %1656 = vrot.lane.b32.xlu0 %v6284_v40, %s6088_s25 }
 0x165   :  { %1654 = vrot.lane.b32.xlu1 %v6277_v36, %s6088_s25  ;;  %5533 = vrot.lane.b32.xlu0 %v6346_v2, %s6087_s24 }
 0x169   :  { %5528 = vrot.lane.b32.xlu1 %v6320_v55, %s6087_s24  ;;  %5543 = vrot.lane.b32.xlu0 %v6404_v24, %s6087_s24 }
 0x16d   :  { %5538 = vrot.lane.b32.xlu1 %v6376_v13, %s6087_s24  ;;  %1660 = vrot.lane.b32.xlu0 %v6308_v51, %s6088_s25 }
 0x171   :  { %1658 = vrot.lane.b32.xlu1 %v6305_v50, %s6088_s25  ;;  %1662 = vrot.lane.b32.xlu0 %v6334_v62, %s6088_s25 }
 0x175   :  { %5548 = vrot.lane.b32.xlu1 %v6434_v37, %s6087_s24  ;;  %1666 = vrot.lane.b32.xlu0 %v6362_v9, %s6088_s25 }
 0x179   :  { %1664 = vrot.lane.b32.xlu1 %v6337_v63, %s6088_s25  ;;  %5553 = vrot.lane.b32.xlu0 %v6464_v5, %s6087_s24 }
 0x17d   :  { %1668 = vrot.lane.b32.xlu1 %v6365_v10, %s6088_s25  ;;  %1672 = vrot.lane.b32.xlu0 %v6395_v21, %s6088_s25 }
 0x17f   :  { %v5414_v38 = vpop.permute.xlu0 %5413 }
 0x180   :  { %v5416_v48 = vunpack.i.h.bf16 %v5414_v38  ;;  %v5415_v52 = vunpack.i.l.bf16 %v5414_v38 }
 0x181   :  { %1670 = vrot.lane.b32.xlu1 %v6392_v20, %s6088_s25  ;;  %5558 = vrot.lane.b32.xlu0 %v6494_v34, %s6084_s22 }
 0x182   :  { %v5044_v11 = vpack.c.bf16 %v5416_v48, %v5415_v52 }
 0x183   :  { %v5419_v16 = vpop.permute.xlu0 %5418 }
 0x184   :  { %5046 = vmatprep.subr.msk.bf16.mxu0 %vm6568_vm2, %v5044_v11  ;;  %v5421_v22 = vunpack.i.h.bf16 %v5419_v16  ;;  %v5420_v28 = vunpack.i.l.bf16 %v5419_v16 }
 0x185   :  { %5563 = vrot.lane.b32.xlu1 %v6494_v34, %s6086_s6  ;;  %1676 = vrot.lane.b32.xlu0 %v6423_v32, %s6088_s25 }
 0x186   :  { %5049 = vmatpush3.bf16.xpose.msk.msra.mxu0 %vm6568_vm2, %v5044_v11  ;;  %v4996_v38 = vpack.c.bf16 %v5421_v22, %v5420_v28 }
 0x187   :  { %v5424_v47 = vpop.permute.xlu0 %5423 }
 0x188   :  { %v5426_v6 = vunpack.i.h.bf16 %v5424_v47  ;;  %v5425_v39 = vunpack.i.l.bf16 %v5424_v47  ;;  %4998 = vmatprep.subr.msk.bf16.mxu1 %vm6568_vm2, %v4996_v38 }
 0x189   :  { %1674 = vrot.lane.b32.xlu1 %v6420_v31, %s6088_s25  ;;  %1678 = vrot.lane.b32.xlu0 %v6450_v58, %s6088_s25 }
 0x18a   :  { %v5050_v48 = vpack.c.bf16 %v5426_v6, %v5425_v39  ;;  %5001 = vmatpush3.bf16.xpose.msk.msra.mxu1 %vm6568_vm2, %v4996_v38 }
 0x18b   :  { %v804_v52 = vpop.permute.xlu0 %803 }
 0x18c   :  { %5052 = vmatprep.subr.msk.bf16.mxu0 %vm6568_vm2, %v5050_v48  ;;  %4556 = vmatprep.mubr.msk.f32.mxu0 %vm401_vm1, %v804_v52 }
 0x18d   :  { %833 = vrot.lane.b32.xlu1 %v6483_v27, %s6085_s23  ;;  %1682 = vrot.lane.b32.xlu0 %v6480_v19, %s6088_s25 }
 0x18e   :  { %5055 = vmatpush3.bf16.xpose.msk.msra.mxu0 %vm6568_vm2, %v5050_v48 }
 0x18f   :  { %v5429_v47 = vpop.permute.xlu1 %5428  ;;  %v5444_v39 = vpop.permute.xlu0 %5443 }
 0x190   :  { %v5431_v6 = vunpack.i.h.bf16 %v5429_v47  ;;  %v5430_v11 = vunpack.i.l.bf16 %v5429_v47  ;;  %v5446_v16 = vunpack.i.h.bf16 %v5444_v39  ;;  %v5445_v22 = vunpack.i.l.bf16 %v5444_v39 }
 0x191   :  { %1680 = vrot.lane.b32.xlu1 %v6453_v59, %s6088_s25  ;;  %2280 = vrot.lane.b32.xlu0 %v6277_v36, %s6089_s26 }
 0x192   :  { %v5056_v28 = vpack.c.bf16 %v5431_v6, %v5430_v11  ;;  %v5002_v38 = vpack.c.bf16 %v5446_v16, %v5445_v22 }
 0x193   :  { %v6601_v52 = vpop.permute.xlu1 %5433  ;;  %v5454_v25 = vpop.permute.xlu0 %5453 }
 0x194   :  { %v5456_v3 = vunpack.i.h.bf16 %v5454_v25  ;;  %v5455_v48 = vunpack.i.l.bf16 %v5454_v25  ;;  %5004 = vmatprep.subr.msk.bf16.mxu1 %vm6568_vm2, %v5002_v38  ;;  %5058 = vmatprep.subr.msk.bf16.mxu0 %vm6568_vm2, %v5056_v28  ;;  %v5436_v45 = vunpack.i.h.bf16 %v6601_v52  ;;  %v5435_v33 = vunpack.i.l.bf16 %v6601_v52 }
 0x195   :  { %2282 = vrot.lane.b32.xlu1 %v6284_v40, %s6089_s26  ;;  %2284 = vrot.lane.b32.xlu0 %v6305_v50, %s6089_s26 }
 0x196   :  { %v5008_v36 = vpack.c.bf16 %v5456_v3, %v5455_v48  ;;  %5007 = vmatpush3.bf16.xpose.msk.msra.mxu1 %vm6568_vm2, %v5002_v38  ;;  %5061 = vmatpush3.bf16.xpose.msk.msra.mxu0 %vm6568_vm2, %v5056_v28 }
 0x197   :  { %v5439_v25 = vpop.permute.xlu1 %5438  ;;  %v5464_v47 = vpop.permute.xlu0 %5463 }
 0x198   :  { %v5441_v39 = vunpack.i.h.bf16 %v5439_v25  ;;  %v5440_v6 = vunpack.i.l.bf16 %v5439_v25  ;;  %5010 = vmatprep.subr.msk.bf16.mxu1 %vm6568_vm2, %v5008_v36  ;;  %v5466_v11 = vunpack.i.h.bf16 %v5464_v47  ;;  %v5465_v16 = vunpack.i.l.bf16 %v5464_v47 }
 0x199   :  { %2286 = vrot.lane.b32.xlu1 %v6308_v51, %s6089_s26  ;;  %2288 = vrot.lane.b32.xlu0 %v6334_v62, %s6089_s26 }
 0x19a   :  { %v5062_v3 = vpack.c.bf16 %v5441_v39, %v5440_v6  ;;  %v5014_v28 = vpack.c.bf16 %v5466_v11, %v5465_v16 }
 0x19b   :  { %v6621_v22 = vpop.permute.xlu1 %805 }
 0x19c   :  { %5064 = vmatprep.subr.msk.bf16.mxu0 %vm6568_vm2, %v5062_v3 }
 0x19d   :  { %2290 = vrot.lane.b32.xlu1 %v6337_v63, %s6089_s26  ;;  %2292 = vrot.lane.b32.xlu0 %v6362_v9, %s6089_s26 }
 0x19e   :  { %5013 = vmatpush3.bf16.xpose.msk.msra.mxu1 %vm6568_vm2, %v5008_v36  ;;  %5067 = vmatpush3.bf16.xpose.msk.msra.mxu0 %vm6568_vm2, %v5062_v3 }
 0x19f   :  { %5016 = vmatprep.subr.msk.bf16.mxu1 %vm6568_vm2, %v5014_v28  ;;  %v6635_v38 = vpop.permute.xlu1 %5448  ;;  %v5469_v48 = vpop.permute.xlu0 %5468 }
 0x1a0   :  { %v5471_v25 = vunpack.i.h.bf16 %v5469_v48  ;;  %v5470_v47 = vunpack.i.l.bf16 %v5469_v48 }
 0x1a1   :  { %2294 = vrot.lane.b32.xlu1 %v6365_v10, %s6089_s26  ;;  %2296 = vrot.lane.b32.xlu0 %v6392_v20, %s6089_s26 }
 0x1a2   :  { %v5068_v39 = vpack.c.bf16 %v5471_v25, %v5470_v47 }
 0x1a3   :  { %v6641_v6 = vpop.permute.xlu1 %5458  ;;  %v5484_v36 = vpop.permute.xlu0 %5483 }
 0x1a4   :  { %v5486_v11 = vunpack.i.h.bf16 %v5484_v36  ;;  %v5485_v16 = vunpack.i.l.bf16 %v5484_v36  ;;  %5070 = vmatprep.subr.msk.bf16.mxu0 %vm6568_vm2, %v5068_v39 }
 0x1a5   :  { %2298 = vrot.lane.b32.xlu1 %v6395_v21, %s6089_s26  ;;  %2300 = vrot.lane.b32.xlu0 %v6420_v31, %s6089_s26 }
 0x1a6   :  { %v5020_v3 = vpack.c.bf16 %v5486_v11, %v5485_v16  ;;  %5019 = vmatpush3.bf16.xpose.msk.msra.mxu1 %vm6568_vm2, %v5014_v28  ;;  %5073 = vmatpush3.bf16.xpose.msk.msra.mxu0 %vm6568_vm2, %v5068_v39 }
 0x1a7   :  { %v5474_v48 = vpop.permute.xlu1 %5473  ;;  %v6653_v25 = vpop.permute.xlu0 %807 }
 0x1a8   :  { %v5476_v47 = vunpack.i.h.bf16 %v5474_v48  ;;  %v5475_v36 = vunpack.i.l.bf16 %v5474_v48  ;;  %5022 = vmatprep.subr.msk.bf16.mxu1 %vm6568_vm2, %v5020_v3 }
 0x1a9   :  { %2302 = vrot.lane.b32.xlu1 %v6423_v32, %s6089_s26  ;;  %2304 = vrot.lane.b32.xlu0 %v6450_v58, %s6089_s26 }
 0x1aa   :  { %v5074_v11 = vpack.c.bf16 %v5476_v47, %v5475_v36 }
 0x1ab   :  { %v6661_v16 = vpop.permute.xlu1 %5478  ;;  %v5494_v28 = vpop.permute.xlu0 %5493 }
 0x1ac   :  { %v5496_v14 = vunpack.i.h.bf16 %v5494_v28  ;;  %v5495_v39 = vunpack.i.l.bf16 %v5494_v28  ;;  %5076 = vmatprep.subr.msk.bf16.mxu0 %vm6568_vm2, %v5074_v11 }
 0x1ad   :  { %2306 = vrot.lane.b32.xlu1 %v6453_v59, %s6089_s26  ;;  %2308 = vrot.lane.b32.xlu0 %v6480_v19, %s6089_s26 }
 0x1ae   :  { %v5026_v48 = vpack.c.bf16 %v5496_v14, %v5495_v39  ;;  %5025 = vmatpush3.bf16.xpose.msk.msra.mxu1 %vm6568_vm2, %v5020_v3  ;;  %5079 = vmatpush3.bf16.xpose.msk.msra.mxu0 %vm6568_vm2, %v5074_v11 }
 0x1af   :  { %v6673_v47 = vpop.permute.xlu1 %5488  ;;  %v5499_v36 = vpop.permute.xlu0 %5498 }
 0x1b0   :  { %v5501_v28 = vunpack.i.h.bf16 %v5499_v36  ;;  %v5500_v56 = vunpack.i.l.bf16 %v5499_v36  ;;  %5028 = vmatprep.subr.msk.bf16.mxu1 %vm6568_vm2, %v5026_v48 }
 0x1b1   :  { %5568 = vrot.lane.b32.xlu1 %v6294_v44, %s6090_s27  ;;  %5573 = vrot.lane.b32.xlu0 %v6320_v55, %s6090_s27 }
 0x1b2   :  { %v5080_v14 = vpack.c.bf16 %v5501_v28, %v5500_v56 }
 0x1b3   :  { %v810_v3 = vpop.permute.xlu1 %809  ;;  %v812_v39 = vpop.permute.xlu0 %811 }
 0x1b4   :  { %5082 = vmatprep.subr.msk.bf16.mxu0 %vm6568_vm2, %v5080_v14 }
 0x1b5   :  { %5578 = vrot.lane.b32.xlu1 %v6346_v2, %s6090_s27  ;;  %5583 = vrot.lane.b32.xlu0 %v6376_v13, %s6090_s27 }
 0x1b6   :  { %5031 = vmatpush3.bf16.xpose.msk.msra.mxu1 %vm6568_vm2, %v5026_v48  ;;  %5085 = vmatpush3.bf16.xpose.msk.msra.mxu0 %vm6568_vm2, %v5080_v14 }
 0x1b7   :  { %v5504_v11 = vpop.permute.xlu1 %5503  ;;  %v816_v36 = vpop.permute.xlu0 %815 }
 0x1b8   :  { %v5506_v56 = vunpack.i.h.bf16 %v5504_v11  ;;  %v5505_v28 = vunpack.i.l.bf16 %v5504_v11  ;;  %v5156_v11 = vpack.c.bf16 %v5436_v45, %v5435_v33  ;;  %v5451_v45 = vunpack.i.h.bf16 %v6635_v38 }
 0x1b9   :  { %5588 = vrot.lane.b32.xlu1 %v6404_v24, %s6090_s27  ;;  %5593 = vrot.lane.b32.xlu0 %v6434_v37, %s6090_s27 }
 0x1ba   :  { %v5086_v8 = vpack.c.bf16 %v5506_v56, %v5505_v28 }
 0x1bb   :  { %v6697_v41 = vpop.permute.xlu1 %5508  ;;  %v5514_v48 = vpop.permute.xlu0 %5513 }
 0x1bc   :  { %v5516_v26 = vunpack.i.h.bf16 %v5514_v48  ;;  %v5515_v14 = vunpack.i.l.bf16 %v5514_v48  ;;  %5088 = vmatprep.subr.msk.bf16.mxu0 %vm6568_vm2, %v5086_v8 }
 0x1bd   :  { %5598 = vrot.lane.b32.xlu1 %v6464_v5, %s6090_s27  ;;  %5608 = vrot.lane.b32.xlu0 %v6320_v55, %s6091_s28  ;;  %v5450_v55 = vunpack.i.l.bf16 %v6635_v38  ;;  %v5460_v38 = vunpack.i.l.bf16 %v6641_v6 }
 0x1be   :  { %v5032_v52 = vpack.c.bf16 %v5516_v26, %v5515_v14  ;;  %5091 = vmatpush3.bf16.xpose.msk.msra.mxu0 %vm6568_vm2, %v5086_v8 }
 0x1bf   :  { %5158 = vmatprep.subr.msk.bf16.mxu0 %vm6568_vm2, %v5156_v11  ;;  %v814_v56 = vpop.permute.xlu1 %813  ;;  %v820_v28 = vpop.permute.xlu0 %819  ;;  %v5162_v33 = vpack.c.bf16 %v5451_v45, %v5450_v55  ;;  %v5511_v55 = vunpack.i.h.bf16 %v6697_v41 }
 0x1c0   :  { %5034 = vmatprep.subr.msk.bf16.mxu1 %vm6568_vm2, %v5032_v52 }
 0x1c1   :  { %5603 = vrot.lane.b32.xlu1 %v6294_v44, %s6091_s28  ;;  %5623 = vrot.lane.b32.xlu0 %v6376_v13, %s6091_s28 }
 0x1c2   :  { %5037 = vmatpush3.bf16.xpose.msk.msra.mxu1 %vm6568_vm2, %v5032_v52 }
 0x1c3   :  { %v818_v26 = vpop.permute.xlu1 %817  ;;  %v824_v8 = vpop.permute.xlu0 %823 }
 0x1c5   :  { %4557 = vmatmul.mubr.msk.f32.vlgmr.msra.gmra.mrb[32].mxu0 %vm401_vm1, %v6621_v22  ;;  %5613 = vrot.lane.b32.xlu1 %v6494_v34, %s6087_s24  ;;  %v5461_v22 = vunpack.i.h.bf16 %v6641_v6  ;;  %v5481_v6 = vunpack.i.h.bf16 %v6661_v16 }
 0x1c6   :  { %5633 = vrot.lane.b32.xlu0 %v6494_v34, %s6090_s27  ;;  %4559 = vmatprep.mubr.msk.f32.mxu0 %vm401_vm1, %v6653_v25 }
 0x1c7   :  { %5161 = vmatpush3.bf16.xpose.msk.msra.mxu0 %vm6568_vm2, %v5156_v11  ;;  %v6729_v44 = vpop.permute.xlu1 %5518  ;;  %v828_v13 = vpop.permute.xlu0 %827  ;;  %v5490_v11 = vunpack.i.l.bf16 %v6673_v47 }
 0x1c8   :  { %5164 = vmatprep.subr.msk.bf16.mxu0 %vm6568_vm2, %v5162_v33 }
 0x1c9   :  { %4560 = vmatmul.mubr.msk.f32.gmra.mrb[34].mxu0 %vm401_vm1, %v810_v3  ;;  %5618 = vrot.lane.b32.xlu1 %v6346_v2, %s6091_s28  ;;  %v5168_v3 = vpack.c.bf16 %v5461_v22, %v5460_v38  ;;  %v5521_v22 = vunpack.i.h.bf16 %v6729_v44  ;;  %v5520_v38 = vunpack.i.l.bf16 %v6729_v44 }
 0x1ca   :  { %5638 = vrot.lane.b32.xlu0 %v6434_v37, %s6091_s28  ;;  %4562 = vmatprep.mubr.msk.f32.mxu0 %vm401_vm1, %v812_v39  ;;  %v9005_v39 = vpack.i.bf16 %v6290_v43, %v6287_v42  ;;  %v5491_v43 = vunpack.i.h.bf16 %v6673_v47 }
 0x1cb   :  { %v822_v25 = vpop.permute.xlu1 %821  ;;  %v832_v48 = vpop.permute.xlu0 %831 }
 0x1cc   :  { %v5180_v45 = vpack.c.bf16 %v5491_v43, %v5490_v11 }
 0x1cd   :  { %4563 = vmatmul.mubr.msk.f32.gmra.mrb[36].mxu0 %vm401_vm1, %v814_v56  ;;  %1684 = vrot.lane.b32.xlu1 %v6483_v27, %s6088_s25 }
 0x1ce   :  { %5648 = vrot.lane.b32.xlu0 %v6494_v34, %s6091_s28  ;;  %4565 = vmatprep.mubr.msk.f32.mxu0 %vm401_vm1, %v816_v36  ;;  %v5480_v34 = vunpack.i.l.bf16 %v6661_v16 }
 0x1cf   :  { %5167 = vmatpush3.bf16.xpose.msk.msra.mxu0 %vm6568_vm2, %v5162_v33  ;;  %v826_v2 = vpop.permute.xlu1 %825  ;;  %v6749_v37 = vpop.permute.xlu0 %5523 }
 0x1d0   :  { %5170 = vmatprep.subr.msk.bf16.mxu0 %vm6568_vm2, %v5168_v3 }
 0x1d1   :  { %4566 = vmatmul.mubr.msk.f32.gmra.mrb[38].mxu0 %vm401_vm1, %v818_v26  ;;  %5628 = vrot.lane.b32.xlu1 %v6404_v24, %s6091_s28  ;;  %v5174_v24 = vpack.c.bf16 %v5481_v6, %v5480_v34  ;;  %v5510_v26 = vunpack.i.l.bf16 %v6697_v41  ;;  %v5192_v41 = vpack.c.bf16 %v5521_v22, %v5520_v38 }
 0x1d2   :  { %5653 = vrot.lane.b32.xlu0 %v9005_v39, %s6084_s22  ;;  %4568 = vmatprep.mubr.msk.f32.mxu0 %vm401_vm1, %v820_v28  ;;  %v9006_v28 = vpack.i.bf16 %v6316_v54, %v6313_v53 }
 0x1d3   :  { %v830_v36 = vpop.permute.xlu1 %829  ;;  %v6763_v14 = vpop.permute.xlu0 %1656  ;;  %v5186_v54 = vpack.c.bf16 %v5511_v55, %v5510_v26  ;;  %v5525_v55 = vunpack.i.l.bf16 %v6749_v37 }
 0x1d5   :  { %4569 = vmatmul.mubr.msk.f32.gmra.mrb[40].mxu0 %vm401_vm1, %v822_v25  ;;  %2310 = vrot.lane.b32.xlu1 %v6483_v27, %s6089_s26 }
 0x1d6   :  { %4571 = vmatprep.mubr.msk.f32.mxu0 %vm401_vm1, %v824_v8 }
 0x1d7   :  { %5173 = vmatpush3.bf16.xpose.msk.msra.mxu0 %vm6568_vm2, %v5168_v3  ;;  %v6771_v16 = vpop.permute.xlu1 %1654  ;;  %v6773_v42 = vpop.permute.xlu0 %5533 }
 0x1d8   :  { %5176 = vmatprep.subr.msk.bf16.mxu0 %vm6568_vm2, %v5174_v24 }
 0x1d9   :  { %4572 = vmatmul.mubr.msk.f32.gmra.mrb[42].mxu0 %vm401_vm1, %v826_v2  ;;  %5643 = vrot.lane.b32.xlu1 %v6464_v5, %s6091_s28 }
 0x1da   :  { %4574 = vmatprep.mubr.msk.f32.mxu0 %vm401_vm1, %v828_v13 }
 0x1db   :  { %v5529_v52 = vpop.permute.xlu1 %5528  ;;  %v6783_v56 = vpop.permute.xlu0 %5543 }
 0x1dd   :  { %4575 = vmatmul.mubr.msk.f32.gmra.mrb[44].mxu0 %vm401_vm1, %v830_v36  ;;  %5658 = vrot.lane.b32.xlu1 %v9006_v28, %s6084_s22 }
 0x1de   :  { %4577 = vmatprep.mubr.msk.f32.mxu0 %vm401_vm1, %v832_v48 }
 0x1df   :  { %5179 = vmatpush3.bf16.xpose.msk.msra.mxu0 %vm6568_vm2, %v5174_v24  ;;  %v6793_v5 = vpop.permute.xlu1 %5538  ;;  %v6795_v47 = vpop.permute.xlu0 %1660 }
 0x1e0   :  { %5182 = vmatprep.subr.msk.bf16.mxu0 %vm6568_vm2, %v5180_v45 }
 0x1e3   :  { %v1659_v8 = vpop.permute.xlu1 %1658  ;;  %v1663_v53 = vpop.permute.xlu0 %1662 }
 0x1e7   :  { %5185 = vmatpush3.bf16.xpose.msk.msra.mxu0 %vm6568_vm2, %v5180_v45  ;;  %v6803_v33 = vpop.permute.xlu1 %5548  ;;  %v6805_v13 = vpop.permute.xlu0 %1666  ;;  %v5526_v45 = vunpack.i.h.bf16 %v6749_v37  ;;  %v5531_v37 = vunpack.i.h.bf16 %v5529_v52 }
 0x1e8   :  { %5188 = vmatprep.subr.msk.bf16.mxu0 %vm6568_vm2, %v5186_v54 }
 0x1e9   :  { %v5236_v38 = vpack.c.bf16 %v5526_v45, %v5525_v55 }
 0x1eb   :  { %v1665_v25 = vpop.permute.xlu1 %1664  ;;  %v6811_v48 = vpop.permute.xlu0 %5553 }
 0x1ef   :  { %5191 = vmatpush3.bf16.xpose.msk.msra.mxu0 %vm6568_vm2, %v5186_v54  ;;  %v6815_v3 = vpop.permute.xlu1 %1668  ;;  %v6817_v2 = vpop.permute.xlu0 %1672 }
 0x1f0   :  { %5194 = vmatprep.subr.msk.bf16.mxu0 %vm6568_vm2, %v5192_v41 }
 0x1f3   :  { %v1671_v6 = vpop.permute.xlu1 %1670  ;;  %v5559_v34 = vpop.permute.xlu0 %5558 }
 0x1f4   :  { %v5561_v39 = vunpack.i.h.bf16 %v5559_v34  ;;  %v5560_v36 = vunpack.i.l.bf16 %v5559_v34 }
 0x1f6   :  { %v5038_v24 = vpack.c.bf16 %v5561_v39, %v5560_v36  ;;  %v5530_v39 = vunpack.i.l.bf16 %v5529_v52 }
 0x1f7   :  { %5197 = vmatpush3.bf16.xpose.msk.msra.mxu0 %vm6568_vm2, %v5192_v41  ;;  %v5564_v44 = vpop.permute.xlu1 %5563  ;;  %v6823_v43 = vpop.permute.xlu0 %1676 }
 0x1f8   :  { %v5566_v11 = vunpack.i.h.bf16 %v5564_v44  ;;  %v5565_v28 = vunpack.i.l.bf16 %v5564_v44  ;;  %5040 = vmatprep.subr.msk.bf16.mxu1 %vm6568_vm2, %v5038_v24 }
 0x1f9   :  { %5043 = vmatpush3.bf16.xpose.msk.msra.mxu1 %vm6568_vm2, %v5038_v24 }
 0x1fa   :  { %v5198_v26 = vpack.c.bf16 %v5566_v11, %v5565_v28 }
 0x1fb   :  { %v1675_v54 = vpop.permute.xlu1 %1674  ;;  %v6831_v22 = vpop.permute.xlu0 %1678 }
 0x1fc   :  { %5200 = vmatprep.subr.msk.bf16.mxu0 %vm6568_vm2, %v5198_v26 }
 0x1ff   :  { %5203 = vmatpush3.bf16.xpose.msk.msra.mxu0 %vm6568_vm2, %v5198_v26  ;;  %v834_v41 = vpop.permute.xlu1 %833  ;;  %v6837_v34 = vpop.permute.xlu0 %1682 }
 0x200   :  { %5238 = vmatprep.subr.msk.bf16.mxu0 %vm6568_vm2, %v5236_v38  ;;  %4501 = vmatmul.mubr.msk.f32.vlgmr.msra.gmra.mrb[0].mxu1 %vm401_vm1, %v6284_v40  ;;  %v5242_v40 = vpack.c.bf16 %v5531_v37, %v5530_v39 }
 0x201   :  { %4578 = vmatmul.mubr.msk.f32.gmra.mrb[46].mxu0 %vm401_vm1, %v834_v41  ;;  %4503 = vmatprep.mubr.msk.f32.mxu1 %vm401_vm1, %v6305_v50  ;;  %v5555_v41 = vunpack.i.l.bf16 %v6811_v48 }
 0x202   :  { %4724 = vmatprep.mubr.msk.f32.mxu0 %vm401_vm1, %v6771_v16 }
 0x203   :  { %v1681_v36 = vpop.permute.xlu1 %1680  ;;  %v6848_v24 = vpop.permute.xlu0 %2280 }
 0x204   :  { %4504 = vmatmul.mubr.msk.f32.gmra.mrb[2].mxu1 %vm401_vm1, %v6308_v51  ;;  %v5536_v51 = vunpack.i.h.bf16 %v6773_v42 }
 0x205   :  { %4506 = vmatprep.mubr.msk.f32.mxu1 %vm401_vm1, %v6334_v62  ;;  %v5535_v62 = vunpack.i.l.bf16 %v6773_v42 }
 0x206   :  { %4725 = vmatmul.mubr.msk.f32.vlgmr.msra.gmra.mrb[48].mxu0 %vm401_vm1, %v6763_v14 }
 0x207   :  { %4727 = vmatprep.mubr.msk.f32.mxu0 %vm401_vm1, %v1659_v8  ;;  %5241 = vmatpush3.bf16.xpose.msk.msra.mxu0 %vm6568_vm2, %v5236_v38  ;;  %v6859_v50 = vpop.permute.xlu1 %2282  ;;  %v6861_v16 = vpop.permute.xlu0 %2284  ;;  %v5556_v38 = vunpack.i.h.bf16 %v6811_v48 }
 0x208   :  { %5244 = vmatprep.subr.msk.bf16.mxu0 %vm6568_vm2, %v5242_v40  ;;  %4507 = vmatmul.mubr.msk.f32.gmra.mrb[4].mxu1 %vm401_vm1, %v6337_v63  ;;  %v5248_v63 = vpack.c.bf16 %v5536_v51, %v5535_v62 }
 0x209   :  { %4509 = vmatprep.mubr.msk.f32.mxu1 %vm401_vm1, %v6362_v9  ;;  %v5272_v51 = vpack.c.bf16 %v5556_v38, %v5555_v41 }
 0x20a   :  { %4728 = vmatmul.mubr.msk.f32.gmra.mrb[50].mxu0 %vm401_vm1, %v6795_v47 }
 0x20b   :  { %4730 = vmatprep.mubr.msk.f32.mxu0 %vm401_vm1, %v1663_v53  ;;  %v6874_v14 = vpop.permute.xlu1 %2286  ;;  %v6876_v52 = vpop.permute.xlu0 %2288 }
 0x20c   :  { %4510 = vmatmul.mubr.msk.f32.gmra.mrb[6].mxu1 %vm401_vm1, %v6365_v10  ;;  %v5541_v10 = vunpack.i.h.bf16 %v6793_v5 }
 0x20d   :  { %4512 = vmatprep.mubr.msk.f32.mxu1 %vm401_vm1, %v6392_v20  ;;  %v5540_v20 = vunpack.i.l.bf16 %v6793_v5 }
 0x20e   :  { %4731 = vmatmul.mubr.msk.f32.gmra.mrb[52].mxu0 %vm401_vm1, %v1665_v25  ;;  %v5551_v25 = vunpack.i.h.bf16 %v6803_v33 }
 0x20f   :  { %4733 = vmatprep.mubr.msk.f32.mxu0 %vm401_vm1, %v6805_v13  ;;  %5247 = vmatpush3.bf16.xpose.msk.msra.mxu0 %vm6568_vm2, %v5242_v40  ;;  %v6887_v9 = vpop.permute.xlu1 %2290  ;;  %v6889_v42 = vpop.permute.xlu0 %2292 }
 0x210   :  { %5250 = vmatprep.subr.msk.bf16.mxu0 %vm6568_vm2, %v5248_v63  ;;  %4513 = vmatmul.mubr.msk.f32.gmra.mrb[8].mxu1 %vm401_vm1, %v6395_v21  ;;  %v5254_v21 = vpack.c.bf16 %v5541_v10, %v5540_v20 }
 0x211   :  { %4515 = vmatprep.mubr.msk.f32.mxu1 %vm401_vm1, %v6420_v31 }
 0x212   :  { %4734 = vmatmul.mubr.msk.f32.gmra.mrb[54].mxu0 %vm401_vm1, %v6815_v3 }
 0x213   :  { %4736 = vmatprep.mubr.msk.f32.mxu0 %vm401_vm1, %v1671_v6  ;;  %v6902_v47 = vpop.permute.xlu1 %2294  ;;  %v6904_v8 = vpop.permute.xlu0 %2296 }
 0x214   :  { %4516 = vmatmul.mubr.msk.f32.gmra.mrb[10].mxu1 %vm401_vm1, %v6423_v32  ;;  %v5546_v32 = vunpack.i.h.bf16 %v6783_v56 }
 0x215   :  { %4518 = vmatprep.mubr.msk.f32.mxu1 %vm401_vm1, %v6450_v58  ;;  %v5545_v58 = vunpack.i.l.bf16 %v6783_v56 }
 0x216   :  { %4737 = vmatmul.mubr.msk.f32.gmra.mrb[56].mxu0 %vm401_vm1, %v6817_v2 }
 0x217   :  { %4739 = vmatprep.mubr.msk.f32.mxu0 %vm401_vm1, %v1675_v54  ;;  %5253 = vmatpush3.bf16.xpose.msk.msra.mxu0 %vm6568_vm2, %v5248_v63  ;;  %v6915_v31 = vpop.permute.xlu1 %2298  ;;  %v6917_v5 = vpop.permute.xlu0 %2300 }
 0x218   :  { %5256 = vmatprep.subr.msk.bf16.mxu0 %vm6568_vm2, %v5254_v21  ;;  %4519 = vmatmul.mubr.msk.f32.gmra.mrb[12].mxu1 %vm401_vm1, %v6453_v59  ;;  %v5260_v59 = vpack.c.bf16 %v5546_v32, %v5545_v58 }
 0x219   :  { %4521 = vmatprep.mubr.msk.f32.mxu1 %vm401_vm1, %v6480_v19 }
 0x21a   :  { %4740 = vmatmul.mubr.msk.f32.gmra.mrb[58].mxu0 %vm401_vm1, %v6823_v43 }
 0x21b   :  { %4742 = vmatprep.mubr.msk.f32.mxu0 %vm401_vm1, %v6831_v22  ;;  %v6931_v53 = vpop.permute.xlu1 %2302  ;;  %v6933_v13 = vpop.permute.xlu0 %2304 }
 0x21c   :  { %4522 = vmatmul.mubr.msk.f32.gmra.mrb[14].mxu1 %vm401_vm1, %v6483_v27  ;;  %v5550_v27 = vunpack.i.l.bf16 %v6803_v33 }
 0x21e   :  { %4743 = vmatmul.mubr.msk.f32.gmra.mrb[60].mxu0 %vm401_vm1, %v1681_v36  ;;  %v5266_v28 = vpack.c.bf16 %v5551_v25, %v5550_v27 }
 0x21f   :  { %4745 = vmatprep.mubr.msk.f32.mxu0 %vm401_vm1, %v6837_v34  ;;  %5259 = vmatpush3.bf16.xpose.msk.msra.mxu0 %vm6568_vm2, %v5254_v21  ;;  %v6942_v19 = vpop.permute.xlu1 %2306  ;;  %v6944_v56 = vpop.permute.xlu0 %2308 }
 0x220   :  { %5262 = vmatprep.subr.msk.bf16.mxu0 %vm6568_vm2, %v5260_v59 }
 0x223   :  { %v5569_v3 = vpop.permute.xlu1 %5568  ;;  %v5574_v2 = vpop.permute.xlu0 %5573 }
 0x224   :  { %v5571_v6 = vunpack.i.h.bf16 %v5569_v3  ;;  %v5570_v44 = vunpack.i.l.bf16 %v5569_v3  ;;  %v5576_v43 = vunpack.i.h.bf16 %v5574_v2  ;;  %v5575_v11 = vunpack.i.l.bf16 %v5574_v2 }
 0x226   :  { %v5092_v45 = vpack.c.bf16 %v5571_v6, %v5570_v44  ;;  %v5096_v33 = vpack.c.bf16 %v5576_v43, %v5575_v11 }
 0x227   :  { %5265 = vmatpush3.bf16.xpose.msk.msra.mxu0 %vm6568_vm2, %v5260_v59  ;;  %v5579_v55 = vpop.permute.xlu1 %5578  ;;  %v5584_v26 = vpop.permute.xlu0 %5583 }
 0x228   :  { %5268 = vmatprep.subr.msk.bf16.mxu0 %vm6568_vm2, %v5266_v28  ;;  %v5581_v54 = vunpack.i.h.bf16 %v5579_v55  ;;  %v5580_v22 = vunpack.i.l.bf16 %v5579_v55  ;;  %5093 = vmatprep.subr.bf16.mxu1 %v5092_v45  ;;  %v5586_v39 = vunpack.i.h.bf16 %v5584_v26  ;;  %v5585_v36 = vunpack.i.l.bf16 %v5584_v26 }
 0x229   :  { %5095 = vmatpush3.bf16.msra.mxu1 %v5092_v45 }
 0x22a   :  { %5097 = vmatprep.subr.bf16.mxu1 %v5096_v33  ;;  %v5100_v40 = vpack.c.bf16 %v5581_v54, %v5580_v22  ;;  %v5104_v48 = vpack.c.bf16 %v5586_v39, %v5585_v36 }
 0x22b   :  { %v5589_v34 = vpop.permute.xlu1 %5588  ;;  %v5594_v37 = vpop.permute.xlu0 %5593 }
 0x22c   :  { %v5591_v10 = vunpack.i.h.bf16 %v5589_v34  ;;  %v5590_v20 = vunpack.i.l.bf16 %v5589_v34  ;;  %v5596_v21 = vunpack.i.h.bf16 %v5594_v37  ;;  %v5595_v32 = vunpack.i.l.bf16 %v5594_v37 }
 0x22d   :  { %5099 = vmatpush3.bf16.msra.mxu1 %v5096_v33 }
 0x22e   :  { %5101 = vmatprep.subr.bf16.mxu1 %v5100_v40  ;;  %v5108_v25 = vpack.c.bf16 %v5591_v10, %v5590_v20  ;;  %v5112_v3 = vpack.c.bf16 %v5596_v21, %v5595_v32  ;;  %v7039_v21 = vld [vmem:[%s8882_s1] sm:$0xff] }
 0x22f   :  { %5271 = vmatpush3.bf16.xpose.msk.msra.mxu0 %vm6568_vm2, %v5266_v28  ;;  %v5599_v62 = vpop.permute.xlu1 %5598  ;;  %v6958_v63 = vpop.permute.xlu0 %5608 }
 0x230   :  { %9007 = vst [vmem:[#allocation28_spill] sm:$0xff] %v6958_v63  ;;  %5274 = vmatprep.subr.msk.bf16.mxu0 %vm6568_vm2, %v5272_v51  ;;  %v5601_v2 = vunpack.i.h.bf16 %v5599_v62  ;;  %v5600_v6 = vunpack.i.l.bf16 %v5599_v62 }
 0x231   :  { %5103 = vmatpush3.bf16.msra.mxu1 %v5100_v40 }
 0x232   :  { %5105 = vmatprep.subr.bf16.mxu1 %v5104_v48  ;;  %v5116_v54 = vpack.c.bf16 %v5601_v2, %v5600_v6 }
 0x233   :  { %v5604_v58 = vpop.permute.xlu1 %5603  ;;  %v6962_v59 = vpop.permute.xlu0 %5623 }
 0x234   :  { %9008 = vst [vmem:[#allocation29_spill] sm:$0xff] %v6962_v59  ;;  %v5606_v33 = vunpack.i.h.bf16 %v5604_v58  ;;  %v5605_v38 = vunpack.i.l.bf16 %v5604_v58 }
 0x235   :  { %5107 = vmatpush3.bf16.msra.mxu1 %v5104_v48 }
 0x236   :  { %5109 = vmatprep.subr.bf16.mxu1 %v5108_v25  ;;  %v6975_v34 = vpack.c.bf16 %v5606_v33, %v5605_v38  ;;  %v7072_v33 = vld [vmem:[%s8882_s1 + $0x20] sm:$0xff] }
 0x237   :  { %5277 = vmatpush3.bf16.xpose.msk.msra.mxu0 %vm6568_vm2, %v5272_v51  ;;  %v5614_v27 = vpop.permute.xlu1 %5613 }
 0x238   :  { %v5616_v44 = vunpack.i.h.bf16 %v5614_v27  ;;  %v5615_v43 = vunpack.i.l.bf16 %v5614_v27  ;;  %v5634_v11 = vpop.permute.xlu0 %5633  ;;  %9010 = vst [vmem:[#allocation31_spill] sm:$0xff] %v6975_v34 }
 0x239   :  { %5111 = vmatpush3.bf16.msra.mxu1 %v5108_v25  ;;  %v5636_v55 = vunpack.i.h.bf16 %v5634_v11  ;;  %v5635_v26 = vunpack.i.l.bf16 %v5634_v11  ;;  %v7057_v11 = vld [vmem:[%s8882_s1 + $0x10] sm:$0xff] }
 0x23a   :  { %v5278_v28 = vpack.c.bf16 %v5616_v44, %v5615_v43  ;;  %5113 = vmatprep.subr.bf16.mxu1 %v5112_v3 }
 0x23b   :  { %v6966_v45 = vpop.permute.xlu1 %5618  ;;  %v5120_v41 = vpack.c.bf16 %v5636_v55, %v5635_v26  ;;  %v7064_v55 = vld [vmem:[%s8882_s1 + $0x18] sm:$0xff] }
 0x23c   :  { %9009 = vst [vmem:[#allocation30_spill] sm:$0xff] %v6966_v45  ;;  %5280 = vmatprep.subr.msk.bf16.mxu0 %vm6568_vm2, %v5278_v28 }
 0x23d   :  { %5115 = vmatpush3.bf16.msra.mxu1 %v5112_v3 }
 0x23e   :  { %5117 = vmatprep.subr.bf16.mxu1 %v5116_v54 }
 0x23f   :  { %5283 = vmatpush3.bf16.xpose.msk.msra.mxu0 %vm6568_vm2, %v5278_v28  ;;  %v1685_v22 = vpop.permute.xlu1 %1684 }
 0x240   :  { %4746 = vmatmul.mubr.msk.f32.gmra.mrb[62].mxu0 %vm401_vm1, %v1685_v22 }
 0x241   :  { %5119 = vmatpush3.bf16.msra.mxu1 %v5116_v54  ;;  %4836 = vmatprep.mubr.msk.f32.mxu0 %vm401_vm1, %v6848_v24 }
 0x242   :  { %5121 = vmatprep.subr.bf16.mxu1 %v5120_v41 }
 0x243   :  { %v7000_v61 = vpop.permute.xlu1 %5628 }
 0x244   :  { %9011 = vst [vmem:[#allocation32_spill] sm:$0xff] %v7000_v61 }
 0x245   :  { %5123 = vmatpush3.bf16.msra.mxu1 %v5120_v41 }
 0x246   :  { %4837 = vmatmul.mubr.msk.f32.vlgmr.msra.gmra.mrb[64].mxu0 %vm401_vm1, %v6859_v50  ;;  %5125 = vmatprep.subr.bf16.mxu1 %v6975_v34  ;;  %v7012_v50 = vld [vmem:[%s8882_s1 + $0x8] sm:$0xff] }
 0x247   :  { %4839 = vmatprep.mubr.msk.f32.mxu0 %vm401_vm1, %v6861_v16  ;;  %v2311_v24 = vpop.permute.xlu1 %2310 }
 0x24a   :  { %4840 = vmatmul.mubr.msk.f32.gmra.mrb[66].mxu0 %vm401_vm1, %v6874_v14 }
 0x24b   :  { %4842 = vmatprep.mubr.msk.f32.mxu0 %vm401_vm1, %v6876_v52 }
 0x24e   :  { %4843 = vmatmul.mubr.msk.f32.gmra.mrb[68].mxu0 %vm401_vm1, %v6887_v9 }
 0x24f   :  { %4845 = vmatprep.mubr.msk.f32.mxu0 %vm401_vm1, %v6889_v42 }
 0x252   :  { %4846 = vmatmul.mubr.msk.f32.gmra.mrb[70].mxu0 %vm401_vm1, %v6902_v47 }
 0x253   :  { %4848 = vmatprep.mubr.msk.f32.mxu0 %vm401_vm1, %v6904_v8 }
 0x256   :  { %4849 = vmatmul.mubr.msk.f32.gmra.mrb[72].mxu0 %vm401_vm1, %v6915_v31 }
 0x257   :  { %4851 = vmatprep.mubr.msk.f32.mxu0 %vm401_vm1, %v6917_v5 }
 0x25a   :  { %4852 = vmatmul.mubr.msk.f32.gmra.mrb[74].mxu0 %vm401_vm1, %v6931_v53 }
 0x25b   :  { %4854 = vmatprep.mubr.msk.f32.mxu0 %vm401_vm1, %v6933_v13 }
 0x25e   :  { %4855 = vmatmul.mubr.msk.f32.gmra.mrb[76].mxu0 %vm401_vm1, %v6942_v19 }
 0x25f   :  { %4857 = vmatprep.mubr.msk.f32.mxu0 %vm401_vm1, %v6944_v56 }
 0x262   :  { %4858 = vmatmul.mubr.msk.f32.gmra.mrb[78].mxu0 %vm401_vm1, %v2311_v24 }
 0x298   :  { %v4558_v16 = vpop.f32.mrb[32].mxu0 }
 0x299   :  { %v1077_v14 = vmul.f32 0.35355338, %v4558_v16  ;;  %v997_v52 = vpop.f32.mrb[33].mxu0 }
 0x29a   :  { %v1076_v32 = vmul.f32 0.35355338, %v997_v52 }
 0x29b   :  { %v7015_v9 = vadd.f32 %v1077_v14, %v7012_v50 }
 0x29c   :  { %v4561_v42 = vpop.f32.mrb[34].mxu0  ;;  %v7052_v44 = vadd.f32 %v1076_v32, %v7039_v21 }
 0x29d   :  { %1110 = vmax.xlane.f32.xlu1 %v7015_v9  ;;  %v1007_v47 = vpop.f32.mrb[35].mxu0  ;;  %v1079_v43 = vmul.f32 0.35355338, %v4561_v42 }
 0x29f   :  { %v7079_v24 = vadd.f32 %v1079_v43, %v7064_v55  ;;  %v7101_v43 = vld [vmem:[%s8882_s1 + $0x30] sm:$0xff] }
 0x2a0   :  { %v4564_v8 = vpop.f32.mrb[36].mxu0 }
 0x2a1   :  { %v1017_v31 = vpop.f32.mrb[37].mxu0 }
 0x2a2   :  { %v1080_v26 = vmul.f32 0.35355338, %v1017_v31 }
 0x2a4   :  { %v7018_v5 = vpop.f32.mrb[38].mxu0  ;;  %v7084_v52 = vadd.f32 %v1080_v26, %v7072_v33 }
 0x2a5   :  { %v1027_v53 = vpop.f32.mrb[39].mxu0 }
 0x2a8   :  { %v7020_v13 = vpop.f32.mrb[40].mxu0 }
 0x2a9   :  { %v7022_v19 = vpop.f32.mrb[41].mxu0 }
 0x2aa   :  { %v1084_v0 = vmul.f32 0.35355338, %v7022_v19 }
 0x2ac   :  { %v7024_v56 = vpop.f32.mrb[42].mxu0  ;;  %v7154_v34 = vadd.f32 %v1084_v0, %v7136_v46 }
 0x2ad   :  { %v7026_v37 = vpop.f32.mrb[43].mxu0 }
 0x2ae   :  { %v1086_v63 = vmul.f32 0.35355338, %v7026_v37  ;;  %v7183_v37 = vld [vmem:[%s8882_s1 + $0x48] sm:$0xff] }
 0x2b0   :  { %v7028_v39 = vpop.f32.mrb[44].mxu0 }
 0x2b1   :  { %v7030_v36 = vpop.f32.mrb[45].mxu0 }
 0x2d3   :  { %v4502_v40 = vpop.f32.mrb[0].mxu1 }
 0x2d4   :  { %v612_v51 = vmul.f32 0.35355338, %v4502_v40  ;;  %v7032_v62 = vpop.f32.mrb[46].mxu0  ;;  %v532_v10 = vpop.f32.mrb[1].mxu1 }
 0x2d5   :  { %v611_v20 = vmul.f32 0.35355338, %v532_v10  ;;  %v7034_v48 = vpop.f32.mrb[47].mxu0  ;;  %v1078_v10 = vmul.f32 0.35355338, %v1007_v47 }
 0x2d6   :  { %v7042_v58 = vadd.f32 %v612_v51, %v7012_v50 }
 0x2d7   :  { %v7045_v25 = vadd.f32 %v611_v20, %v7039_v21  ;;  %v4505_v27 = vpop.f32.mrb[2].mxu1  ;;  %v7108_v47 = vadd.f32 %v1078_v10, %v7057_v11 }
 0x2d8   :  { %645 = vmax.xlane.f32.xlu0 %v7042_v58  ;;  %v542_v3 = vpop.f32.mrb[3].mxu1  ;;  %v614_v16 = vmul.f32 0.35355338, %v4505_v27  ;;  %v1082_v27 = vmul.f32 0.35355338, %v1027_v53 }
 0x2d9   :  { %v7048_v2 = vpop.f32.mrb[48].mxu0  ;;  %v613_v6 = vmul.f32 0.35355338, %v542_v3  ;;  %643 = vmax.xlane.f32.xlu1 %v7045_v25  ;;  %v1081_v53 = vmul.f32 0.35355338, %v4564_v8 }
 0x2da   :  { %v7059_v28 = vpop.f32.mrb[49].mxu0  ;;  %v7091_v20 = vadd.f32 %v614_v16, %v7064_v55  ;;  %v7118_v15 = vadd.f32 %v1082_v27, %v7101_v43 }
 0x2db   :  { %v7067_v54 = vadd.f32 %v613_v6, %v7057_v11  ;;  %v4508_v22 = vpop.f32.mrb[4].mxu1 }
 0x2dc   :  { %1108 = vmax.xlane.f32.xlu0 %v7052_v44  ;;  %v552_v38 = vpop.f32.mrb[5].mxu1  ;;  %v616_v10 = vmul.f32 0.35355338, %v4508_v22  ;;  %v1083_v22 = vmul.f32 0.35355338, %v7018_v5 }
 0x2dd   :  { %v7075_v41 = vpop.f32.mrb[50].mxu0  ;;  %647 = vmax.xlane.f32.xlu1 %v7067_v54  ;;  %v615_v42 = vmul.f32 0.35355338, %v552_v38 }
 0x2de   :  { %v7081_v14 = vpop.f32.mrb[51].mxu0 }
 0x2df   :  { %v4511_v31 = vpop.f32.mrb[6].mxu1  ;;  %v7096_v3 = vadd.f32 %v615_v42, %v7072_v33  ;;  %v7115_v42 = vld [vmem:[%s8882_s1 + $0x28] sm:$0xff] }
 0x2e0   :  { %1114 = vmax.xlane.f32.xlu0 %v7079_v24  ;;  %v562_v40 = vpop.f32.mrb[7].mxu1  ;;  %v7125_v8 = vadd.f32 %v1081_v53, %v7115_v42  ;;  %v7144_v19 = vadd.f32 %v616_v10, %v7115_v42  ;;  %v7151_v53 = vld [vmem:[%s8882_s1 + $0x38] sm:$0xff]  ;;  %v618_v10 = vmul.f32 0.35355338, %v4511_v31 }
 0x2e1   :  { %v7087_v51 = vpop.f32.mrb[52].mxu0  ;;  %1116 = vmax.xlane.f32.xlu1 %v7084_v52  ;;  %v617_v4 = vmul.f32 0.35355338, %v562_v40  ;;  %v7161_v5 = vadd.f32 %v1083_v22, %v7151_v53  ;;  %v1085_v22 = vmul.f32 0.35355338, %v7020_v13 }
 0x2e2   :  { %v7093_v32 = vpop.f32.mrb[53].mxu0  ;;  %v7178_v31 = vadd.f32 %v618_v10, %v7151_v53  ;;  %v1088_v10 = vmul.f32 0.35355338, %v7030_v36  ;;  %v7211_v36 = vld [vmem:[%s8882_s1 + $0x58] sm:$0xff] }
 0x2e3   :  { %v4514_v6 = vpop.f32.mrb[8].mxu1  ;;  %v7131_v27 = vadd.f32 %v617_v4, %v7101_v43  ;;  %v7191_v1 = vadd.f32 %v1085_v22, %v7183_v37 }
 0x2e4   :  { %649 = vmax.xlane.f32.xlu0 %v7091_v20  ;;  %v572_v26 = vpop.f32.mrb[9].mxu1  ;;  %v620_v13 = vmul.f32 0.35355338, %v4514_v6 }
 0x2e5   :  { %v7104_v38 = vpop.f32.mrb[54].mxu0  ;;  %651 = vmax.xlane.f32.xlu1 %v7096_v3  ;;  %v619_v29 = vmul.f32 0.35355338, %v572_v26  ;;  %v7172_v26 = vld [vmem:[%s8882_s1 + $0x50] sm:$0xff] }
 0x2e6   :  { %v7110_v16 = vpop.f32.mrb[55].mxu0 }
 0x2e7   :  { %v4517_v57 = vpop.f32.mrb[10].mxu1  ;;  %v7167_v0 = vadd.f32 %v619_v29, %v7136_v46  ;;  %v7186_v29 = vadd.f32 %v1086_v63, %v7172_v26  ;;  %v7206_v63 = vadd.f32 %v620_v13, %v7183_v37  ;;  %v1090_v13 = vmul.f32 0.35355338, %v7034_v48 }
 0x2e8   :  { %1112 = vmax.xlane.f32.xlu0 %v7108_v47  ;;  %v582_v17 = vpop.f32.mrb[11].mxu1 }
 0x2e9   :  { %v7121_v30 = vpop.f32.mrb[56].mxu0  ;;  %1120 = vmax.xlane.f32.xlu1 %v7118_v15  ;;  %9012 = vst [vmem:[#allocation33_spill] sm:$0xff] %v7186_v29  ;;  %v621_v60 = vmul.f32 0.35355338, %v582_v17  ;;  %v1087_v17 = vmul.f32 0.35355338, %v7024_v56 }
 0x2ea   :  { %v7127_v49 = vpop.f32.mrb[57].mxu0  ;;  %v622_v56 = vmul.f32 0.35355338, %v4517_v57  ;;  %v7239_v57 = vld [vmem:[%s8882_s1 + $0x68] sm:$0xff] }
 0x2eb   :  { %v4520_v40 = vpop.f32.mrb[12].mxu1  ;;  %v7195_v7 = vadd.f32 %v621_v60, %v7172_v26  ;;  %v7214_v60 = vadd.f32 %v1088_v10, %v7200_v12  ;;  %v7219_v22 = vadd.f32 %v1087_v17, %v7211_v36 }
 0x2ec   :  { %1118 = vmax.xlane.f32.xlu0 %v7125_v8  ;;  %v592_v61 = vpop.f32.mrb[13].mxu1  ;;  %v7234_v10 = vadd.f32 %v622_v56, %v7211_v36  ;;  %v1927_v56 = vmul.f32 0.35355338, %v7059_v28  ;;  %v1929_v28 = vmul.f32 0.35355338, %v7081_v14 }
 0x2ed   :  { %v7139_v59 = vpop.f32.mrb[58].mxu0  ;;  %655 = vmax.xlane.f32.xlu1 %v7131_v27  ;;  %9013 = vst [vmem:[#allocation34_spill] sm:$0xff] %v7195_v7  ;;  %v623_v6 = vmul.f32 0.35355338, %v592_v61  ;;  %v1089_v61 = vmul.f32 0.35355338, %v7028_v39 }
 0x2ee   :  { %v7146_v4 = vpop.f32.mrb[59].mxu0  ;;  %v624_v39 = vmul.f32 0.35355338, %v4520_v40  ;;  %v7265_v40 = vadd.f32 %v1927_v56, %v7039_v21  ;;  %v1928_v14 = vmul.f32 0.35355338, %v7048_v2 }
 0x2ef   :  { %v4523_v35 = vpop.f32.mrb[14].mxu1 }
 0x2f0   :  { %653 = vmax.xlane.f32.xlu0 %v7144_v19  ;;  %v602_v45 = vpop.f32.mrb[15].mxu1  ;;  %9018 = vst [vmem:[#allocation39_spill] sm:$0xff] %v7265_v40 }
 0x2f1   :  { %v7157_v18 = vpop.f32.mrb[60].mxu0  ;;  %1124 = vmax.xlane.f32.xlu1 %v7154_v34  ;;  %v625_v17 = vmul.f32 0.35355338, %v602_v45  ;;  %v7257_v45 = vadd.f32 %v624_v39, %v7239_v57  ;;  %v7274_v39 = vadd.f32 %v1929_v28, %v7057_v11  ;;  %v7294_v28 = vadd.f32 %v1928_v14, %v7012_v50 }
 0x2f2   :  { %v7163_v23 = vpop.f32.mrb[61].mxu0  ;;  %v1932_v14 = vmul.f32 0.35355338, %v7087_v51 }
 0x2f3   :  { %9020 = vst [vmem:[#allocation41_spill] sm:$0xff] %v7274_v39  ;;  %9023 = vst [vmem:[#allocation44_spill] sm:$0xff] %v7294_v28 }
 0x2f4   :  { %1122 = vmax.xlane.f32.xlu0 %v7161_v5 }
 0x2f5   :  { %659 = vmax.xlane.f32.xlu1 %v7167_v0 }
 0x2f8   :  { %657 = vmax.xlane.f32.xlu0 %v7178_v31 }
 0x2f9   :  { %1128 = vmax.xlane.f32.xlu1 %v7186_v29  ;;  %v7228_v29 = vld [vmem:[%s8882_s1 + $0x70] sm:$0xff] }
 0x2fa   :  { %v7242_v48 = vadd.f32 %v1090_v13, %v7228_v29  ;;  %v1091_v13 = vmul.f32 0.35355338, %v7032_v62  ;;  %v626_v62 = vmul.f32 0.35355338, %v4523_v35 }
 0x2fc   :  { %1126 = vmax.xlane.f32.xlu0 %v7191_v1  ;;  %9015 = vst [vmem:[#allocation36_spill] sm:$0xff] %v7242_v48 }
 0x2fd   :  { %663 = vmax.xlane.f32.xlu1 %v7195_v7  ;;  %v7223_v7 = vadd.f32 %v623_v6, %v7200_v12  ;;  %v7247_v6 = vadd.f32 %v1089_v61, %v7239_v57  ;;  %v7262_v61 = vld [vmem:[%s8882_s1 + $0x78] sm:$0xff] }
 0x2fe   :  { %v7285_v56 = vadd.f32 %v626_v62, %v7262_v61  ;;  %v1935_v62 = vmul.f32 0.35355338, %v7127_v49 }
 0x2ff   :  { %9014 = vst [vmem:[#allocation35_spill] sm:$0xff] %v7223_v7  ;;  %9016 = vst [vmem:[#allocation37_spill] sm:$0xff] %v7247_v6 }
 0x300   :  { %661 = vmax.xlane.f32.xlu0 %v7206_v63  ;;  %9021 = vst [vmem:[#allocation42_spill] sm:$0xff] %v7285_v56 }
 0x301   :  { %1132 = vmax.xlane.f32.xlu1 %v7214_v60 }
 0x304   :  { %1130 = vmax.xlane.f32.xlu0 %v7219_v22 }
 0x305   :  { %667 = vmax.xlane.f32.xlu1 %v7223_v7  ;;  %v7251_v7 = vadd.f32 %v625_v17, %v7228_v29  ;;  %v7271_v17 = vadd.f32 %v1091_v13, %v7262_v61  ;;  %v1933_v13 = vmul.f32 0.35355338, %v7110_v16 }
 0x307   :  { %9017 = vst [vmem:[#allocation38_spill] sm:$0xff] %v7251_v7  ;;  %9019 = vst [vmem:[#allocation40_spill] sm:$0xff] %v7271_v17  ;;  %v7298_v2 = vadd.f32 %v1933_v13, %v7101_v43  ;;  %v1940_v13 = vmul.f32 0.35355338, %v7157_v18 }
 0x308   :  { %665 = vmax.xlane.f32.xlu0 %v7234_v10 }
 0x309   :  { %1136 = vmax.xlane.f32.xlu1 %v7242_v48  ;;  %9024 = vst [vmem:[#allocation45_spill] sm:$0xff] %v7298_v2  ;;  %v7322_v51 = vadd.f32 %v1940_v13, %v7239_v57 }
 0x30b   :  { %9028 = vst [vmem:[#allocation49_spill] sm:$0xff] %v7322_v51 }
 0x30c   :  { %1134 = vmax.xlane.f32.xlu0 %v7247_v6 }
 0x30d   :  { %671 = vmax.xlane.f32.xlu1 %v7251_v7  ;;  %v1931_v7 = vmul.f32 0.35355338, %v7093_v32 }
 0x30f   :  { %v7288_v35 = vadd.f32 %v1931_v7, %v7072_v33 }
 0x310   :  { %669 = vmax.xlane.f32.xlu0 %v7257_v45 }
 0x311   :  { %1959 = vmax.xlane.f32.xlu1 %v7265_v40  ;;  %9022 = vst [vmem:[#allocation43_spill] sm:$0xff] %v7288_v35 }
 0x313   :  { %v7277_v48 = vpop.f32.mrb[62].mxu0 }
 0x314   :  { %v7279_v6 = vpop.f32.mrb[63].mxu0  ;;  %1138 = vmax.xlane.f32.xlu0 %v7271_v17 }
 0x315   :  { %1963 = vmax.xlane.f32.xlu1 %v7274_v39  ;;  %v1930_v39 = vmul.f32 0.35355338, %v7075_v41  ;;  %v7312_v41 = vadd.f32 %v1935_v62, %v7136_v46 }
 0x317   :  { %v7306_v16 = vadd.f32 %v1930_v39, %v7064_v55  ;;  %9026 = vst [vmem:[#allocation47_spill] sm:$0xff] %v7312_v41  ;;  %v1934_v39 = vmul.f32 0.35355338, %v7104_v38 }
 0x318   :  { %673 = vmax.xlane.f32.xlu0 %v7285_v56 }
 0x319   :  { %v4838_v32 = vpop.f32.mrb[64].mxu0  ;;  %1967 = vmax.xlane.f32.xlu1 %v7288_v35  ;;  %9025 = vst [vmem:[#allocation46_spill] sm:$0xff] %v7306_v16  ;;  %v7329_v18 = vadd.f32 %v1934_v39, %v7151_v53  ;;  %v1938_v39 = vmul.f32 0.35355338, %v7139_v59 }
 0x31a   :  { %v2474_v40 = vpop.f32.mrb[65].mxu0  ;;  %v2554_v56 = vmul.f32 0.35355338, %v4838_v32  ;;  %v7338_v32 = vpop.permute.xlu1 %5643 }
 0x31b   :  { %9030 = vst [vmem:[#allocation51_spill] sm:$0xff] %v7338_v32 }
 0x31c   :  { %1961 = vmax.xlane.f32.xlu0 %v7294_v28  ;;  %v7318_v28 = vadd.f32 %v1932_v14, %v7115_v42  ;;  %v7335_v38 = vadd.f32 %v2554_v56, %v7012_v50  ;;  %v1937_v56 = vmul.f32 0.35355338, %v7146_v4 }
 0x31d   :  { %v7302_v7 = vpop.f32.mrb[66].mxu0  ;;  %1971 = vmax.xlane.f32.xlu1 %v7298_v2 }
 0x31e   :  { %v7309_v35 = vpop.f32.mrb[67].mxu0  ;;  %9027 = vst [vmem:[#allocation48_spill] sm:$0xff] %v7318_v28  ;;  %9029 = vst [vmem:[#allocation50_spill] sm:$0xff] %v7335_v38 }
 0x320   :  { %1965 = vmax.xlane.f32.xlu0 %v7306_v16  ;;  %v2553_v16 = vmul.f32 0.35355338, %v2474_v40  ;;  %v7351_v40 = vadd.f32 %v1938_v39, %v7211_v36 }
 0x321   :  { %v4844_v49 = vpop.f32.mrb[68].mxu0  ;;  %1975 = vmax.xlane.f32.xlu1 %v7312_v41  ;;  %v1936_v41 = vmul.f32 0.35355338, %v7121_v30 }
 0x322   :  { %v2494_v2 = vpop.f32.mrb[69].mxu0  ;;  %v7346_v30 = vadd.f32 %v2553_v16, %v7039_v21  ;;  %v2558_v17 = vmul.f32 0.35355338, %v4844_v49  ;;  %v7362_v16 = vadd.f32 %v1937_v56, %v7172_v26  ;;  %v1939_v49 = vmul.f32 0.35355338, %v7163_v23 }
 0x324   :  { %1969 = vmax.xlane.f32.xlu0 %v7318_v28  ;;  %9031 = vst [vmem:[#allocation52_spill] sm:$0xff] %v7346_v30  ;;  %v7357_v59 = vadd.f32 %v2558_v17, %v7115_v42  ;;  %v7371_v17 = vadd.f32 %v1939_v49, %v7200_v12 }
 0x325   :  { %v7325_v62 = vpop.f32.mrb[70].mxu0  ;;  %1985 = vmax.xlane.f32.xlu1 %v7322_v51  ;;  %v7342_v51 = vadd.f32 %v1936_v41, %v7183_v37  ;;  %v7354_v41 = vpop.permute.xlu1 %5658 }
 0x326   :  { %v7332_v14 = vpop.f32.mrb[71].mxu0  ;;  %9032 = vst [vmem:[#allocation53_spill] sm:$0xff] %v7354_v41  ;;  %9033 = vst [vmem:[#allocation54_spill] sm:$0xff] %v7357_v59 }
 0x328   :  { %1973 = vmax.xlane.f32.xlu0 %v7329_v18 }
 0x329   :  { %v4850_v13 = vpop.f32.mrb[72].mxu0  ;;  %2587 = vmax.xlane.f32.xlu1 %v7335_v38  ;;  %v2557_v38 = vmul.f32 0.35355338, %v2494_v2  ;;  %v1942_v2 = vmul.f32 0.35355338, %v7277_v48 }
 0x32a   :  { %v2514_v28 = vpop.f32.mrb[73].mxu0  ;;  %v1111_v41 = vpop.xlane.xlu1 %1110 }
 0x32b   :  { %v7366_v4 = vadd.f32 %v2557_v38, %v7072_v33  ;;  %v1141_v56 = vsub.f32 %v7015_v9, %v1111_v41  ;;  %v2561_v33 = vmul.f32 0.35355338, %v2514_v28  ;;  %v7383_v38 = vadd.f32 %v1942_v2, %v7262_v61 }
 0x32c   :  { %1977 = vmax.xlane.f32.xlu0 %v7342_v51  ;;  %v2556_v28 = vmul.f32 0.35355338, %v7302_v7  ;;  %v2560_v7 = vmul.f32 0.35355338, %v7325_v62 }
 0x32d   :  { %v4853_v50 = vpop.f32.mrb[74].mxu0  ;;  %2585 = vmax.xlane.f32.xlu1 %v7346_v30  ;;  %v2562_v30 = vmul.f32 0.35355338, %v4850_v13  ;;  %v1941_v13 = vmul.f32 0.35355338, %v7279_v6  ;;  %v7387_v48 = vadd.f32 %v2561_v33, %v7136_v46 }
 0x32e   :  { %v2524_v32 = vpop.f32.mrb[75].mxu0  ;;  %v1158_v49 = vmul.f32 1.442695, %v1141_v56  ;;  %v7401_v46 = vadd.f32 %v2556_v28, %v7064_v55  ;;  %v2555_v6 = vmul.f32 0.35355338, %v7309_v35  ;;  %v7418_v55 = vadd.f32 %v2560_v7, %v7151_v53  ;;  %v7430_v56 = vpop.permute.xlu0 %5638 }
 0x32f   :  { %v7378_v23 = vadd.f32 %v2562_v30, %v7183_v37  ;;  %v7392_v37 = vadd.f32 %v1941_v13, %v7228_v29  ;;  %v2563_v2 = vmul.f32 0.35355338, %v2524_v32 }
 0x330   :  { %1981 = vmax.xlane.f32.xlu0 %v7351_v40  ;;  %5692 = vpow2.f32 %v1158_v49 }
 0x331   :  { %v4856_v21 = vpop.f32.mrb[76].mxu0  ;;  %2595 = vmax.xlane.f32.xlu1 %v7357_v59  ;;  %v7433_v53 = vadd.f32 %v2563_v2, %v7172_v26 }
 0x332   :  { %v2534_v39 = vpop.f32.mrb[77].mxu0  ;;  %v2566_v9 = vmul.f32 0.35355338, %v4856_v21 }
 0x333   :  { %v2565_v41 = vmul.f32 0.35355338, %v2534_v39 }
 0x334   :  { %1979 = vmax.xlane.f32.xlu0 %v7362_v16  ;;  %v7396_v30 = vadd.f32 %v2566_v9, %v7239_v57  ;;  %v7410_v57 = vadd.f32 %v2555_v6, %v7057_v11  ;;  %v2564_v11 = vmul.f32 0.35355338, %v4853_v50  ;;  %v7439_v50 = vpop.permute.xlu0 %5648 }
 0x335   :  { %v4859_v42 = vpop.f32.mrb[78].mxu0  ;;  %2593 = vmax.xlane.f32.xlu1 %v7366_v4  ;;  %v7405_v21 = vadd.f32 %v2565_v41, %v7200_v12  ;;  %v2559_v12 = vmul.f32 0.35355338, %v7332_v14 }
 0x336   :  { %v7375_v59 = vpop.f32.mrb[79].mxu0  ;;  %9034 = vst [vmem:[#allocation55_spill] sm:$0xff] %v7396_v30  ;;  %v7427_v62 = vadd.f32 %v2564_v11, %v7211_v36  ;;  %v2568_v14 = vmul.f32 0.35355338, %v4859_v42 }
 0x337   :  { %v7423_v35 = vadd.f32 %v2559_v12, %v7101_v43 }
 0x338   :  { %1983 = vmax.xlane.f32.xlu0 %v7371_v17  ;;  %9035 = vst [vmem:[#allocation56_spill] sm:$0xff] %v7427_v62  ;;  %v7437_v43 = vadd.f32 %v2568_v14, %v7262_v61  ;;  %v7442_v36 = vpop.permute.xlu0 %5653 }
 0x339   :  { %2603 = vmax.xlane.f32.xlu1 %v7378_v23  ;;  %9037 = vst [vmem:[#allocation58_spill] sm:$0xff] %v7442_v36 }
 0x33a   :  { %v7413_v39 = vpop.eup %5692  ;;  %9036 = vst [vmem:[#allocation57_spill] sm:$0xff] %v7437_v43 }
 0x33c   :  { %1989 = vmax.xlane.f32.xlu0 %v7383_v38 }
 0x33d   :  { %2601 = vmax.xlane.f32.xlu1 %v7387_v48 }
 0x340   :  { %1987 = vmax.xlane.f32.xlu0 %v7392_v37 }
 0x341   :  { %2611 = vmax.xlane.f32.xlu1 %v7396_v30 }
 0x344   :  { %2591 = vmax.xlane.f32.xlu0 %v7401_v46 }
 0x345   :  { %2609 = vmax.xlane.f32.xlu1 %v7405_v21 }
 0x348   :  { %2589 = vmax.xlane.f32.xlu0 %v7410_v57 }
 0x349   :  { %1190 = vadd.xlane.f32.xlu1 %v7413_v39 }
 0x34c   :  { %2599 = vmax.xlane.f32.xlu0 %v7418_v55 }
 0x350   :  { %2597 = vmax.xlane.f32.xlu0 %v7423_v35 }
 0x354   :  { %2607 = vmax.xlane.f32.xlu0 %v7427_v62  ;;  %v9072_v62 = vld [vmem:[#allocation38_spill] sm:$0xff] }
 0x358   :  { %2605 = vmax.xlane.f32.xlu0 %v7433_v53 }
 0x35c   :  { %2615 = vmax.xlane.f32.xlu0 %v7437_v43 }
 0x365   :  { %v646_v32 = vpop.xlane.xlu0 %645 }
 0x366   :  { %v676_v33 = vsub.f32 %v7042_v58, %v646_v32  ;;  %v644_v13 = vpop.xlane.xlu1 %643 }
 0x367   :  { %v675_v49 = vsub.f32 %v7045_v25, %v644_v13  ;;  %v2567_v25 = vmul.f32 0.35355338, %v7375_v59 }
 0x368   :  { %v693_v26 = vmul.f32 1.442695, %v676_v33 }
 0x369   :  { %v691_v9 = vmul.f32 1.442695, %v675_v49  ;;  %v1109_v42 = vpop.xlane.xlu0 %1108 }
 0x36a   :  { %5694 = vpow2.f32 %v693_v26  ;;  %v1140_v28 = vsub.f32 %v7052_v44, %v1109_v42  ;;  %v648_v61 = vpop.xlane.xlu1 %647 }
 0x36b   :  { %5696 = vpow2.f32 %v691_v9  ;;  %v677_v44 = vsub.f32 %v7067_v54, %v648_v61 }
 0x36c   :  { %v1156_v6 = vmul.f32 1.442695, %v1140_v28 }
 0x36d   :  { %v1115_v41 = vpop.xlane.xlu0 %1114  ;;  %v695_v9 = vmul.f32 1.442695, %v677_v44 }
 0x36e   :  { %v1143_v7 = vsub.f32 %v7079_v24, %v1115_v41  ;;  %v1117_v12 = vpop.xlane.xlu1 %1116  ;;  %5698 = vpow2.f32 %v1156_v6 }
 0x36f   :  { %v1144_v42 = vsub.f32 %v7084_v52, %v1117_v12 }
 0x370   :  { %v1162_v2 = vmul.f32 1.442695, %v1143_v7 }
 0x371   :  { %v650_v11 = vpop.xlane.xlu0 %649  ;;  %v1164_v6 = vmul.f32 1.442695, %v1144_v42 }
 0x372   :  { %v678_v58 = vsub.f32 %v7091_v20, %v650_v11  ;;  %v652_v14 = vpop.xlane.xlu1 %651  ;;  %5700 = vpow2.f32 %v1162_v2  ;;  %v7459_v20 = vadd.f32 %v2567_v25, %v7228_v29 }
 0x373   :  { %v679_v29 = vsub.f32 %v7096_v3, %v652_v14 }
 0x374   :  { %v7450_v32 = vpop.eup %5694  ;;  %v697_v13 = vmul.f32 1.442695, %v678_v58  ;;  %9040 = vst [vmem:[#allocation61_spill] sm:$0xff] %v7459_v20 }
 0x375   :  { %9038 = vst [vmem:[#allocation59_spill] sm:$0xff] %v7450_v32  ;;  %v7452_v33 = vpop.eup %5696  ;;  %v1113_v49 = vpop.xlane.xlu0 %1112  ;;  %725 = vadd.xlane.f32.xlu0 %v7450_v32 }
 0x376   :  { %9039 = vst [vmem:[#allocation60_spill] sm:$0xff] %v7452_v33  ;;  %v1142_v24 = vsub.f32 %v7108_v47, %v1113_v49  ;;  %v1121_v26 = vpop.xlane.xlu1 %1120  ;;  %723 = vadd.xlane.f32.xlu1 %v7452_v33  ;;  %5702 = vpow2.f32 %v697_v13  ;;  %v9069_v33 = vld [vmem:[#allocation46_spill] sm:$0xff] }
 0x377   :  { %v1146_v58 = vsub.f32 %v7118_v15, %v1121_v26 }
 0x378   :  { %v1160_v59 = vmul.f32 1.442695, %v1142_v24  ;;  %v7464_v41 = vpop.eup %5698 }
 0x379   :  { %v1119_v28 = vpop.xlane.xlu0 %1118  ;;  %2613 = vmax.xlane.f32.xlu0 %v7459_v20  ;;  %v1168_v49 = vmul.f32 1.442695, %v1146_v58 }
 0x37a   :  { %5704 = vpow2.f32 %v1160_v59  ;;  %v1145_v54 = vsub.f32 %v7125_v8, %v1119_v28  ;;  %v656_v61 = vpop.xlane.xlu1 %655  ;;  %v699_v8 = vmul.f32 1.442695, %v679_v29 }
 0x37b   :  { %5706 = vpow2.f32 %v695_v9  ;;  %v681_v24 = vsub.f32 %v7131_v27, %v656_v61 }
 0x37c   :  { %v1166_v47 = vmul.f32 1.442695, %v1145_v54  ;;  %v7469_v11 = vpop.eup %5700 }
 0x37d   :  { %v654_v7 = vpop.xlane.xlu0 %653  ;;  %1188 = vadd.xlane.f32.xlu0 %v7464_v41  ;;  %v703_v28 = vmul.f32 1.442695, %v681_v24 }
 0x37e   :  { %5708 = vpow2.f32 %v1166_v47  ;;  %v680_v52 = vsub.f32 %v7144_v19, %v654_v7  ;;  %v1125_v12 = vpop.xlane.xlu1 %1124 }
 0x37f   :  { %5710 = vpow2.f32 %v1164_v6  ;;  %v1148_v54 = vsub.f32 %v7154_v34, %v1125_v12 }
 0x380   :  { %v701_v2 = vmul.f32 1.442695, %v680_v52  ;;  %v7474_v44 = vpop.eup %5702 }
 0x381   :  { %v1123_v25 = vpop.xlane.xlu0 %1122  ;;  %1194 = vadd.xlane.f32.xlu0 %v7469_v11  ;;  %9041 = vst [vmem:[#allocation62_spill] sm:$0xff] %v7474_v44  ;;  %v1172_v29 = vmul.f32 1.442695, %v1148_v54 }
 0x382   :  { %5712 = vpow2.f32 %v701_v2  ;;  %v1147_v3 = vsub.f32 %v7161_v5, %v1123_v25  ;;  %v660_v14 = vpop.xlane.xlu1 %659  ;;  %v9045_v25 = vld [vmem:[#allocation33_spill] sm:$0xff] }
 0x383   :  { %5714 = vpow2.f32 %v699_v8  ;;  %v683_v7 = vsub.f32 %v7167_v0, %v660_v14 }
 0x384   :  { %v7476_v13 = vpop.eup %5704  ;;  %v1170_v19 = vmul.f32 1.442695, %v1147_v3 }
 0x385   :  { %v658_v59 = vpop.xlane.xlu0 %657  ;;  %729 = vadd.xlane.f32.xlu0 %v7474_v44  ;;  %1192 = vadd.xlane.f32.xlu1 %v7476_v13  ;;  %v7482_v26 = vpop.eup %5706  ;;  %v707_v58 = vmul.f32 1.442695, %v683_v7 }
 0x386   :  { %5716 = vpow2.f32 %v1170_v19  ;;  %v682_v15 = vsub.f32 %v7178_v31, %v658_v59  ;;  %9042 = vst [vmem:[#allocation63_spill] sm:$0xff] %v7482_v26  ;;  %v1129_v42 = vpop.xlane.xlu1 %1128 }
 0x387   :  { %5718 = vpow2.f32 %v1168_v49  ;;  %v1150_v3 = vsub.f32 %v9045_v25, %v1129_v42  ;;  %v9051_v25 = vld [vmem:[#allocation35_spill] sm:$0xff] }
 0x388   :  { %v7484_v5 = vpop.eup %5708  ;;  %v705_v9 = vmul.f32 1.442695, %v682_v15  ;;  %v9047_v15 = vld [vmem:[#allocation34_spill] sm:$0xff] }
 0x389   :  { %v1127_v47 = vpop.xlane.xlu0 %1126  ;;  %1198 = vadd.xlane.f32.xlu0 %v7484_v5  ;;  %727 = vadd.xlane.f32.xlu1 %v7482_v26  ;;  %v7490_v61 = vpop.eup %5710  ;;  %v1176_v59 = vmul.f32 1.442695, %v1150_v3  ;;  %v9068_v26 = vld [vmem:[#allocation42_spill] sm:$0xff] }
 0x38a   :  { %5720 = vpow2.f32 %v705_v9  ;;  %v1149_v27 = vsub.f32 %v7191_v1, %v1127_v47  ;;  %v664_v34 = vpop.xlane.xlu1 %663 }
 0x38b   :  { %5722 = vpow2.f32 %v703_v28  ;;  %v685_v9 = vsub.f32 %v9047_v15, %v664_v34 }
 0x38c   :  { %v7492_v31 = vpop.eup %5712  ;;  %v1174_v6 = vmul.f32 1.442695, %v1149_v27 }
 0x38d   :  { %9043 = vst [vmem:[#allocation64_spill] sm:$0xff] %v7492_v31  ;;  %v662_v52 = vpop.xlane.xlu0 %661  ;;  %733 = vadd.xlane.f32.xlu0 %v7492_v31  ;;  %1196 = vadd.xlane.f32.xlu1 %v7490_v61  ;;  %v7498_v2 = vpop.eup %5714  ;;  %v711_v27 = vmul.f32 1.442695, %v685_v9  ;;  %v9053_v9 = vld [vmem:[#allocation40_spill] sm:$0xff] }
 0x38e   :  { %5724 = vpow2.f32 %v1174_v6  ;;  %v684_v12 = vsub.f32 %v7206_v63, %v662_v52  ;;  %9044 = vst [vmem:[#allocation65_spill] sm:$0xff] %v7498_v2  ;;  %v1133_v49 = vpop.xlane.xlu1 %1132  ;;  %v9049_v52 = vld [vmem:[#allocation37_spill] sm:$0xff] }
 0x38f   :  { %5726 = vpow2.f32 %v1172_v29  ;;  %v1152_v6 = vsub.f32 %v7214_v60, %v1133_v49 }
 0x390   :  { %v7500_v1 = vpop.eup %5716  ;;  %v709_v8 = vmul.f32 1.442695, %v684_v12 }
 0x391   :  { %v1131_v19 = vpop.xlane.xlu0 %1130  ;;  %1202 = vadd.xlane.f32.xlu0 %v7500_v1  ;;  %731 = vadd.xlane.f32.xlu1 %v7498_v2  ;;  %v7506_v14 = vpop.eup %5718 }
 0x392   :  { %5728 = vpow2.f32 %v709_v8  ;;  %v1151_v0 = vsub.f32 %v7219_v22, %v1131_v19  ;;  %v668_v7 = vpop.xlane.xlu1 %667 }
 0x393   :  { %5730 = vpow2.f32 %v707_v58  ;;  %v1180_v58 = vmul.f32 1.442695, %v1152_v6  ;;  %v687_v3 = vsub.f32 %v9051_v25, %v668_v7 }
 0x394   :  { %v7508_v63 = vpop.eup %5720  ;;  %v1178_v24 = vmul.f32 1.442695, %v1151_v0 }
 0x395   :  { %9046 = vst [vmem:[#allocation33_spill] sm:$0xff] %v7508_v63  ;;  %v666_v28 = vpop.xlane.xlu0 %665  ;;  %737 = vadd.xlane.f32.xlu0 %v7508_v63  ;;  %1200 = vadd.xlane.f32.xlu1 %v7506_v14  ;;  %v7514_v54 = vpop.eup %5722  ;;  %v9066_v63 = vld [vmem:[#allocation10_spill] sm:$0xff] }
 0x396   :  { %5732 = vpow2.f32 %v1178_v24  ;;  %v686_v42 = vsub.f32 %v7234_v10, %v666_v28  ;;  %9048 = vst [vmem:[#allocation34_spill] sm:$0xff] %v7514_v54  ;;  %v1137_v6 = vpop.xlane.xlu1 %1136 }
 0x397   :  { %5734 = vpow2.f32 %v1176_v59  ;;  %v715_v59 = vmul.f32 1.442695, %v687_v3 }
 0x398   :  { %v7516_v22 = vpop.eup %5724  ;;  %v713_v47 = vmul.f32 1.442695, %v686_v42 }
 0x399   :  { %v1135_v29 = vpop.xlane.xlu0 %1134  ;;  %1206 = vadd.xlane.f32.xlu0 %v7516_v22  ;;  %735 = vadd.xlane.f32.xlu1 %v7514_v54  ;;  %v7522_v12 = vpop.eup %5726 }
 0x39a   :  { %5736 = vpow2.f32 %v713_v47  ;;  %v1153_v34 = vsub.f32 %v9049_v52, %v1135_v29 }
 0x39b   :  { %5738 = vpow2.f32 %v711_v27 }
 0x39c   :  { %v7524_v10 = vpop.eup %5728  ;;  %v1182_v8 = vmul.f32 1.442695, %v1153_v34 }
 0x39d   :  { %9050 = vst [vmem:[#allocation37_spill] sm:$0xff] %v7524_v10  ;;  %v670_v19 = vpop.xlane.xlu0 %669  ;;  %741 = vadd.xlane.f32.xlu0 %v7524_v10  ;;  %1204 = vadd.xlane.f32.xlu1 %v7522_v12  ;;  %v7530_v0 = vpop.eup %5730 }
 0x39e   :  { %5740 = vpow2.f32 %v1182_v8  ;;  %v688_v60 = vsub.f32 %v7257_v45, %v670_v19  ;;  %9052 = vst [vmem:[#allocation35_spill] sm:$0xff] %v7530_v0 }
 0x39f   :  { %5742 = vpow2.f32 %v1180_v58  ;;  %v672_v58 = vpop.xlane.xlu1 %671 }
 0x3a0   :  { %v7532_v49 = vpop.eup %5732  ;;  %v717_v24 = vmul.f32 1.442695, %v688_v60 }
 0x3a1   :  { %v1139_v15 = vpop.xlane.xlu0 %1138  ;;  %1210 = vadd.xlane.f32.xlu0 %v7532_v49  ;;  %739 = vadd.xlane.f32.xlu1 %v7530_v0  ;;  %v7537_v42 = vpop.eup %5734  ;;  %v9065_v0 = vld [vmem:[#allocation11_spill] sm:$0xff] }
 0x3a2   :  { %5744 = vpow2.f32 %v717_v24  ;;  %v1155_v28 = vsub.f32 %v9053_v9, %v1139_v15  ;;  %9054 = vst [vmem:[#allocation40_spill] sm:$0xff] %v7537_v42 }
 0x3a3   :  { %5746 = vpow2.f32 %v715_v59  ;;  %v1960_v24 = vpop.xlane.xlu1 %1959 }
 0x3a4   :  { %v7539_v47 = vpop.eup %5736  ;;  %v1186_v45 = vmul.f32 1.442695, %v1155_v28 }
 0x3a5   :  { %9055 = vst [vmem:[#allocation66_spill] sm:$0xff] %v7539_v47  ;;  %745 = vadd.xlane.f32.xlu0 %v7539_v47  ;;  %v674_v27 = vpop.xlane.xlu0 %673  ;;  %1208 = vadd.xlane.f32.xlu1 %v7537_v42  ;;  %v7543_v29 = vpop.eup %5738  ;;  %v9063_v47 = vld [vmem:[#allocation13_spill] sm:$0xff] }
 0x3a6   :  { %5748 = vpow2.f32 %v1186_v45  ;;  %9056 = vst [vmem:[#allocation67_spill] sm:$0xff] %v7543_v29  ;;  %v690_v32 = vsub.f32 %v9068_v26, %v674_v27 }
 0x3a7   :  { %v1964_v15 = vpop.xlane.xlu1 %1963 }
 0x3a8   :  { %v7545_v7 = vpop.eup %5740  ;;  %v721_v20 = vmul.f32 1.442695, %v690_v32 }
 0x3a9   :  { %9057 = vst [vmem:[#allocation68_spill] sm:$0xff] %v7545_v7  ;;  %1214 = vadd.xlane.f32.xlu0 %v7545_v7  ;;  %v1962_v52 = vpop.xlane.xlu0 %1961  ;;  %743 = vadd.xlane.f32.xlu1 %v7543_v29  ;;  %v7549_v34 = vpop.eup %5742 }
 0x3aa   :  { %9058 = vst [vmem:[#allocation69_spill] sm:$0xff] %v7549_v34  ;;  %5750 = vpow2.f32 %v721_v20 }
 0x3ab   :  { %v7561_v45 = vpop.xlane.xlu1 %1967 }
 0x3ac   :  { %v7551_v8 = vpop.eup %5744 }
 0x3ad   :  { %9059 = vst [vmem:[#allocation70_spill] sm:$0xff] %v7551_v8  ;;  %749 = vadd.xlane.f32.xlu0 %v7551_v8  ;;  %v1966_v25 = vpop.xlane.xlu0 %1965  ;;  %1212 = vadd.xlane.f32.xlu1 %v7549_v34  ;;  %v7555_v3 = vpop.eup %5746  ;;  %v9062_v8 = vld [vmem:[#allocation14_spill] sm:$0xff]  ;;  %v689_v34 = vsub.f32 %v9072_v62, %v672_v58  ;;  %v9074_v62 = vld [vmem:[#allocation39_spill] sm:$0xff] }
 0x3ae   :  { %9060 = vst [vmem:[#allocation71_spill] sm:$0xff] %v7555_v3  ;;  %v9064_v29 = vpack.i.bf16 %v9062_v8, %v9063_v47  ;;  %v1991_v20 = vsub.f32 %v9074_v62, %v1960_v24  ;;  %v9076_v24 = vld [vmem:[#allocation49_spill] sm:$0xff] }
 0x3af   :  { %v7569_v10 = vpop.xlane.xlu1 %1971  ;;  %v719_v27 = vmul.f32 1.442695, %v689_v34 }
 0x3b0   :  { %v7557_v19 = vpop.eup %5748 }
 0x3b1   :  { %9061 = vst [vmem:[#allocation72_spill] sm:$0xff] %v7557_v19  ;;  %1218 = vadd.xlane.f32.xlu0 %v7557_v19  ;;  %v1970_v60 = vpop.xlane.xlu0 %1969  ;;  %747 = vadd.xlane.f32.xlu1 %v7555_v3  ;;  %v9067_v3 = vpack.i.bf16 %v9065_v0, %v9066_v63  ;;  %v1994_v19 = vsub.f32 %v9069_v33, %v1966_v25  ;;  %v9071_v63 = vld [vmem:[#allocation48_spill] sm:$0xff] }
 0x3b2   :  { %v1996_v0 = vsub.f32 %v9071_v63, %v1970_v60 }
 0x3b3   :  { %v7577_v31 = vpop.xlane.xlu1 %1975  ;;  %v2013_v30 = vmul.f32 1.442695, %v1994_v19 }
 0x3b4   :  { %v2017_v42 = vmul.f32 1.442695, %v1996_v0 }
 0x3b5   :  { %v1974_v59 = vpop.xlane.xlu0 %1973  ;;  %5752 = vpow2.f32 %v2013_v30 }
 0x3b6   :  { %v1998_v26 = vsub.f32 %v7329_v18, %v1974_v59  ;;  %v7599_v59 = vpop.eup %5750 }
 0x3b7   :  { %v1986_v44 = vpop.xlane.xlu1 %1985 }
 0x3b8   :  { %v2021_v25 = vmul.f32 1.442695, %v1998_v26 }
 0x3b9   :  { %v1978_v9 = vpop.xlane.xlu0 %1977 }
 0x3ba   :  { %v2000_v19 = vsub.f32 %v7342_v51, %v1978_v9  ;;  %v2004_v9 = vsub.f32 %v9076_v24, %v1986_v44 }
 0x3bb   :  { %v2588_v43 = vpop.xlane.xlu1 %2587 }
 0x3bd   :  { %v1982_v28 = vpop.xlane.xlu0 %1981 }
 0x3be   :  { %v2002_v18 = vsub.f32 %v7351_v40, %v1982_v28 }
 0x3bf   :  { %v7591_v33 = vpop.xlane.xlu1 %2585  ;;  %v7601_v34 = vpop.eup %5752 }
 0x3c0   :  { %v2029_v63 = vmul.f32 1.442695, %v2002_v18 }
 0x3c1   :  { %v7563_v36 = vpop.xlane.xlu0 %1979 }
 0x3c2   :  { %5668 = vrot.lane.b32.xlu1 %v9064_v29, %s6084_s22  ;;  %v9070_v29 = vld [vmem:[#allocation36_spill] sm:$0xff] }
 0x3c3   :  { %v1154_v8 = vsub.f32 %v9070_v29, %v1137_v6  ;;  %v9073_v6 = vld [vmem:[#allocation44_spill] sm:$0xff]  ;;  %v2596_v30 = vpop.xlane.xlu1 %2595  ;;  %v2025_v29 = vmul.f32 1.442695, %v2000_v19 }
 0x3c4   :  { %v1992_v32 = vsub.f32 %v9073_v6, %v1962_v52  ;;  %v2007_v52 = vmul.f32 1.442695, %v1991_v20  ;;  %v9078_v6 = vld [vmem:[#allocation50_spill] sm:$0xff]  ;;  %v9079_v20 = vld [vmem:[#allocation45_spill] sm:$0xff] }
 0x3c5   :  { %v7575_v54 = vpop.xlane.xlu0 %1983  ;;  %v2618_v44 = vsub.f32 %v9078_v6, %v2588_v43 }
 0x3c6   :  { %v2009_v58 = vmul.f32 1.442695, %v1992_v32 }
 0x3c7   :  { %5663 = vrot.lane.b32.xlu0 %v9067_v3, %s6084_s22  ;;  %v1184_v3 = vmul.f32 1.442695, %v1154_v8  ;;  %v7611_v40 = vpop.xlane.xlu1 %2593  ;;  %v2635_v43 = vmul.f32 1.442695, %v2618_v44 }
 0x3c9   :  { %v7579_v2 = vpop.xlane.xlu0 %1989  ;;  %5754 = vpow2.f32 %v1184_v3 }
 0x3ca   :  { %5756 = vpow2.f32 %v2017_v42  ;;  %v9075_v42 = vld [vmem:[#allocation41_spill] sm:$0xff] }
 0x3cb   :  { %5758 = vpow2.f32 %v719_v27  ;;  %v1993_v8 = vsub.f32 %v9075_v42, %v1964_v15  ;;  %v9077_v15 = vld [vmem:[#allocation43_spill] sm:$0xff]  ;;  %v2033_v27 = vmul.f32 1.442695, %v2004_v9 }
 0x3cc   :  { %5760 = vpow2.f32 %v2021_v25  ;;  %v1995_v26 = vsub.f32 %v9077_v15, %v7561_v45  ;;  %v7628_v45 = vpop.xlane.xlu1 %2603 }
 0x3cd   :  { %v7583_v47 = vpop.xlane.xlu0 %1987  ;;  %5762 = vpow2.f32 %v2009_v58  ;;  %v2011_v3 = vmul.f32 1.442695, %v1993_v8  ;;  %v1997_v58 = vsub.f32 %v9079_v20, %v7569_v10  ;;  %v9081_v10 = vld [vmem:[#allocation47_spill] sm:$0xff] }
 0x3ce   :  { %5764 = vpow2.f32 %v2025_v29  ;;  %v2015_v62 = vmul.f32 1.442695, %v1995_v26  ;;  %v9080_v29 = vld [vmem:[#allocation54_spill] sm:$0xff]  ;;  %v1999_v9 = vsub.f32 %v9081_v10, %v7577_v31 }
 0x3cf   :  { %5766 = vpow2.f32 %v2007_v52  ;;  %v2622_v18 = vsub.f32 %v9080_v29, %v2596_v30  ;;  %v2019_v8 = vmul.f32 1.442695, %v1997_v58  ;;  %v2003_v58 = vsub.f32 %v7371_v17, %v7575_v54 }
 0x3d0   :  { %5768 = vpow2.f32 %v2029_v63  ;;  %v7645_v30 = vpop.xlane.xlu1 %2601  ;;  %v2023_v26 = vmul.f32 1.442695, %v1999_v9 }
 0x3d1   :  { %v7588_v7 = vpop.xlane.xlu0 %2591  ;;  %5770 = vpow2.f32 %v2011_v3  ;;  %v2643_v63 = vmul.f32 1.442695, %v2622_v18  ;;  %v2031_v29 = vmul.f32 1.442695, %v2003_v58  ;;  %v2006_v18 = vsub.f32 %v7383_v38, %v7579_v2 }
 0x3d2   :  { %5772 = vpow2.f32 %v2033_v27  ;;  %v2001_v27 = vsub.f32 %v7362_v16, %v7563_v36 }
 0x3d3   :  { %v7609_v0 = vpop.eup %5754  ;;  %5774 = vpow2.f32 %v2015_v62  ;;  %v2037_v9 = vmul.f32 1.442695, %v2006_v18 }
 0x3d4   :  { %v7613_v28 = vpop.eup %5756  ;;  %5776 = vpow2.f32 %v2635_v43  ;;  %v7659_v62 = vpop.xlane.xlu1 %2611  ;;  %v2027_v20 = vmul.f32 1.442695, %v2001_v27  ;;  %v9086_v27 = vld [vmem:[#allocation52_spill] sm:$0xff] }
 0x3d5   :  { %v7595_v60 = vpop.xlane.xlu0 %2589  ;;  %v7620_v32 = vpop.eup %5758  ;;  %5778 = vpow2.f32 %v2019_v8 }
 0x3d6   :  { %v7624_v19 = vpop.eup %5760  ;;  %5780 = vpow2.f32 %v2643_v63  ;;  %v2005_v63 = vsub.f32 %v7392_v37, %v7583_v47  ;;  %v2620_v37 = vsub.f32 %v7401_v46, %v7588_v7 }
 0x3d7   :  { %v7633_v52 = vpop.eup %5762  ;;  %5782 = vpow2.f32 %v2023_v26 }
 0x3d8   :  { %v7635_v42 = vpop.eup %5764  ;;  %5784 = vpow2.f32 %v2027_v20  ;;  %v7677_v10 = vpop.xlane.xlu1 %2609  ;;  %v2617_v20 = vsub.f32 %v9086_v27, %v7591_v33  ;;  %v2035_v58 = vmul.f32 1.442695, %v2005_v63  ;;  %v2639_v33 = vmul.f32 1.442695, %v2620_v37 }
 0x3d9   :  { %v7604_v51 = vpop.xlane.xlu0 %2599  ;;  %v7643_v3 = vpop.eup %5766  ;;  %5786 = vpow2.f32 %v2031_v29  ;;  %v2621_v27 = vsub.f32 %v7366_v4, %v7611_v40  ;;  %v7725_v40 = vld [vmem:[%s8883_s2 + $0x8] sm:$0xff] }
 0x3da   :  { %v7647_v15 = vpop.eup %5768  ;;  %5788 = vpow2.f32 %v2037_v9  ;;  %v2633_v18 = vmul.f32 1.442695, %v2617_v20  ;;  %v2619_v9 = vsub.f32 %v7410_v57, %v7595_v60  ;;  %v2624_v37 = vsub.f32 %v7418_v55, %v7604_v51  ;;  %v7736_v55 = vld [vmem:[%s8883_s2] sm:$0xff] }
 0x3db   :  { %9082 = vst [vmem:[#allocation14_spill] sm:$0xff] %v7647_v15  ;;  %v7653_v6 = vpop.eup %5770 }
 0x3dc   :  { %v7657_v44 = vpop.eup %5772  ;;  %v1191_v38 = vpop.xlane.xlu1 %1190  ;;  %v2637_v20 = vmul.f32 1.442695, %v2619_v9 }
 0x3dd   :  { %v7622_v25 = vpop.xlane.xlu0 %2597  ;;  %9083 = vst [vmem:[#allocation13_spill] sm:$0xff] %v7657_v44  ;;  %v7665_v43 = vpop.eup %5774  ;;  %5790 = vrcp.f32 %v1191_v38 }
 0x3de   :  { %v7667_v16 = vpop.eup %5776  ;;  %5792 = vpow2.f32 %v2035_v58 }
 0x3df   :  { %9084 = vst [vmem:[#allocation11_spill] sm:$0xff] %v7667_v16  ;;  %v7675_v8 = vpop.eup %5778 }
 0x3e0   :  { %v7679_v17 = vpop.eup %5780 }
 0x3e1   :  { %v7637_v24 = vpop.xlane.xlu0 %2607  ;;  %9085 = vst [vmem:[#allocation10_spill] sm:$0xff] %v7679_v17  ;;  %v7687_v26 = vpop.eup %5782 }
 0x3e5   :  { %v7655_v31 = vpop.xlane.xlu0 %2605 }
 0x3e6   :  { %2045 = vadd.xlane.f32.xlu0 %v7601_v34  ;;  %753 = vadd.xlane.f32.xlu1 %v7599_v59 }
 0x3e9   :  { %v7669_v36 = vpop.xlane.xlu0 %2615 }
 0x3ea   :  { %2049 = vadd.xlane.f32.xlu0 %v7613_v28  ;;  %1216 = vadd.xlane.f32.xlu1 %v7609_v0 }
 0x3ee   :  { %2053 = vadd.xlane.f32.xlu0 %v7624_v19  ;;  %751 = vadd.xlane.f32.xlu1 %v7620_v32 }
 0x3f2   :  { %2057 = vadd.xlane.f32.xlu0 %v7635_v42  ;;  %2041 = vadd.xlane.f32.xlu1 %v7633_v52 }
 0x3f6   :  { %2061 = vadd.xlane.f32.xlu0 %v7647_v15  ;;  %2039 = vadd.xlane.f32.xlu1 %v7643_v3 }
 0x3fa   :  { %2043 = vadd.xlane.f32.xlu1 %v7653_v6  ;;  %2065 = vadd.xlane.f32.xlu0 %v7657_v44 }
 0x3fe   :  { %2047 = vadd.xlane.f32.xlu1 %v7665_v43  ;;  %2667 = vadd.xlane.f32.xlu0 %v7667_v16  ;;  %v7694_v16 = vpop.eup %5784 }
 0x3ff   :  { %v7699_v47 = vpop.eup %5786 }
 0x400   :  { %9087 = vst [vmem:[#allocation42_spill] sm:$0xff] %v7699_v47  ;;  %v7706_v63 = vpop.eup %5788 }
 0x401   :  { %9088 = vst [vmem:[#allocation46_spill] sm:$0xff] %v7706_v63  ;;  %v5791_v7 = vpop.eup %5790 }
 0x402   :  { %v7681_v54 = vpop.xlane.xlu0 %725  ;;  %2051 = vadd.xlane.f32.xlu1 %v7675_v8  ;;  %2675 = vadd.xlane.f32.xlu0 %v7679_v17  ;;  %v7713_v58 = vpop.eup %5792  ;;  %v1237_v57 = vmul.f32 %v5791_v7, %v7413_v39  ;;  %v9092_v7 = vld [vmem:[#allocation16_spill] sm:$0xff] }
 0x403   :  { %v7701_v17 = vpop.xlane.xlu1 %723  ;;  %9089 = vst [vmem:[#allocation36_spill] sm:$0xff] %v7713_v58 }
 0x406   :  { %v7689_v2 = vpop.xlane.xlu0 %2613  ;;  %2055 = vadd.xlane.f32.xlu1 %v7687_v26 }
 0x40a   :  { %v1189_v29 = vpop.xlane.xlu0 %1188  ;;  %2059 = vadd.xlane.f32.xlu1 %v7694_v16 }
 0x40b   :  { %5794 = vrcp.f32 %v1189_v29 }
 0x40c   :  { %5796 = vpow2.f32 %v2633_v18  ;;  %v2641_v18 = vmul.f32 1.442695, %v2621_v27 }
 0x40e   :  { %v1195_v44 = vpop.xlane.xlu0 %1194  ;;  %2063 = vadd.xlane.f32.xlu1 %v7699_v47  ;;  %v9097_v47 = vld [vmem:[#allocation19_spill] sm:$0xff] }
 0x40f   :  { %5798 = vrcp.f32 %v1195_v44 }
 0x410   :  { %5800 = vpow2.f32 %v2639_v33  ;;  %v9090_v33 = vld [vmem:[#allocation28_spill] sm:$0xff] }
 0x411   :  { %v5611_v9 = vunpack.i.h.bf16 %v9090_v33  ;;  %v5610_v39 = vunpack.i.l.bf16 %v9090_v33 }
 0x412   :  { %v7708_v38 = vpop.xlane.xlu0 %729  ;;  %2069 = vadd.xlane.f32.xlu1 %v7706_v63  ;;  %v1193_v46 = vpop.xlane.xlu1 %1192 }
 0x413   :  { %5802 = vrcp.f32 %v1193_v46  ;;  %v9091_v46 = vld [vmem:[#allocation17_spill] sm:$0xff]  ;;  %v5128_v15 = vpack.c.bf16 %v5611_v9, %v5610_v39  ;;  %v2626_v9 = vsub.f32 %v7378_v23, %v7628_v45 }
 0x414   :  { %5804 = vpow2.f32 %v2637_v20  ;;  %v9093_v63 = vpack.i.bf16 %v9091_v46, %v9092_v7  ;;  %v2623_v46 = vsub.f32 %v7423_v35, %v7622_v25  ;;  %v9095_v7 = vld [vmem:[#allocation30_spill] sm:$0xff] }
 0x415   :  { %v5795_v29 = vpop.eup %5794 }
 0x416   :  { %v1199_v60 = vpop.xlane.xlu0 %1198  ;;  %2067 = vadd.xlane.f32.xlu1 %v7713_v58  ;;  %v7717_v44 = vpop.xlane.xlu1 %727  ;;  %v1236_v4 = vmul.f32 %v5795_v29, %v7464_v41  ;;  %v1253_v29 = vmul.f32 %v1237_v57, %v7725_v40  ;;  %v5621_v58 = vunpack.i.h.bf16 %v9095_v7  ;;  %v2645_v39 = vmul.f32 1.442695, %v2623_v46 }
 0x417   :  { %v7738_v41 = vpop.eup %5796  ;;  %5806 = vrcp.f32 %v1199_v60  ;;  %v5620_v60 = vunpack.i.l.bf16 %v9095_v7  ;;  %v2625_v46 = vsub.f32 %v7387_v48, %v7645_v30  ;;  %v7795_v30 = vld [vmem:[%s8883_s2 + $0x20] sm:$0xff] }
 0x418   :  { %5673 = vrot.lane.b32.xlu0 %v9093_v63, %s6084_s22  ;;  %9094 = vst [vmem:[#allocation48_spill] sm:$0xff] %v7738_v41  ;;  %v1252_v51 = vmul.f32 %v1236_v4, %v7736_v55  ;;  %5808 = vpow2.f32 %v2641_v18  ;;  %v2647_v63 = vmul.f32 1.442695, %v2624_v37  ;;  %v9096_v4 = vld [vmem:[#allocation20_spill] sm:$0xff]  ;;  %v9100_v18 = vld [vmem:[#allocation31_spill] sm:$0xff] }
 0x419   :  { %v5799_v33 = vpop.eup %5798 }
 0x41a   :  { %v7741_v27 = vpop.xlane.xlu0 %733  ;;  %2665 = vadd.xlane.f32.xlu1 %v7738_v41  ;;  %v1197_v20 = vpop.xlane.xlu1 %1196  ;;  %4612 = vmatprep.mubr.f32.mxu1 %v1252_v51  ;;  %v9098_v41 = vpack.i.bf16 %v9096_v4, %v9097_v47  ;;  %v7762_v51 = vld [vmem:[%s8883_s2 + $0x10] sm:$0xff]  ;;  %v1239_v47 = vmul.f32 %v5799_v33, %v7469_v11 }
 0x41b   :  { %5810 = vrcp.f32 %v1197_v20  ;;  %4613 = vmatmul.mubr.f32.vlgmr.msra.gmra.mrb[16].mxu1 %v1253_v29  ;;  %v7753_v57 = vpop.eup %5800  ;;  %v7771_v20 = vld [vmem:[%s8883_s2 + $0x18] sm:$0xff]  ;;  %v9101_v29 = vld [vmem:[#allocation29_spill] sm:$0xff] }
 0x41c   :  { %5678 = vrot.lane.b32.xlu0 %v9098_v41, %s6084_s22  ;;  %9099 = vst [vmem:[#allocation38_spill] sm:$0xff] %v7753_v57  ;;  %5127 = vmatpush3.bf16.msra.mxu1 %v9100_v18  ;;  %5812 = vpow2.f32 %v2647_v63  ;;  %v5626_v7 = vunpack.i.h.bf16 %v9101_v29  ;;  %v5625_v4 = vunpack.i.l.bf16 %v9101_v29  ;;  %v5132_v18 = vpack.c.bf16 %v5621_v58, %v5620_v60  ;;  %v9102_v58 = vld [vmem:[#allocation32_spill] sm:$0xff] }
 0x41d   :  { %v5803_v37 = vpop.eup %5802  ;;  %5129 = vmatprep.subr.bf16.mxu1 %v5128_v15  ;;  %v1255_v45 = vmul.f32 %v1239_v47, %v7771_v20  ;;  %v2651_v63 = vmul.f32 1.442695, %v2626_v9  ;;  %v5631_v60 = vunpack.i.h.bf16 %v9102_v58  ;;  %v5641_v47 = vunpack.i.h.bf16 %v7430_v56 }
 0x41e   :  { %v1203_v35 = vpop.xlane.xlu0 %1202  ;;  %2671 = vadd.xlane.f32.xlu1 %v7753_v57  ;;  %v7757_v25 = vpop.xlane.xlu1 %731  ;;  %v1238_v41 = vmul.f32 %v5803_v37, %v7476_v13  ;;  %v5136_v37 = vpack.c.bf16 %v5626_v7, %v5625_v4  ;;  %v5640_v29 = vunpack.i.l.bf16 %v7430_v56  ;;  %v2649_v7 = vmul.f32 1.442695, %v2625_v46  ;;  %v9103_v46 = vld [vmem:[#allocation51_spill] sm:$0xff] }
 0x41f   :  { %v7775_v57 = vpop.eup %5804  ;;  %5814 = vrcp.f32 %v1203_v35 }
 0x420   :  { %5131 = vmatpush3.bf16.msra.mxu1 %v5128_v15  ;;  %v1254_v23 = vmul.f32 %v1238_v41, %v7762_v51  ;;  %5816 = vpow2.f32 %v2645_v39  ;;  %v5630_v15 = vunpack.i.l.bf16 %v9102_v58  ;;  %v5646_v58 = vunpack.i.h.bf16 %v9103_v46 }
 0x421   :  { %5133 = vmatprep.subr.bf16.mxu1 %v5132_v18  ;;  %v5807_v33 = vpop.eup %5806 }
 0x422   :  { %v7778_v11 = vpop.xlane.xlu0 %737  ;;  %2669 = vadd.xlane.f32.xlu1 %v7775_v57  ;;  %v1201_v13 = vpop.xlane.xlu1 %1200  ;;  %4615 = vmatprep.mubr.f32.mxu1 %v1254_v23  ;;  %v1241_v39 = vmul.f32 %v5807_v33, %v7484_v5  ;;  %v2627_v23 = vsub.f32 %v7433_v53, %v7655_v31  ;;  %v2629_v53 = vsub.f32 %v7405_v21, %v7677_v10  ;;  %v7826_v21 = vld [vmem:[%s8883_s2 + $0x30] sm:$0xff] }
 0x423   :  { %5818 = vrcp.f32 %v1201_v13  ;;  %4616 = vmatmul.mubr.f32.gmra.mrb[18].mxu1 %v1255_v45  ;;  %v7786_v35 = vpop.eup %5808  ;;  %v5140_v13 = vpack.c.bf16 %v5631_v60, %v5630_v15  ;;  %v5144_v31 = vpack.c.bf16 %v5641_v47, %v5640_v29  ;;  %v5645_v60 = vunpack.i.l.bf16 %v9103_v46 }
 0x424   :  { %5135 = vmatpush3.bf16.msra.mxu1 %v5132_v18  ;;  %5820 = vpow2.f32 %v2651_v63  ;;  %v7803_v18 = vld [vmem:[%s8883_s2 + $0x28] sm:$0xff]  ;;  %v2653_v15 = vmul.f32 1.442695, %v2627_v23  ;;  %v2657_v47 = vmul.f32 1.442695, %v2629_v53  ;;  %v5650_v23 = vunpack.i.l.bf16 %v7439_v50 }
 0x425   :  { %v5811_v41 = vpop.eup %5810  ;;  %5137 = vmatprep.subr.bf16.mxu1 %v5136_v37  ;;  %v1257_v33 = vmul.f32 %v1241_v39, %v7803_v18 }
 0x426   :  { %v1207_v9 = vpop.xlane.xlu0 %1206  ;;  %2673 = vadd.xlane.f32.xlu1 %v7786_v35  ;;  %v7790_v48 = vpop.xlane.xlu1 %735  ;;  %v1240_v4 = vmul.f32 %v5811_v41, %v7490_v61 }
 0x427   :  { %v7807_v45 = vpop.eup %5812  ;;  %5822 = vrcp.f32 %v1207_v9 }
 0x428   :  { %5139 = vmatpush3.bf16.msra.mxu1 %v5136_v37  ;;  %v1256_v5 = vmul.f32 %v1240_v4, %v7795_v30  ;;  %5824 = vpow2.f32 %v2649_v7  ;;  %v7833_v7 = vld [vmem:[%s8883_s2 + $0x38] sm:$0xff]  ;;  %v5651_v4 = vunpack.i.h.bf16 %v7439_v50 }
 0x429   :  { %5141 = vmatprep.subr.bf16.mxu1 %v5140_v13  ;;  %v5815_v63 = vpop.eup %5814 }
 0x42a   :  { %v7810_v56 = vpop.xlane.xlu0 %741  ;;  %2679 = vadd.xlane.f32.xlu1 %v7807_v45  ;;  %v1205_v61 = vpop.xlane.xlu1 %1204  ;;  %4618 = vmatprep.mubr.f32.mxu1 %v1256_v5  ;;  %v1243_v10 = vmul.f32 %v5815_v63, %v7500_v1  ;;  %v5152_v50 = vpack.c.bf16 %v5651_v4, %v5650_v23 }
 0x42b   :  { %5826 = vrcp.f32 %v1205_v61  ;;  %4619 = vmatmul.mubr.f32.gmra.mrb[20].mxu1 %v1257_v33  ;;  %v7818_v37 = vpop.eup %5816 }
 0x42c   :  { %5143 = vmatpush3.bf16.msra.mxu1 %v5140_v13  ;;  %5828 = vpow2.f32 %v2653_v15  ;;  %v5148_v13 = vpack.c.bf16 %v5646_v58, %v5645_v60  ;;  %v1259_v33 = vmul.f32 %v1243_v10, %v7833_v7  ;;  %v7852_v60 = vld [vmem:[%s8883_s2 + $0x40] sm:$0xff] }
 0x42d   :  { %v5819_v41 = vpop.eup %5818  ;;  %5145 = vmatprep.subr.bf16.mxu1 %v5144_v31 }
 0x42e   :  { %v1211_v9 = vpop.xlane.xlu0 %1210  ;;  %2677 = vadd.xlane.f32.xlu1 %v7818_v37  ;;  %v7821_v39 = vpop.xlane.xlu1 %739  ;;  %v1242_v29 = vmul.f32 %v5819_v41, %v7506_v14 }
 0x42f   :  { %v7837_v5 = vpop.eup %5820  ;;  %5830 = vrcp.f32 %v1211_v9  ;;  %v7859_v9 = vld [vmem:[%s8883_s2 + $0x48] sm:$0xff] }
 0x430   :  { %9104 = vst [vmem:[#allocation44_spill] sm:$0xff] %v7837_v5  ;;  %5147 = vmatpush3.bf16.msra.mxu1 %v5144_v31  ;;  %v1258_v1 = vmul.f32 %v1242_v29, %v7826_v21  ;;  %5832 = vpow2.f32 %v2657_v47  ;;  %v9107_v29 = vld [vmem:[#allocation8_spill] sm:$0xff] }
 0x431   :  { %5149 = vmatprep.subr.bf16.mxu1 %v5148_v13  ;;  %v5823_v63 = vpop.eup %5822 }
 0x432   :  { %v7840_v61 = vpop.xlane.xlu0 %745  ;;  %2683 = vadd.xlane.f32.xlu1 %v7837_v5  ;;  %v1209_v14 = vpop.xlane.xlu1 %1208  ;;  %4621 = vmatprep.mubr.f32.mxu1 %v1258_v1  ;;  %v1245_v15 = vmul.f32 %v5823_v63, %v7516_v22  ;;  %v7872_v1 = vld [vmem:[%s8883_s2 + $0x50] sm:$0xff] }
 0x433   :  { %5834 = vrcp.f32 %v1209_v14  ;;  %4622 = vmatmul.mubr.f32.gmra.mrb[22].mxu1 %v1259_v33  ;;  %v7844_v53 = vpop.eup %5824  ;;  %v9109_v33 = vld [vmem:[#allocation40_spill] sm:$0xff] }
 0x434   :  { %9105 = vst [vmem:[#allocation39_spill] sm:$0xff] %v7844_v53  ;;  %5151 = vmatpush3.bf16.msra.mxu1 %v5148_v13  ;;  %v1261_v23 = vmul.f32 %v1245_v15, %v7859_v9 }
 0x435   :  { %v5827_v31 = vpop.eup %5826  ;;  %5153 = vmatprep.subr.bf16.mxu1 %v5152_v50 }
 0x436   :  { %v1215_v46 = vpop.xlane.xlu0 %1214  ;;  %2681 = vadd.xlane.f32.xlu1 %v7844_v53  ;;  %v7847_v58 = vpop.xlane.xlu1 %743  ;;  %v1244_v41 = vmul.f32 %v5827_v31, %v7522_v12 }
 0x437   :  { %5836 = vrcp.f32 %v1215_v46  ;;  %v7862_v47 = vpop.eup %5828 }
 0x438   :  { %5155 = vmatpush3.bf16.msra.mxu1 %v5152_v50  ;;  %v1260_v10 = vmul.f32 %v1244_v41, %v7852_v60  ;;  %9106 = vst [vmem:[#allocation41_spill] sm:$0xff] %v7862_v47  ;;  %v7880_v50 = vld [vmem:[%s8883_s2 + $0x58] sm:$0xff] }
 0x439   :  { %5205 = vmatprep.subr.bf16.mxu1 %v9107_v29  ;;  %v5831_v13 = vpop.eup %5830 }
 0x43a   :  { %v1213_v4 = vpop.xlane.xlu1 %1212  ;;  %4624 = vmatprep.mubr.f32.mxu1 %v1260_v10  ;;  %v7867_v22 = vpop.eup %5832  ;;  %v1247_v14 = vmul.f32 %v5831_v13, %v7532_v49  ;;  %v7887_v49 = vld [vmem:[%s8883_s2 + $0x60] sm:$0xff]  ;;  %v9112_v13 = vld [vmem:[#allocation22_spill] sm:$0xff] }
 0x43b   :  { %2685 = vadd.xlane.f32.xlu0 %v7862_v47  ;;  %5838 = vrcp.f32 %v1213_v4  ;;  %4625 = vmatmul.mubr.f32.gmra.mrb[24].mxu1 %v1261_v23  ;;  %9108 = vst [vmem:[#allocation49_spill] sm:$0xff] %v7867_v22  ;;  %v9110_v10 = vld [vmem:[#allocation68_spill] sm:$0xff]  ;;  %v9111_v23 = vld [vmem:[#allocation23_spill] sm:$0xff] }
 0x43c   :  { %v1263_v46 = vmul.f32 %v1247_v14, %v7880_v50  ;;  %v7898_v14 = vld [vmem:[%s8883_s2 + $0x68] sm:$0xff] }
 0x43d   :  { %v5835_v12 = vpop.eup %5834 }
 0x43e   :  { %v1246_v63 = vmul.f32 %v5835_v12, %v9109_v33  ;;  %v9113_v12 = vpack.i.bf16 %v9111_v23, %v9112_v13  ;;  %v9114_v33 = vld [vmem:[#allocation69_spill] sm:$0xff]  ;;  %v9118_v23 = vld [vmem:[#allocation56_spill] sm:$0xff] }
 0x43f   :  { %2689 = vadd.xlane.f32.xlu0 %v7867_v22  ;;  %v2628_v13 = vsub.f32 %v9118_v23, %v7637_v24 }
 0x440   :  { %v1262_v31 = vmul.f32 %v1246_v63, %v7872_v1 }
 0x441   :  { %v5837_v15 = vpop.eup %5836 }
 0x442   :  { %4627 = vmatprep.mubr.f32.mxu1 %v1262_v31  ;;  %v1249_v4 = vmul.f32 %v5837_v15, %v9110_v10  ;;  %v9115_v15 = vld [vmem:[#allocation26_spill] sm:$0xff]  ;;  %v9116_v10 = vld [vmem:[#allocation25_spill] sm:$0xff] }
 0x443   :  { %4628 = vmatmul.mubr.f32.gmra.mrb[26].mxu1 %v1263_v46  ;;  %v9117_v22 = vpack.i.bf16 %v9115_v15, %v9116_v10 }
 0x444   :  { %v1265_v46 = vmul.f32 %v1249_v4, %v7898_v14  ;;  %v9121_v4 = vld [vmem:[#allocation61_spill] sm:$0xff] }
 0x445   :  { %v5839_v41 = vpop.eup %5838 }
 0x446   :  { %v1248_v63 = vmul.f32 %v5839_v41, %v9114_v33  ;;  %v9119_v41 = vld [vmem:[#allocation55_spill] sm:$0xff]  ;;  %v2655_v33 = vmul.f32 1.442695, %v2628_v13 }
 0x447   :  { %5683 = vrot.lane.b32.xlu1 %v9113_v12, %s6084_s22  ;;  %v2630_v12 = vsub.f32 %v9119_v41, %v7659_v62  ;;  %v7919_v62 = vpop.xlane.xlu0 %749 }
 0x448   :  { %v1264_v31 = vmul.f32 %v1248_v63, %v7887_v49  ;;  %5840 = vpow2.f32 %v2655_v33  ;;  %v9120_v63 = vld [vmem:[#allocation57_spill] sm:$0xff] }
 0x449   :  { %v2659_v47 = vmul.f32 1.442695, %v2630_v12  ;;  %v2632_v5 = vsub.f32 %v9120_v63, %v7669_v36 }
 0x44a   :  { %4630 = vmatprep.mubr.f32.mxu1 %v1264_v31  ;;  %v2631_v31 = vsub.f32 %v9121_v4, %v7689_v2 }
 0x44b   :  { %4631 = vmatmul.mubr.f32.gmra.mrb[28].mxu1 %v1265_v46  ;;  %5842 = vpow2.f32 %v2659_v47  ;;  %v2663_v46 = vmul.f32 1.442695, %v2632_v5  ;;  %v1219_v5 = vpop.xlane.xlu0 %1218 }
 0x44c   :  { %v2661_v53 = vmul.f32 1.442695, %v2631_v31 }
 0x44d   :  { %5844 = vpow2.f32 %v2663_v46  ;;  %v7957_v46 = vld [vmem:[%s8883_s2 + $0x78] sm:$0xff] }
 0x44e   :  { %5846 = vpow2.f32 %v2661_v53 }
 0x44f   :  { %5848 = vrcp.f32 %v1219_v5  ;;  %v7937_v13 = vpop.permute.xlu0 %5663 }
 0x450   :  { %5850 = vrcp.f32 %v7701_v17 }
 0x452   :  { %v7916_v24 = vpop.eup %5840 }
 0x453   :  { %9122 = vst [vmem:[#allocation43_spill] sm:$0xff] %v7916_v24 }
 0x455   :  { %5688 = vrot.lane.b32.xlu0 %v9117_v22, %s6084_s22  ;;  %v7914_v22 = vpop.xlane.xlu1 %747  ;;  %v7921_v15 = vpop.eup %5842 }
 0x456   :  { %9123 = vst [vmem:[#allocation50_spill] sm:$0xff] %v7921_v15 }
 0x457   :  { %v7926_v36 = vpop.eup %5844 }
 0x458   :  { %9124 = vst [vmem:[#allocation45_spill] sm:$0xff] %v7926_v36  ;;  %v7928_v2 = vpop.eup %5846 }
 0x459   :  { %v7923_v10 = vpop.permute.xlu1 %5668  ;;  %9125 = vst [vmem:[#allocation54_spill] sm:$0xff] %v7928_v2  ;;  %v5849_v12 = vpop.eup %5848 }
 0x45a   :  { %v5851_v63 = vpop.eup %5850 }
 0x46b   :  { %2687 = vadd.xlane.f32.xlu1 %v7916_v24 }
 0x46f   :  { %2691 = vadd.xlane.f32.xlu1 %v7921_v15 }
 0x473   :  { %2695 = vadd.xlane.f32.xlu1 %v7926_v36  ;;  %v7931_v53 = vpop.xlane.xlu1 %753  ;;  %v7943_v33 = vpop.xlane.xlu0 %2045  ;;  %v9128_v36 = vld [vmem:[#allocation59_spill] sm:$0xff] }
 0x474   :  { %2693 = vadd.xlane.f32.xlu0 %v7928_v2 }
 0x477   :  { %v1217_v47 = vpop.xlane.xlu1 %1216 }
 0x478   :  { %5852 = vrcp.f32 %v1217_v47 }
 0x479   :  { %5854 = vrcp.f32 %v7681_v54 }
 0x47a   :  { %5856 = vrcp.f32 %v7717_v44  ;;  %v7950_v44 = vld [vmem:[%s8883_s2 + $0x70] sm:$0xff] }
 0x47b   :  { %v752_v23 = vpop.xlane.xlu1 %751  ;;  %5858 = vrcp.f32 %v7708_v38  ;;  %v9126_v38 = vld [vmem:[#allocation72_spill] sm:$0xff] }
 0x47c   :  { %5860 = vrcp.f32 %v7757_v25  ;;  %v1251_v4 = vmul.f32 %v5849_v12, %v9126_v38 }
 0x47d   :  { %5862 = vrcp.f32 %v7741_v27  ;;  %v9127_v27 = vld [vmem:[#allocation60_spill] sm:$0xff] }
 0x47e   :  { %5864 = vrcp.f32 %v7790_v48  ;;  %v771_v5 = vmul.f32 %v5851_v63, %v9127_v27  ;;  %v7961_v48 = vpop.xlane.xlu0 %2049  ;;  %v9129_v63 = vld [vmem:[#allocation63_spill] sm:$0xff] }
 0x47f   :  { %v7941_v41 = vpop.xlane.xlu1 %2041  ;;  %5866 = vrcp.f32 %v7778_v11 }
 0x480   :  { %5868 = vrcp.f32 %v7821_v39  ;;  %v787_v38 = vmul.f32 %v771_v5, %v7736_v55  ;;  %v9131_v5 = vld [vmem:[#allocation65_spill] sm:$0xff] }
 0x481   :  { %5870 = vrcp.f32 %v7810_v56  ;;  %v9132_v56 = vld [vmem:[#allocation9_spill] sm:$0xff] }
 0x482   :  { %v5853_v17 = vpop.eup %5852  ;;  %5872 = vrcp.f32 %v7847_v58 }
 0x483   :  { %v2040_v54 = vpop.xlane.xlu1 %2039  ;;  %v5855_v25 = vpop.eup %5854  ;;  %v1250_v31 = vmul.f32 %v5853_v17, %v7609_v0  ;;  %v1267_v0 = vmul.f32 %v1251_v4, %v7957_v46  ;;  %5874 = vrcp.f32 %v7840_v61 }
 0x484   :  { %v5857_v47 = vpop.eup %5856  ;;  %v772_v15 = vmul.f32 %v5855_v25, %v9128_v36  ;;  %v9130_v36 = vld [vmem:[#allocation62_spill] sm:$0xff]  ;;  %5876 = vrcp.f32 %v7914_v22 }
 0x485   :  { %v1266_v2 = vmul.f32 %v1250_v31, %v7950_v44  ;;  %v5859_v17 = vpop.eup %5858  ;;  %v773_v27 = vmul.f32 %v5857_v47, %v9129_v63  ;;  %v7977_v31 = vpop.xlane.xlu0 %2053  ;;  %5878 = vrcp.f32 %v7919_v62 }
 0x486   :  { %v5861_v24 = vpop.eup %5860  ;;  %v788_v39 = vmul.f32 %v772_v15, %v7725_v40  ;;  %v774_v25 = vmul.f32 %v5859_v17, %v9130_v36  ;;  %5880 = vrcp.f32 %v752_v23  ;;  %v9138_v23 = vld [vmem:[#allocation15_spill] sm:$0xff] }
 0x487   :  { %v7966_v12 = vpop.xlane.xlu1 %2043  ;;  %4633 = vmatprep.mubr.f32.mxu1 %v1266_v2  ;;  %v5863_v4 = vpop.eup %5862  ;;  %v789_v2 = vmul.f32 %v773_v27, %v7762_v51  ;;  %v775_v47 = vmul.f32 %v5861_v24, %v9131_v5  ;;  %v9134_v27 = vld [vmem:[#allocation34_spill] sm:$0xff]  ;;  %5882 = vrcp.f32 %v7931_v53 }
 0x488   :  { %4634 = vmatmul.mubr.f32.gmra.mrb[30].mxu1 %v1267_v0  ;;  %v5865_v63 = vpop.eup %5864  ;;  %v790_v15 = vmul.f32 %v774_v25, %v7771_v20  ;;  %v9133_v0 = vld [vmem:[#allocation64_spill] sm:$0xff]  ;;  %5884 = vrcp.f32 %v2040_v54  ;;  %v9141_v54 = vld [vmem:[#allocation18_spill] sm:$0xff] }
 0x489   :  { %4668 = vmatprep.mubr.f32.mxu1 %v787_v38  ;;  %v776_v17 = vmul.f32 %v5863_v4, %v9133_v0  ;;  %v5867_v38 = vpop.eup %5866  ;;  %v791_v24 = vmul.f32 %v775_v47, %v7795_v30  ;;  %v7992_v61 = vpop.xlane.xlu0 %2057  ;;  %v9136_v4 = vld [vmem:[#allocation33_spill] sm:$0xff]  ;;  %5886 = vrcp.f32 %v7941_v41 }
 0x48a   :  { %v5869_v36 = vpop.eup %5868  ;;  %5888 = vrcp.f32 %v7966_v12  ;;  %v9144_v12 = vld [vmem:[#allocation21_spill] sm:$0xff] }
 0x48b   :  { %v7973_v11 = vpop.xlane.xlu1 %2047  ;;  %v792_v25 = vmul.f32 %v776_v17, %v7803_v18  ;;  %v5871_v5 = vpop.eup %5870  ;;  %v9139_v17 = vld [vmem:[#allocation37_spill] sm:$0xff]  ;;  %5890 = vrcp.f32 %v7943_v33 }
 0x48c   :  { %4669 = vmatmul.mubr.f32.vlgmr.msra.gmra.mrb[16].mxu1 %v788_v39  ;;  %v777_v39 = vmul.f32 %v5865_v63, %v9134_v27  ;;  %v9137_v63 = vld [vmem:[#allocation35_spill] sm:$0xff]  ;;  %v5873_v62 = vpop.eup %5872  ;;  %5892 = vrcp.f32 %v7973_v11  ;;  %v9146_v11 = vld [vmem:[#allocation24_spill] sm:$0xff] }
 0x48d   :  { %5207 = vmatpush3.bf16.msra.mxu1 %v9107_v29  ;;  %4671 = vmatprep.mubr.f32.mxu1 %v789_v2  ;;  %v9135_v29 = vld [vmem:[#allocation12_spill] sm:$0xff]  ;;  %v778_v2 = vmul.f32 %v5867_v38, %v9136_v4  ;;  %v780_v38 = vmul.f32 %v5871_v5, %v9139_v17  ;;  %v8009_v27 = vpop.xlane.xlu0 %2061  ;;  %5894 = vrcp.f32 %v7961_v48 }
 0x48e   :  { %5209 = vmatprep.subr.bf16.mxu1 %v9132_v56  ;;  %v793_v47 = vmul.f32 %v777_v39, %v7826_v21 }
 0x48f   :  { %v7985_v58 = vpop.xlane.xlu1 %2051  ;;  %v794_v0 = vmul.f32 %v778_v2, %v7833_v7  ;;  %v796_v4 = vmul.f32 %v780_v38, %v7859_v9  ;;  %v9142_v2 = vld [vmem:[#allocation66_spill] sm:$0xff] }
 0x490   :  { %4672 = vmatmul.mubr.f32.gmra.mrb[18].mxu1 %v790_v15  ;;  %v779_v15 = vmul.f32 %v5869_v36, %v9137_v63  ;;  %v9140_v36 = vld [vmem:[#allocation67_spill] sm:$0xff]  ;;  %v9145_v38 = vld [vmem:[#allocation70_spill] sm:$0xff]  ;;  %5896 = vrcp.f32 %v7985_v58 }
 0x491   :  { %5211 = vmatpush3.bf16.msra.mxu1 %v9132_v56  ;;  %4674 = vmatprep.mubr.f32.mxu1 %v791_v24  ;;  %v5875_v24 = vpop.eup %5874  ;;  %v8024_v41 = vpop.xlane.xlu0 %2065  ;;  %5898 = vrcp.f32 %v7977_v31  ;;  %v9149_v31 = vld [vmem:[#allocation53_spill] sm:$0xff] }
 0x492   :  { %5213 = vmatprep.subr.bf16.mxu1 %v9135_v29  ;;  %v795_v39 = vmul.f32 %v779_v15, %v7852_v60  ;;  %v5877_v53 = vpop.eup %5876  ;;  %v782_v5 = vmul.f32 %v5875_v24, %v9142_v2  ;;  %v9143_v15 = vld [vmem:[#allocation71_spill] sm:$0xff] }
 0x493   :  { %v7996_v22 = vpop.xlane.xlu1 %2055 }
 0x494   :  { %4675 = vmatmul.mubr.f32.gmra.mrb[20].mxu1 %v792_v25  ;;  %v781_v25 = vmul.f32 %v5873_v62, %v9140_v36  ;;  %v783_v62 = vmul.f32 %v5877_v53, %v9143_v15  ;;  %v798_v17 = vmul.f32 %v782_v5, %v7880_v50  ;;  %5900 = vrcp.f32 %v7996_v22 }
 0x495   :  { %5215 = vmatpush3.bf16.msra.mxu1 %v9135_v29  ;;  %4677 = vmatprep.mubr.f32.mxu1 %v793_v47  ;;  %v5879_v47 = vpop.eup %5878  ;;  %v8043_v5 = vpop.xlane.xlu0 %2667  ;;  %5902 = vrcp.f32 %v7992_v61 }
 0x496   :  { %5217 = vmatprep.subr.bf16.mxu1 %v9138_v23  ;;  %v797_v63 = vmul.f32 %v781_v25, %v7872_v1  ;;  %v784_v24 = vmul.f32 %v5879_v47, %v9145_v38  ;;  %v799_v36 = vmul.f32 %v783_v62, %v7887_v49  ;;  %v9148_v62 = vld [vmem:[#allocation27_spill] sm:$0xff] }
 0x497   :  { %v8005_v56 = vpop.xlane.xlu1 %2059 }
 0x498   :  { %4678 = vmatmul.mubr.f32.gmra.mrb[22].mxu1 %v794_v0  ;;  %v5881_v0 = vpop.eup %5880  ;;  %5904 = vrcp.f32 %v8005_v56 }
 0x499   :  { %5219 = vmatpush3.bf16.msra.mxu1 %v9138_v23  ;;  %4680 = vmatprep.mubr.f32.mxu1 %v795_v39  ;;  %v5883_v39 = vpop.eup %5882  ;;  %v785_v33 = vmul.f32 %v5881_v0, %v7620_v32  ;;  %v8062_v22 = vpop.xlane.xlu0 %2675  ;;  %5906 = vrcp.f32 %v8009_v27  ;;  %v5671_v27 = vunpack.i.h.bf16 %v7923_v10 }
 0x49a   :  { %5221 = vmatprep.subr.bf16.mxu1 %v9141_v54  ;;  %v5885_v25 = vpop.eup %5884 }
 0x49b   :  { %v8017_v29 = vpop.xlane.xlu1 %2063  ;;  %v5887_v2 = vpop.eup %5886  ;;  %v801_v32 = vmul.f32 %v785_v33, %v7950_v44  ;;  %v2087_v48 = vmul.f32 %v5885_v25, %v7643_v3 }
 0x49c   :  { %4681 = vmatmul.mubr.f32.gmra.mrb[24].mxu1 %v796_v4  ;;  %v786_v4 = vmul.f32 %v5883_v39, %v7599_v59  ;;  %v5889_v47 = vpop.eup %5888  ;;  %v2088_v59 = vmul.f32 %v5887_v2, %v7633_v52  ;;  %v5661_v39 = vunpack.i.h.bf16 %v9149_v31  ;;  %v5666_v2 = vunpack.i.h.bf16 %v7937_v13 }
 0x49d   :  { %5223 = vmatpush3.bf16.msra.mxu1 %v9141_v54  ;;  %4683 = vmatprep.mubr.f32.mxu1 %v797_v63  ;;  %v800_v54 = vmul.f32 %v784_v24, %v7898_v14  ;;  %v9147_v63 = vld [vmem:[#allocation58_spill] sm:$0xff]  ;;  %v2089_v38 = vmul.f32 %v5889_v47, %v7653_v6  ;;  %5908 = vrcp.f32 %v8017_v29 }
 0x49e   :  { %5225 = vmatprep.subr.bf16.mxu1 %v9144_v12  ;;  %v5656_v15 = vunpack.i.h.bf16 %v9147_v63  ;;  %v5655_v58 = vunpack.i.l.bf16 %v9147_v63  ;;  %v802_v3 = vmul.f32 %v786_v4, %v7957_v46  ;;  %v2104_v6 = vmul.f32 %v2088_v59, %v7725_v40  ;;  %v5674_v63 = vpop.permute.xlu0 %5673 }
 0x49f   :  { %v8029_v23 = vpop.xlane.xlu1 %2069  ;;  %5910 = vrcp.f32 %v8024_v41 }
 0x4a0   :  { %4684 = vmatmul.mubr.f32.gmra.mrb[26].mxu1 %v798_v17  ;;  %v2103_v17 = vmul.f32 %v2087_v48, %v7736_v55  ;;  %v5284_v52 = vpack.c.bf16 %v5656_v15, %v5655_v58 }
 0x4a1   :  { %5227 = vmatpush3.bf16.msra.mxu1 %v9144_v12  ;;  %4686 = vmatprep.mubr.f32.mxu1 %v799_v36  ;;  %v5891_v12 = vpop.eup %5890  ;;  %v5660_v36 = vunpack.i.l.bf16 %v9149_v31 }
 0x4a2   :  { %5229 = vmatprep.subr.bf16.mxu1 %v9146_v11  ;;  %v5893_v24 = vpop.eup %5892  ;;  %v2090_v25 = vmul.f32 %v5891_v12, %v7601_v34  ;;  %v5679_v31 = vpop.permute.xlu0 %5678 }
 0x4a3   :  { %v8039_v53 = vpop.xlane.xlu1 %2067  ;;  %v2091_v4 = vmul.f32 %v5893_v24, %v7665_v43  ;;  %v5288_v48 = vpack.c.bf16 %v5661_v39, %v5660_v36  ;;  %v5675_v24 = vunpack.i.l.bf16 %v5674_v63 }
 0x4a4   :  { %4687 = vmatmul.mubr.f32.gmra.mrb[28].mxu1 %v800_v54  ;;  %v2105_v54 = vmul.f32 %v2089_v38, %v7762_v51  ;;  %v2106_v56 = vmul.f32 %v2090_v25, %v7771_v20  ;;  %5912 = vrcp.f32 %v8039_v53  ;;  %v5676_v38 = vunpack.i.h.bf16 %v5674_v63  ;;  %v9152_v63 = vld [vmem:[#allocation13_spill] sm:$0xff] }
 0x4a5   :  { %5231 = vmatpush3.bf16.msra.mxu1 %v9146_v11  ;;  %4689 = vmatprep.mubr.f32.mxu1 %v801_v32  ;;  %v5895_v11 = vpop.eup %5894  ;;  %v5665_v32 = vunpack.i.l.bf16 %v7937_v13  ;;  %v2107_v15 = vmul.f32 %v2091_v4, %v7795_v30  ;;  %5914 = vrcp.f32 %v8029_v23  ;;  %v5680_v23 = vunpack.i.l.bf16 %v5679_v31  ;;  %v9150_v4 = vld [vmem:[#allocation14_spill] sm:$0xff] }
 0x4a6   :  { %5233 = vmatprep.subr.bf16.mxu1 %v9148_v62  ;;  %v5897_v61 = vpop.eup %5896  ;;  %v2092_v43 = vmul.f32 %v5895_v11, %v7613_v28  ;;  %v5300_v25 = vpack.c.bf16 %v5676_v38, %v5675_v24  ;;  %v5681_v11 = vunpack.i.h.bf16 %v5679_v31 }
 0x4a7   :  { %v8054_v0 = vpop.xlane.xlu1 %2665  ;;  %v5899_v47 = vpop.eup %5898  ;;  %v2093_v13 = vmul.f32 %v5897_v61, %v7675_v8  ;;  %v5292_v59 = vpack.c.bf16 %v5666_v2, %v5665_v32  ;;  %v9151_v32 = vld [vmem:[#allocation42_spill] sm:$0xff] }
 0x4a8   :  { %4690 = vmatmul.mubr.f32.gmra.mrb[30].mxu1 %v802_v3  ;;  %v5901_v58 = vpop.eup %5900  ;;  %v2108_v29 = vmul.f32 %v2092_v43, %v7803_v18  ;;  %v2094_v8 = vmul.f32 %v5899_v47, %v7624_v19  ;;  %5916 = vrcp.f32 %v8054_v0 }
 0x4a9   :  { %5235 = vmatpush3.bf16.msra.mxu1 %v9148_v62  ;;  %4780 = vmatprep.mubr.f32.mxu1 %v2103_v17  ;;  %v5670_v62 = vunpack.i.l.bf16 %v7923_v10  ;;  %v5903_v3 = vpop.eup %5902  ;;  %v2109_v12 = vmul.f32 %v2093_v13, %v7826_v21  ;;  %v2095_v17 = vmul.f32 %v5901_v58, %v7687_v26  ;;  %5918 = vrcp.f32 %v8043_v5 }
 0x4aa   :  { %5285 = vmatprep.subr.bf16.mxu1 %v5284_v52  ;;  %v5905_v10 = vpop.eup %5904  ;;  %v2110_v19 = vmul.f32 %v2094_v8, %v7833_v7  ;;  %v2096_v39 = vmul.f32 %v5903_v3, %v7635_v42  ;;  %v9154_v3 = vld [vmem:[#allocation46_spill] sm:$0xff] }
 0x4ab   :  { %v8066_v33 = vpop.xlane.xlu1 %2671  ;;  %v5296_v41 = vpack.c.bf16 %v5671_v27, %v5670_v62  ;;  %v5907_v26 = vpop.eup %5906  ;;  %v2111_v36 = vmul.f32 %v2095_v17, %v7852_v60 }
 0x4ac   :  { %4781 = vmatmul.mubr.f32.vlgmr.msra.gmra.mrb[16].mxu1 %v2104_v6  ;;  %v5909_v6 = vpop.eup %5908  ;;  %v2098_v61 = vmul.f32 %v5907_v26, %v9150_v4 }
 0x4ad   :  { %5287 = vmatpush3.bf16.msra.mxu1 %v5284_v52  ;;  %4783 = vmatprep.mubr.f32.mxu1 %v2105_v54  ;;  %v2097_v52 = vmul.f32 %v5905_v10, %v7694_v16  ;;  %v2112_v54 = vmul.f32 %v2096_v39, %v7859_v9  ;;  %v5911_v2 = vpop.eup %5910  ;;  %v5304_v16 = vpack.c.bf16 %v5681_v11, %v5680_v23  ;;  %v9155_v10 = vld [vmem:[#allocation48_spill] sm:$0xff] }
 0x4ae   :  { %5289 = vmatprep.subr.bf16.mxu1 %v5288_v48  ;;  %v2114_v47 = vmul.f32 %v2098_v61, %v7880_v50 }
 0x4af   :  { %v8076_v34 = vpop.xlane.xlu1 %2669  ;;  %v2113_v42 = vmul.f32 %v2097_v52, %v7872_v1 }
 0x4b0   :  { %4784 = vmatmul.mubr.f32.gmra.mrb[18].mxu1 %v2106_v56  ;;  %v5913_v56 = vpop.eup %5912  ;;  %5920 = vrcp.f32 %v8076_v34 }
 0x4b1   :  { %5291 = vmatpush3.bf16.msra.mxu1 %v5288_v48  ;;  %4786 = vmatprep.mubr.f32.mxu1 %v2107_v15  ;;  %v2099_v48 = vmul.f32 %v5909_v6, %v9151_v32  ;;  %v2100_v15 = vmul.f32 %v5911_v2, %v9152_v63  ;;  %v5915_v13 = vpop.eup %5914  ;;  %5922 = vrcp.f32 %v8066_v33 }
 0x4b2   :  { %5293 = vmatprep.subr.bf16.mxu1 %v5292_v59  ;;  %v5917_v62 = vpop.eup %5916 }
 0x4b3   :  { %v8086_v28 = vpop.xlane.xlu1 %2673  ;;  %v2115_v58 = vmul.f32 %v2099_v48, %v7887_v49  ;;  %v2116_v8 = vmul.f32 %v2100_v15, %v7898_v14  ;;  %v2713_v38 = vmul.f32 %v5917_v62, %v9155_v10  ;;  %v5919_v5 = vpop.eup %5918  ;;  %v9161_v62 = vld [vmem:[#allocation41_spill] sm:$0xff] }
 0x4b4   :  { %4787 = vmatmul.mubr.f32.gmra.mrb[20].mxu1 %v2108_v29  ;;  %5924 = vrcp.f32 %v8086_v28 }
 0x4b5   :  { %5295 = vmatpush3.bf16.msra.mxu1 %v5292_v59  ;;  %4789 = vmatprep.mubr.f32.mxu1 %v2109_v12  ;;  %v9153_v59 = vld [vmem:[#allocation36_spill] sm:$0xff]  ;;  %v2102_v12 = vmul.f32 %v5915_v13, %v9154_v3  ;;  %v2729_v26 = vmul.f32 %v2713_v38, %v7736_v55  ;;  %5926 = vrcp.f32 %v8062_v22  ;;  %v9156_v55 = vld [vmem:[#allocation11_spill] sm:$0xff] }
 0x4b6   :  { %5297 = vmatprep.subr.bf16.mxu1 %v5296_v41  ;;  %v2101_v27 = vmul.f32 %v5913_v56, %v9153_v59  ;;  %v2714_v23 = vmul.f32 %v5919_v5, %v9156_v55  ;;  %v9159_v13 = vld [vmem:[#allocation39_spill] sm:$0xff] }
 0x4b7   :  { %v8094_v53 = vpop.xlane.xlu1 %2679  ;;  %v9163_v38 = vld [vmem:[#allocation43_spill] sm:$0xff] }
 0x4b8   :  { %4790 = vmatmul.mubr.f32.gmra.mrb[22].mxu1 %v2110_v19  ;;  %v2117_v17 = vmul.f32 %v2101_v27, %v7950_v44  ;;  %v2730_v22 = vmul.f32 %v2714_v23, %v7725_v40 }
 0x4b9   :  { %5299 = vmatpush3.bf16.msra.mxu1 %v5296_v41  ;;  %4792 = vmatprep.mubr.f32.mxu1 %v2111_v36  ;;  %v2118_v41 = vmul.f32 %v2102_v12, %v7957_v46 }
 0x4ba   :  { %5301 = vmatprep.subr.bf16.mxu1 %v5300_v25  ;;  %v5921_v6 = vpop.eup %5920 }
 0x4bb   :  { %v2678_v0 = vpop.xlane.xlu1 %2677  ;;  %v2715_v28 = vmul.f32 %v5921_v6, %v7775_v57  ;;  %v9158_v57 = vld [vmem:[#allocation10_spill] sm:$0xff] }
 0x4bc   :  { %4793 = vmatmul.mubr.f32.gmra.mrb[24].mxu1 %v2112_v54  ;;  %5928 = vrcp.f32 %v2678_v0  ;;  %v5923_v54 = vpop.eup %5922  ;;  %v9157_v0 = vld [vmem:[#allocation38_spill] sm:$0xff] }
 0x4bd   :  { %5303 = vmatpush3.bf16.msra.mxu1 %v5300_v25  ;;  %4795 = vmatprep.mubr.f32.mxu1 %v2113_v42  ;;  %5930 = vrcp.f32 %v8094_v53  ;;  %v2716_v61 = vmul.f32 %v5923_v54, %v9157_v0  ;;  %v2731_v42 = vmul.f32 %v2715_v28, %v7762_v51  ;;  %v6013_v54 = vld [vmem:[%s8881_s0] sm:$0xff] }
 0x4be   :  { %5305 = vmatprep.subr.bf16.mxu1 %v5304_v16  ;;  %v5925_v4 = vpop.eup %5924 }
 0x4bf   :  { %v2684_v43 = vpop.xlane.xlu1 %2683  ;;  %v5927_v2 = vpop.eup %5926  ;;  %v2717_v53 = vmul.f32 %v5925_v4, %v7786_v35  ;;  %v2732_v48 = vmul.f32 %v2716_v61, %v7771_v20 }
 0x4c0   :  { %4796 = vmatmul.mubr.f32.gmra.mrb[26].mxu1 %v2114_v47  ;;  %v2718_v56 = vmul.f32 %v5927_v2, %v9158_v57  ;;  %v6014_v2 = vld [vmem:[%s8881_s0 + $0x18] sm:$0xff] }
 0x4c1   :  { %5307 = vmatpush3.bf16.msra.mxu1 %v5304_v16  ;;  %4798 = vmatprep.mubr.f32.mxu1 %v2115_v58 }
 0x4c2   :  { %v2734_v63 = vmul.f32 %v2718_v56, %v7803_v18  ;;  %v6015_v56 = vld [vmem:[%s8881_s0 + $0x10] sm:$0xff] }
 0x4c3   :  { %v2682_v29 = vpop.xlane.xlu1 %2681 }
 0x4c4   :  { %4799 = vmatmul.mubr.f32.gmra.mrb[28].mxu1 %v2116_v8  ;;  %5932 = vrcp.f32 %v2682_v29 }
 0x4c5   :  { %4801 = vmatprep.mubr.f32.mxu1 %v2117_v17  ;;  %5934 = vrcp.f32 %v2684_v43  ;;  %v2733_v43 = vmul.f32 %v2717_v53, %v7795_v30  ;;  %v9160_v30 = vld [vmem:[#allocation44_spill] sm:$0xff]  ;;  %v9162_v17 = vld [vmem:[#allocation49_spill] sm:$0xff] }
 0x4c6   :  { %v5929_v32 = vpop.eup %5928 }
 0x4c7   :  { %v5684_v24 = vpop.permute.xlu1 %5683  ;;  %v5931_v16 = vpop.eup %5930  ;;  %v2719_v47 = vmul.f32 %v5929_v32, %v7818_v37 }
 0x4c8   :  { %v5686_v31 = vunpack.i.h.bf16 %v5684_v24  ;;  %v5685_v19 = vunpack.i.l.bf16 %v5684_v24  ;;  %v2686_v39 = vpop.xlane.xlu0 %2685  ;;  %4802 = vmatmul.mubr.f32.gmra.mrb[30].mxu1 %v2118_v41  ;;  %v2720_v51 = vmul.f32 %v5931_v16, %v7807_v45 }
 0x4c9   :  { %4892 = vmatprep.mubr.f32.mxu1 %v2729_v26  ;;  %5936 = vrcp.f32 %v2686_v39  ;;  %v2735_v15 = vmul.f32 %v2719_v47, %v7826_v21 }
 0x4ca   :  { %v5308_v36 = vpack.c.bf16 %v5686_v31, %v5685_v19  ;;  %v2736_v59 = vmul.f32 %v2720_v51, %v7833_v7  ;;  %v9164_v31 = vld [vmem:[#allocation50_spill] sm:$0xff] }
 0x4cb   :  { %v6016_v51 = vld [vmem:[%s8881_s0 + $0x30] sm:$0xff] }
 0x4cc   :  { %v2690_v52 = vpop.xlane.xlu0 %2689  ;;  %5309 = vmatprep.subr.bf16.mxu1 %v5308_v36 }
 0x4cd   :  { %5311 = vmatpush3.bf16.msra.mxu1 %v5308_v36  ;;  %5938 = vrcp.f32 %v2690_v52  ;;  %v9165_v52 = vld [vmem:[#allocation45_spill] sm:$0xff] }
 0x4ce   :  { %v5933_v40 = vpop.eup %5932 }
 0x4cf   :  { %v5935_v35 = vpop.eup %5934  ;;  %v2721_v58 = vmul.f32 %v5933_v40, %v9159_v13 }
 0x4d0   :  { %v5689_v34 = vpop.permute.xlu0 %5688  ;;  %v2722_v27 = vmul.f32 %v5935_v35, %v9160_v30 }
 0x4d1   :  { %v5691_v25 = vunpack.i.h.bf16 %v5689_v34  ;;  %v5690_v11 = vunpack.i.l.bf16 %v5689_v34  ;;  %v2737_v37 = vmul.f32 %v2721_v58, %v7852_v60  ;;  %v9166_v34 = vld [vmem:[#allocation54_spill] sm:$0xff]  ;;  %v6017_v58 = vld [vmem:[%s8881_s0 + $0x20] sm:$0xff] }
 0x4d2   :  { %v2738_v18 = vmul.f32 %v2722_v27, %v7859_v9 }
 0x4d3   :  { %v5312_v33 = vpack.c.bf16 %v5691_v25, %v5690_v11  ;;  %v5937_v20 = vpop.eup %5936 }
 0x4d4   :  { %v2723_v29 = vmul.f32 %v5937_v20, %v9161_v62  ;;  %v6018_v62 = vld [vmem:[%s8881_s0 + $0x40] sm:$0xff] }
 0x4d5   :  { %5313 = vmatprep.subr.bf16.mxu1 %v5312_v33 }
 0x4d6   :  { %5315 = vmatpush3.bf16.msra.mxu1 %v5312_v33  ;;  %v2739_v45 = vmul.f32 %v2723_v29, %v7872_v1  ;;  %v6012_v33 = vld [vmem:[%s8881_s0 + $0x8] sm:$0xff] }
 0x4d7   :  { %v5939_v7 = vpop.eup %5938 }
 0x4d8   :  { %v2725_v10 = vmul.f32 %v5939_v7, %v9162_v17 }
 0x4d9   :  { %4893 = vmatmul.mubr.f32.vlgmr.msra.gmra.mrb[16].mxu1 %v2730_v22 }
 0x4da   :  { %4895 = vmatprep.mubr.f32.mxu1 %v2731_v42  ;;  %v2741_v41 = vmul.f32 %v2725_v10, %v7887_v49  ;;  %v8153_v49 = vld [vmem:[%s8886_s5] ss:$0 sm:$0xff]  ;;  %v6021_v10 = vld [vmem:[%s8881_s0 + $0x48] sm:$0xff] }
 0x4dd   :  { %4896 = vmatmul.mubr.f32.gmra.mrb[18].mxu1 %v2732_v48 }
 0x4de   :  { %4898 = vmatprep.mubr.f32.mxu1 %v2733_v43 }
 0x4e1   :  { %4899 = vmatmul.mubr.f32.gmra.mrb[20].mxu1 %v2734_v63 }
 0x4e2   :  { %4901 = vmatprep.mubr.f32.mxu1 %v2735_v15 }
 0x4e5   :  { %4902 = vmatmul.mubr.f32.gmra.mrb[22].mxu1 %v2736_v59 }
 0x4e6   :  { %4904 = vmatprep.mubr.f32.mxu1 %v2737_v37 }
 0x4e9   :  { %4905 = vmatmul.mubr.f32.gmra.mrb[24].mxu1 %v2738_v18  ;;  %v6019_v18 = vld [vmem:[%s8881_s0 + $0x28] sm:$0xff] }
 0x4ea   :  { %4907 = vmatprep.mubr.f32.mxu1 %v2739_v45 }
 0x4f8   :  { %v2688_v21 = vpop.xlane.xlu1 %2687 }
 0x4f9   :  { %5940 = vrcp.f32 %v2688_v21 }
 0x4fc   :  { %v2692_v8 = vpop.xlane.xlu1 %2691 }
 0x4fd   :  { %5942 = vrcp.f32 %v2692_v8 }
 0x500   :  { %v2696_v3 = vpop.xlane.xlu1 %2695 }
 0x501   :  { %5944 = vrcp.f32 %v2696_v3  ;;  %v2694_v12 = vpop.xlane.xlu0 %2693  ;;  %v6020_v3 = vld [vmem:[%s8881_s0 + $0x38] sm:$0xff] }
 0x502   :  { %5946 = vrcp.f32 %v2694_v12 }
 0x503   :  { %v5941_v60 = vpop.eup %5940 }
 0x504   :  { %v2724_v24 = vmul.f32 %v5941_v60, %v9163_v38 }
 0x506   :  { %v2740_v9 = vmul.f32 %v2724_v24, %v7880_v50 }
 0x507   :  { %v5943_v1 = vpop.eup %5942 }
 0x508   :  { %4908 = vmatmul.mubr.f32.gmra.mrb[26].mxu1 %v2740_v9  ;;  %v2726_v19 = vmul.f32 %v5943_v1, %v9164_v31 }
 0x509   :  { %4910 = vmatprep.mubr.f32.mxu1 %v2741_v41 }
 0x50a   :  { %v2742_v39 = vmul.f32 %v2726_v19, %v7898_v14 }
 0x50b   :  { %v5945_v26 = vpop.eup %5944 }
 0x50c   :  { %v5947_v36 = vpop.eup %5946  ;;  %4911 = vmatmul.mubr.f32.gmra.mrb[28].mxu1 %v2742_v39  ;;  %v2728_v5 = vmul.f32 %v5945_v26, %v9165_v52  ;;  %v6022_v39 = vld [vmem:[%s8881_s0 + $0x58] sm:$0xff] }
 0x50d   :  { %v2727_v6 = vmul.f32 %v5947_v36, %v9166_v34  ;;  %v6023_v36 = vld [vmem:[%s8881_s0 + $0x50] sm:$0xff] }
 0x50e   :  { %v2744_v50 = vmul.f32 %v2728_v5, %v7957_v46 }
 0x50f   :  { %v2743_v25 = vmul.f32 %v2727_v6, %v7950_v44 }
 0x511   :  { %4913 = vmatprep.mubr.f32.mxu1 %v2743_v25 }
 0x512   :  { %4914 = vmatmul.mubr.f32.gmra.mrb[30].mxu1 %v2744_v50 }
 0x5ac   :  { %v4894_v11 = vpop.f32.mrb[16].mxu1 }
 0x5ad   :  { %v2978_v14 = vadd.f32 %v4894_v11, %v8153_v49  ;;  %v2875_v55 = vpop.f32.mrb[17].mxu1 }
 0x5ae   :  { %v2977_v23 = vadd.f32 %v8153_v49, %v2875_v55 }
 0x5af   :  { %v8160_v44 = vadd.f32 %v6012_v33, %v2978_v14  ;;  %v6024_v14 = vld [vmem:[%s8881_s0 + $0x68] sm:$0xff] }
 0x5b0   :  { %v4897_v46 = vpop.f32.mrb[18].mxu1  ;;  %v8165_v28 = vadd.f32 %v6013_v54, %v2977_v23  ;;  %v6025_v23 = vld [vmem:[%s8881_s0 + $0x60] sm:$0xff] }
 0x5b1   :  { %v2980_v4 = vadd.f32 %v4897_v46, %v8153_v49  ;;  %v2885_v22 = vpop.f32.mrb[19].mxu1  ;;  %v3014_v0 = vsel %vm143_vm0, %v8160_v44, 0.0 }
 0x5b2   :  { %3015 = vadd.xlane.f32.xlu1 %v3014_v0  ;;  %v2979_v53 = vadd.f32 %v8153_v49, %v2885_v22  ;;  %v3011_v48 = vsel %vm143_vm0, %v8165_v28, 0.0 }
 0x5b3   :  { %v8173_v42 = vadd.f32 %v6014_v2, %v2980_v4  ;;  %v6026_v2 = vld [vmem:[%s8881_s0 + $0x78] sm:$0xff] }
 0x5b4   :  { %v4900_v61 = vpop.f32.mrb[20].mxu1  ;;  %v8181_v16 = vadd.f32 %v6015_v56, %v2979_v53 }
 0x5b5   :  { %v2895_v32 = vpop.f32.mrb[21].mxu1  ;;  %v3020_v40 = vsel %vm143_vm0, %v8173_v42, 0.0  ;;  %v2982_v13 = vadd.f32 %v4900_v61, %v8153_v49 }
 0x5b6   :  { %3012 = vadd.xlane.f32.xlu1 %v3011_v48  ;;  %v2981_v43 = vadd.f32 %v8153_v49, %v2895_v32  ;;  %v3017_v30 = vsel %vm143_vm0, %v8181_v16, 0.0  ;;  %v6027_v32 = vld [vmem:[%s8881_s0 + $0x70] sm:$0xff] }
 0x5b7   :  { %v8211_v45 = vadd.f32 %v6019_v18, %v2982_v13 }
 0x5b8   :  { %v4903_v57 = vpop.f32.mrb[22].mxu1  ;;  %v8196_v20 = vadd.f32 %v6017_v58, %v2981_v43 }
 0x5b9   :  { %v2905_v47 = vpop.f32.mrb[23].mxu1  ;;  %v2984_v21 = vadd.f32 %v4903_v57, %v8153_v49  ;;  %v3026_v17 = vsel %vm143_vm0, %v8211_v45, 0.0 }
 0x5ba   :  { %v2983_v63 = vadd.f32 %v8153_v49, %v2905_v47  ;;  %3021 = vadd.xlane.f32.xlu1 %v3020_v40  ;;  %v3023_v8 = vsel %vm143_vm0, %v8196_v20, 0.0 }
 0x5bb   :  { %v8221_v12 = vadd.f32 %v6020_v3, %v2984_v21 }
 0x5bc   :  { %v8190_v35 = vadd.f32 %v6016_v51, %v2983_v63  ;;  %v4906_v15 = vpop.f32.mrb[24].mxu1 }
 0x5bd   :  { %v2915_v59 = vpop.f32.mrb[25].mxu1  ;;  %v2986_v60 = vadd.f32 %v4906_v15, %v8153_v49  ;;  %v3032_v24 = vsel %vm143_vm0, %v8221_v12, 0.0 }
 0x5be   :  { %v2985_v27 = vadd.f32 %v8153_v49, %v2915_v59  ;;  %3018 = vadd.xlane.f32.xlu1 %v3017_v30  ;;  %v3029_v37 = vsel %vm143_vm0, %v8190_v35, 0.0 }
 0x5bf   :  { %3030 = vadd.xlane.f32.xlu0 %v3029_v37  ;;  %v8229_v38 = vadd.f32 %v6021_v10, %v2986_v60 }
 0x5c0   :  { %v8206_v29 = vadd.f32 %v6018_v62, %v2985_v27 }
 0x5c1   :  { %v3038_v9 = vsel %vm143_vm0, %v8229_v38, 0.0 }
 0x5c2   :  { %3024 = vadd.xlane.f32.xlu1 %v3023_v8  ;;  %v3035_v7 = vsel %vm143_vm0, %v8206_v29, 0.0 }
 0x5c3   :  { %3036 = vadd.xlane.f32.xlu0 %v3035_v7 }
 0x5c6   :  { %3027 = vadd.xlane.f32.xlu1 %v3026_v17 }
 0x5ca   :  { %3033 = vadd.xlane.f32.xlu1 %v3032_v24 }
 0x5ce   :  { %3039 = vadd.xlane.f32.xlu1 %v3038_v9 }
 0x5db   :  { %v4909_v1 = vpop.f32.mrb[26].mxu1 }
 0x5dc   :  { %v2988_v41 = vadd.f32 %v4909_v1, %v8153_v49  ;;  %v2925_v31 = vpop.f32.mrb[27].mxu1 }
 0x5dd   :  { %v2987_v19 = vadd.f32 %v8153_v49, %v2925_v31 }
 0x5de   :  { %v8240_v26 = vadd.f32 %v6022_v39, %v2988_v41 }
 0x5df   :  { %v8245_v52 = vadd.f32 %v6023_v36, %v2987_v19  ;;  %v4912_v5 = vpop.f32.mrb[28].mxu1 }
 0x5e0   :  { %v2990_v34 = vadd.f32 %v4912_v5, %v8153_v49  ;;  %v2935_v6 = vpop.f32.mrb[29].mxu1  ;;  %v3044_v25 = vsel %vm143_vm0, %v8240_v26, 0.0 }
 0x5e1   :  { %v2989_v50 = vadd.f32 %v8153_v49, %v2935_v6  ;;  %3045 = vadd.xlane.f32.xlu1 %v3044_v25  ;;  %v3041_v11 = vsel %vm143_vm0, %v8245_v52, 0.0 }
 0x5e2   :  { %v8256_v55 = vadd.f32 %v6024_v14, %v2990_v34  ;;  %3042 = vadd.xlane.f32.xlu0 %v3041_v11 }
 0x5e3   :  { %v8261_v33 = vadd.f32 %v6025_v23, %v2989_v50 }
 0x5e4   :  { %v3050_v46 = vsel %vm143_vm0, %v8256_v55, 0.0 }
 0x5e5   :  { %3051 = vadd.xlane.f32.xlu1 %v3050_v46  ;;  %v4915_v54 = vpop.f32.mrb[30].mxu1  ;;  %v3047_v4 = vsel %vm143_vm0, %v8261_v33, 0.0 }
 0x5e6   :  { %v2992_v22 = vadd.f32 %v4915_v54, %v8153_v49  ;;  %3048 = vadd.xlane.f32.xlu0 %v3047_v4  ;;  %v2945_v0 = vpop.f32.mrb[31].mxu1 }
 0x5e7   :  { %v2991_v61 = vadd.f32 %v8153_v49, %v2945_v0  ;;  %v3265_v0 = vld [vmem:[#allocation4 + $0x8] sm:$0xff] }
 0x5e8   :  { %v8272_v53 = vadd.f32 %v6026_v2, %v2992_v22  ;;  %v3264_v22 = vld [vmem:[#allocation4] sm:$0xff]  ;;  %v3266_v2 = vld [vmem:[#allocation4 + $0x10] sm:$0xff] }
 0x5e9   :  { %v8277_v48 = vadd.f32 %v6027_v32, %v2991_v61  ;;  %v5316_v61 = vpack.c.bf16 %v3265_v0, %v3264_v22 }
 0x5ea   :  { %v3056_v57 = vsel %vm143_vm0, %v8272_v53, 0.0 }
 0x5eb   :  { %3057 = vadd.xlane.f32.xlu1 %v3056_v57  ;;  %v3053_v56 = vsel %vm143_vm0, %v8277_v48, 0.0  ;;  %5317 = vmatprep.subr.bf16.mxu1 %v5316_v61 }
 0x5ec   :  { %3054 = vadd.xlane.f32.xlu0 %v3053_v56  ;;  %5319 = vmatpush3.bf16.msra.mxu1 %v5316_v61 }
 0x63f   :  { %v3016_v49 = vpop.xlane.xlu1 %3015 }
 0x640   :  { %v3061_v43 = vmul.f32 0.03125, %v3016_v49 }
 0x642   :  { %v8284_v47 = vsub.f32 %v8160_v44, %v3061_v43 }
 0x643   :  { %v3013_v40 = vpop.xlane.xlu1 %3012 }
 0x644   :  { %v3060_v63 = vmul.f32 0.03125, %v3013_v40  ;;  %v3093_v51 = vmul.f32 %v8284_v47, %v8284_v47 }
 0x646   :  { %v8289_v15 = vsub.f32 %v8165_v28, %v3060_v63  ;;  %v3111_v13 = vsel %vm143_vm0, %v3093_v51, 0.0 }
 0x647   :  { %v3022_v58 = vpop.xlane.xlu1 %3021  ;;  %3112 = vadd.xlane.f32.xlu1 %v3111_v13 }
 0x648   :  { %v3063_v59 = vmul.f32 0.03125, %v3022_v58  ;;  %v3092_v30 = vmul.f32 %v8289_v15, %v8289_v15 }
 0x64a   :  { %v8295_v27 = vsub.f32 %v8173_v42, %v3063_v59  ;;  %v3108_v44 = vsel %vm143_vm0, %v3092_v30, 0.0 }
 0x64b   :  { %v3019_v37 = vpop.xlane.xlu1 %3018  ;;  %3109 = vadd.xlane.f32.xlu0 %v3108_v44 }
 0x64c   :  { %v3062_v62 = vmul.f32 0.03125, %v3019_v37  ;;  %v3031_v18 = vpop.xlane.xlu0 %3030  ;;  %v3095_v28 = vmul.f32 %v8295_v27, %v8295_v27 }
 0x64d   :  { %v3066_v8 = vmul.f32 0.03125, %v3031_v18 }
 0x64e   :  { %v8301_v21 = vsub.f32 %v8181_v16, %v3062_v62  ;;  %v3117_v7 = vsel %vm143_vm0, %v3095_v28, 0.0 }
 0x64f   :  { %v3025_v3 = vpop.xlane.xlu1 %3024  ;;  %3118 = vadd.xlane.f32.xlu1 %v3117_v7  ;;  %v8307_v10 = vsub.f32 %v8190_v35, %v3066_v8 }
 0x650   :  { %v3064_v60 = vmul.f32 0.03125, %v3025_v3  ;;  %v3037_v42 = vpop.xlane.xlu0 %3036  ;;  %v3094_v17 = vmul.f32 %v8301_v21, %v8301_v21 }
 0x651   :  { %v3068_v9 = vmul.f32 0.03125, %v3037_v42 }
 0x652   :  { %v8310_v24 = vsub.f32 %v8196_v20, %v3064_v60  ;;  %v3114_v16 = vsel %vm143_vm0, %v3094_v17, 0.0  ;;  %v3098_v20 = vmul.f32 %v8307_v10, %v8307_v10 }
 0x653   :  { %v3028_v1 = vpop.xlane.xlu1 %3027  ;;  %3115 = vadd.xlane.f32.xlu0 %v3114_v16  ;;  %v8316_v19 = vsub.f32 %v8206_v29, %v3068_v9 }
 0x654   :  { %v3065_v41 = vmul.f32 0.03125, %v3028_v1  ;;  %v3096_v31 = vmul.f32 %v8310_v24, %v8310_v24  ;;  %v3126_v25 = vsel %vm143_vm0, %v3098_v20, 0.0  ;;  %v3487_v20 = vld [vmem:[%s8889_s8 + $0x18] sm:$0xff] }
 0x656   :  { %v8319_v39 = vsub.f32 %v8211_v45, %v3065_v41  ;;  %v3120_v35 = vsel %vm143_vm0, %v3096_v31, 0.0  ;;  %v3100_v45 = vmul.f32 %v8316_v19, %v8316_v19  ;;  %v3486_v31 = vld [vmem:[%s8889_s8 + $0x10] sm:$0xff] }
 0x657   :  { %v3034_v36 = vpop.xlane.xlu1 %3033  ;;  %3121 = vadd.xlane.f32.xlu0 %v3120_v35 }
 0x658   :  { %v3067_v5 = vmul.f32 0.03125, %v3034_v36  ;;  %v3097_v34 = vmul.f32 %v8319_v39, %v8319_v39  ;;  %v3132_v46 = vsel %vm143_vm0, %v3100_v45, 0.0  ;;  %v8393_v36 = vpack.c.bf16 %v3487_v20, %v3486_v31 }
 0x65a   :  { %v8327_v6 = vsub.f32 %v8221_v12, %v3067_v5  ;;  %v3123_v29 = vsel %vm143_vm0, %v3097_v34, 0.0  ;;  %v3488_v5 = vld [vmem:[%s8889_s8 + $0x20] sm:$0xff]  ;;  %v3489_v34 = vld [vmem:[%s8889_s8 + $0x28] sm:$0xff] }
 0x65b   :  { %v3040_v50 = vpop.xlane.xlu1 %3039  ;;  %3124 = vadd.xlane.f32.xlu1 %v3123_v29  ;;  %3127 = vadd.xlane.f32.xlu0 %v3126_v25  ;;  %v8405_v29 = vpack.c.bf16 %v3489_v34, %v3488_v5 }
 0x65c   :  { %v3069_v11 = vmul.f32 0.03125, %v3040_v50  ;;  %v3099_v14 = vmul.f32 %v8327_v6, %v8327_v6 }
 0x65e   :  { %v8336_v23 = vsub.f32 %v8229_v38, %v3069_v11  ;;  %v3129_v12 = vsel %vm143_vm0, %v3099_v14, 0.0  ;;  %v3267_v38 = vld [vmem:[#allocation4 + $0x18] sm:$0xff] }
 0x65f   :  { %3130 = vadd.xlane.f32.xlu1 %v3129_v12  ;;  %3133 = vadd.xlane.f32.xlu0 %v3132_v46  ;;  %v5320_v32 = vpack.c.bf16 %v3267_v38, %v3266_v2 }
 0x660   :  { %v3101_v54 = vmul.f32 %v8336_v23, %v8336_v23 }
 0x661   :  { %5321 = vmatprep.subr.bf16.mxu1 %v5320_v32 }
 0x662   :  { %v3135_v4 = vsel %vm143_vm0, %v3101_v54, 0.0  ;;  %5323 = vmatpush3.bf16.msra.mxu1 %v5320_v32 }
 0x663   :  { %3136 = vadd.xlane.f32.xlu1 %v3135_v4 }
 0x66e   :  { %v3046_v57 = vpop.xlane.xlu1 %3045 }
 0x66f   :  { %v3071_v56 = vmul.f32 0.03125, %v3046_v57  ;;  %v3043_v49 = vpop.xlane.xlu0 %3042  ;;  %v8414_v57 = vld [vmem:[%s8891_s10] ss:$0 sm:$0xff] }
 0x670   :  { %v3070_v43 = vmul.f32 0.03125, %v3043_v49 }
 0x671   :  { %v8344_v40 = vsub.f32 %v8240_v26, %v3071_v56 }
 0x672   :  { %v8347_v63 = vsub.f32 %v8245_v52, %v3070_v43  ;;  %v3052_v51 = vpop.xlane.xlu1 %3051 }
 0x673   :  { %v3073_v13 = vmul.f32 0.03125, %v3052_v51  ;;  %v3049_v58 = vpop.xlane.xlu0 %3048  ;;  %v3103_v59 = vmul.f32 %v8344_v40, %v8344_v40 }
 0x674   :  { %v3072_v30 = vmul.f32 0.03125, %v3049_v58  ;;  %v3102_v44 = vmul.f32 %v8347_v63, %v8347_v63 }
 0x675   :  { %v8354_v37 = vsub.f32 %v8256_v55, %v3073_v13  ;;  %v3141_v62 = vsel %vm143_vm0, %v3103_v59, 0.0 }
 0x676   :  { %v8358_v26 = vsub.f32 %v8261_v33, %v3072_v30  ;;  %3142 = vadd.xlane.f32.xlu1 %v3141_v62  ;;  %v3138_v52 = vsel %vm143_vm0, %v3102_v44, 0.0 }
 0x677   :  { %3139 = vadd.xlane.f32.xlu0 %v3138_v52  ;;  %v3105_v18 = vmul.f32 %v8354_v37, %v8354_v37 }
 0x678   :  { %v3058_v28 = vpop.xlane.xlu1 %3057  ;;  %v3104_v8 = vmul.f32 %v8358_v26, %v8358_v26 }
 0x679   :  { %v3075_v7 = vmul.f32 0.03125, %v3058_v28  ;;  %v3055_v3 = vpop.xlane.xlu0 %3054  ;;  %v3147_v55 = vsel %vm143_vm0, %v3105_v18, 0.0 }
 0x67a   :  { %v3074_v60 = vmul.f32 0.03125, %v3055_v3  ;;  %3148 = vadd.xlane.f32.xlu1 %v3147_v55  ;;  %v3144_v33 = vsel %vm143_vm0, %v3104_v8, 0.0 }
 0x67b   :  { %v8368_v42 = vsub.f32 %v8272_v53, %v3075_v7  ;;  %3145 = vadd.xlane.f32.xlu0 %v3144_v33  ;;  %v3484_v53 = vld [vmem:[%s8889_s8] sm:$0xff] }
 0x67c   :  { %v8371_v17 = vsub.f32 %v8277_v48, %v3074_v60  ;;  %v3485_v48 = vld [vmem:[%s8889_s8 + $0x8] sm:$0xff] }
 0x67d   :  { %v3107_v9 = vmul.f32 %v8368_v42, %v8368_v42  ;;  %v8388_v35 = vpack.c.bf16 %v3485_v48, %v3484_v53 }
 0x67e   :  { %v3106_v16 = vmul.f32 %v8371_v17, %v8371_v17 }
 0x67f   :  { %v3153_v1 = vsel %vm143_vm0, %v3107_v9, 0.0  ;;  %5325 = vmatprep.subr.bf16.mxu0 %v8388_v35  ;;  %5340 = vmatprep.subr.bf16.mxu1 %v8388_v35 }
 0x680   :  { %3154 = vadd.xlane.f32.xlu1 %v3153_v1  ;;  %v3150_v41 = vsel %vm143_vm0, %v3106_v16, 0.0  ;;  %5327 = vmatpush3.bf16.msra.mxu0 %v8388_v35 }
 0x681   :  { %3151 = vadd.xlane.f32.xlu0 %v3150_v41  ;;  %5329 = vmatprep.subr.bf16.mxu0 %v8393_v36 }
 0x684   :  { %5331 = vmatpush3.bf16.msra.mxu0 %v8393_v36 }
 0x685   :  { %5333 = vmatprep.subr.bf16.mxu0 %v8405_v29 }
 0x688   :  { %5335 = vmatpush3.bf16.msra.mxu0 %v8405_v29 }
 0x6d4   :  { %v3113_v25 = vpop.xlane.xlu1 %3112 }
 0x6d5   :  { %v3157_v45 = vmul.f32 0.03125, %v3113_v25 }
 0x6d7   :  { %v3173_v50 = vadd.f32 1e-05, %v3157_v45 }
 0x6d8   :  { %v3110_v11 = vpop.xlane.xlu0 %3109 }
 0x6d9   :  { %5948 = vrsqrt.f32 %v3173_v50  ;;  %v3156_v14 = vmul.f32 0.03125, %v3110_v11 }
 0x6db   :  { %v3172_v12 = vadd.f32 1e-05, %v3156_v14 }
 0x6dc   :  { %v3119_v46 = vpop.xlane.xlu1 %3118 }
 0x6dd   :  { %5950 = vrsqrt.f32 %v3172_v12  ;;  %v3159_v54 = vmul.f32 0.03125, %v3119_v46 }
 0x6df   :  { %v3175_v4 = vadd.f32 1e-05, %v3159_v54 }
 0x6e0   :  { %v3116_v22 = vpop.xlane.xlu0 %3115 }
 0x6e1   :  { %5952 = vrsqrt.f32 %v3175_v4  ;;  %v3158_v0 = vmul.f32 0.03125, %v3116_v22 }
 0x6e3   :  { %v5949_v61 = vpop.eup %5948  ;;  %v3174_v2 = vadd.f32 1e-05, %v3158_v0 }
 0x6e4   :  { %v3205_v38 = vmul.f32 %v5949_v61, %v8284_v47  ;;  %v3122_v32 = vpop.xlane.xlu0 %3121  ;;  %v8421_v47 = vld [vmem:[%s8892_s11] ss:$0 sm:$0xff] }
 0x6e5   :  { %5954 = vrsqrt.f32 %v3174_v2  ;;  %v3160_v56 = vmul.f32 0.03125, %v3122_v32 }
 0x6e6   :  { %v3227_v51 = vmul.f32 %v8414_v57, %v3205_v38 }
 0x6e7   :  { %v5951_v49 = vpop.eup %5950  ;;  %v3176_v43 = vadd.f32 1e-05, %v3160_v56 }
 0x6e8   :  { %v3125_v13 = vpop.xlane.xlu1 %3124  ;;  %v3128_v58 = vpop.xlane.xlu0 %3127  ;;  %v3204_v59 = vmul.f32 %v5951_v49, %v8289_v15  ;;  %v8425_v8 = vadd.f32 %v8421_v47, %v3227_v51 }
 0x6e9   :  { %5956 = vrsqrt.f32 %v3176_v43  ;;  %v3161_v30 = vmul.f32 0.03125, %v3125_v13  ;;  %v3162_v44 = vmul.f32 0.03125, %v3128_v58 }
 0x6ea   :  { %v3226_v62 = vmul.f32 %v8414_v57, %v3204_v59 }
 0x6eb   :  { %v5953_v52 = vpop.eup %5952  ;;  %v3177_v18 = vadd.f32 1e-05, %v3161_v30  ;;  %v3178_v28 = vadd.f32 1e-05, %v3162_v44 }
 0x6ec   :  { %v3131_v7 = vpop.xlane.xlu1 %3130  ;;  %v3134_v3 = vpop.xlane.xlu0 %3133  ;;  %v8428_v15 = vadd.f32 %v8421_v47, %v3226_v62  ;;  %v3207_v33 = vmul.f32 %v5953_v52, %v8295_v27 }
 0x6ed   :  { %5958 = vrsqrt.f32 %v3177_v18  ;;  %v3163_v55 = vmul.f32 0.03125, %v3131_v7  ;;  %v3164_v60 = vmul.f32 0.03125, %v3134_v3 }
 0x6ee   :  { %5960 = vrsqrt.f32 %v3178_v28  ;;  %4924 = vmatprep.mubr.msk.f32.mxu1 %vm143_vm0, %v8428_v15  ;;  %v3229_v31 = vmul.f32 %v8414_v57, %v3207_v33 }
 0x6ef   :  { %v5955_v9 = vpop.eup %5954  ;;  %v3179_v16 = vadd.f32 1e-05, %v3163_v55  ;;  %v3180_v1 = vadd.f32 1e-05, %v3164_v60  ;;  %4925 = vmatmul.mubr.msk.f32.vlgmr.msra.gmra.mrb[32].mxu1 %vm143_vm0, %v8425_v8 }
 0x6f0   :  { %v3137_v41 = vpop.xlane.xlu1 %3136  ;;  %v3206_v53 = vmul.f32 %v5955_v9, %v8301_v21  ;;  %5344 = vmatpush3.bf16.msra.mxu1 %v8388_v35  ;;  %v8446_v21 = vadd.f32 %v8421_v47, %v3229_v31 }
 0x6f1   :  { %5962 = vrsqrt.f32 %v3179_v16  ;;  %v3165_v48 = vmul.f32 0.03125, %v3137_v41  ;;  %5341 = vmatprep.subr.bf16.mxu1 %v8393_v36 }
 0x6f2   :  { %5964 = vrsqrt.f32 %v3180_v1  ;;  %v3228_v27 = vmul.f32 %v8414_v57, %v3206_v53 }
 0x6f3   :  { %v5957_v20 = vpop.eup %5956  ;;  %v3181_v5 = vadd.f32 1e-05, %v3165_v48 }
 0x6f4   :  { %v8441_v34 = vadd.f32 %v8421_v47, %v3228_v27  ;;  %v3208_v25 = vmul.f32 %v5957_v20, %v8310_v24  ;;  %5345 = vmatpush3.bf16.msra.mxu1 %v8393_v36 }
 0x6f5   :  { %5966 = vrsqrt.f32 %v3181_v5  ;;  %5342 = vmatprep.subr.bf16.mxu1 %v8405_v29 }
 0x6f6   :  { %4927 = vmatprep.mubr.msk.f32.mxu1 %vm143_vm0, %v8441_v34  ;;  %v3230_v35 = vmul.f32 %v8414_v57, %v3208_v25 }
 0x6f7   :  { %v5959_v45 = vpop.eup %5958  ;;  %4928 = vmatmul.mubr.msk.f32.gmra.mrb[34].mxu1 %vm143_vm0, %v8446_v21 }
 0x6f8   :  { %v5961_v50 = vpop.eup %5960  ;;  %v8455_v24 = vadd.f32 %v8421_v47, %v3230_v35  ;;  %v3209_v36 = vmul.f32 %v5959_v45, %v8319_v39  ;;  %5346 = vmatpush3.bf16.msra.mxu1 %v8405_v29 }
 0x6f9   :  { %v3210_v11 = vmul.f32 %v5961_v50, %v8307_v10 }
 0x6fa   :  { %4930 = vmatprep.mubr.msk.f32.mxu1 %vm143_vm0, %v8455_v24  ;;  %v3231_v14 = vmul.f32 %v8414_v57, %v3209_v36 }
 0x6fb   :  { %v5963_v12 = vpop.eup %5962  ;;  %v3232_v46 = vmul.f32 %v8414_v57, %v3210_v11 }
 0x6fc   :  { %v5965_v54 = vpop.eup %5964  ;;  %v8465_v4 = vadd.f32 %v8421_v47, %v3231_v14  ;;  %v3211_v22 = vmul.f32 %v5963_v12, %v8327_v6 }
 0x6fd   :  { %v8469_v39 = vadd.f32 %v8421_v47, %v3232_v46  ;;  %v3212_v29 = vmul.f32 %v5965_v54, %v8316_v19 }
 0x6fe   :  { %4931 = vmatmul.mubr.msk.f32.gmra.mrb[36].mxu1 %vm143_vm0, %v8465_v4  ;;  %v3233_v10 = vmul.f32 %v8414_v57, %v3211_v22 }
 0x6ff   :  { %v5967_v0 = vpop.eup %5966  ;;  %4933 = vmatprep.mubr.msk.f32.mxu1 %vm143_vm0, %v8469_v39  ;;  %v3234_v61 = vmul.f32 %v8414_v57, %v3212_v29 }
 0x700   :  { %v8479_v2 = vadd.f32 %v8421_v47, %v3233_v10  ;;  %v3213_v6 = vmul.f32 %v5967_v0, %v8336_v23 }
 0x701   :  { %v8483_v38 = vadd.f32 %v8421_v47, %v3234_v61 }
 0x702   :  { %4934 = vmatmul.mubr.msk.f32.gmra.mrb[38].mxu1 %vm143_vm0, %v8479_v2  ;;  %v3235_v19 = vmul.f32 %v8414_v57, %v3213_v6 }
 0x703   :  { %v3143_v32 = vpop.xlane.xlu1 %3142  ;;  %4936 = vmatprep.mubr.msk.f32.mxu1 %vm143_vm0, %v8483_v38 }
 0x704   :  { %v3167_v56 = vmul.f32 0.03125, %v3143_v32  ;;  %v3140_v49 = vpop.xlane.xlu0 %3139  ;;  %v8491_v43 = vadd.f32 %v8421_v47, %v3235_v19 }
 0x705   :  { %v3166_v51 = vmul.f32 0.03125, %v3140_v49 }
 0x706   :  { %v3183_v13 = vadd.f32 1e-05, %v3167_v56  ;;  %4937 = vmatmul.mubr.msk.f32.gmra.mrb[40].mxu1 %vm143_vm0, %v8491_v43 }
 0x707   :  { %v3182_v23 = vadd.f32 1e-05, %v3166_v51  ;;  %v3149_v58 = vpop.xlane.xlu1 %3148 }
 0x708   :  { %5968 = vrsqrt.f32 %v3183_v13  ;;  %v3169_v59 = vmul.f32 0.03125, %v3149_v58  ;;  %v3146_v30 = vpop.xlane.xlu0 %3145 }
 0x709   :  { %5970 = vrsqrt.f32 %v3182_v23  ;;  %v3168_v44 = vmul.f32 0.03125, %v3146_v30 }
 0x70a   :  { %v3185_v62 = vadd.f32 1e-05, %v3169_v59 }
 0x70b   :  { %v3184_v52 = vadd.f32 1e-05, %v3168_v44 }
 0x70c   :  { %5972 = vrsqrt.f32 %v3185_v62 }
 0x70d   :  { %5974 = vrsqrt.f32 %v3184_v52  ;;  %v3155_v18 = vpop.xlane.xlu1 %3154 }
 0x70e   :  { %v3171_v28 = vmul.f32 0.03125, %v3155_v18  ;;  %v3152_v7 = vpop.xlane.xlu0 %3151 }
 0x70f   :  { %v3170_v3 = vmul.f32 0.03125, %v3152_v7 }
 0x710   :  { %v3187_v55 = vadd.f32 1e-05, %v3171_v28 }
 0x711   :  { %v3186_v60 = vadd.f32 1e-05, %v3170_v3 }
 0x712   :  { %v5969_v33 = vpop.eup %5968  ;;  %5976 = vrsqrt.f32 %v3187_v55 }
 0x713   :  { %v5971_v9 = vpop.eup %5970  ;;  %5978 = vrsqrt.f32 %v3186_v60  ;;  %v3215_v16 = vmul.f32 %v5969_v33, %v8344_v40 }
 0x714   :  { %v3214_v1 = vmul.f32 %v5971_v9, %v8347_v63 }
 0x715   :  { %v3237_v41 = vmul.f32 %v8414_v57, %v3215_v16 }
 0x716   :  { %v5973_v53 = vpop.eup %5972  ;;  %v3236_v48 = vmul.f32 %v8414_v57, %v3214_v1 }
 0x717   :  { %v5975_v31 = vpop.eup %5974  ;;  %v3217_v27 = vmul.f32 %v5973_v53, %v8354_v37  ;;  %v8505_v25 = vadd.f32 %v8421_v47, %v3237_v41 }
 0x718   :  { %v8501_v20 = vadd.f32 %v8421_v47, %v3236_v48  ;;  %v3216_v5 = vmul.f32 %v5975_v31, %v8358_v26 }
 0x719   :  { %v3239_v40 = vmul.f32 %v8414_v57, %v3217_v27 }
 0x71a   :  { %4939 = vmatprep.mubr.msk.f32.mxu1 %vm143_vm0, %v8501_v20  ;;  %v3238_v63 = vmul.f32 %v8414_v57, %v3216_v5 }
 0x71b   :  { %4940 = vmatmul.mubr.msk.f32.gmra.mrb[42].mxu1 %vm143_vm0, %v8505_v25  ;;  %v8517_v26 = vadd.f32 %v8421_v47, %v3239_v40 }
 0x71c   :  { %v5977_v35 = vpop.eup %5976  ;;  %v8514_v37 = vadd.f32 %v8421_v47, %v3238_v63 }
 0x71d   :  { %v5979_v45 = vpop.eup %5978  ;;  %v3219_v50 = vmul.f32 %v5977_v35, %v8368_v42  ;;  %v3490_v42 = vld [vmem:[%s8889_s8 + $0x30] sm:$0xff] }
 0x71e   :  { %4942 = vmatprep.mubr.msk.f32.mxu1 %vm143_vm0, %v8514_v37  ;;  %v3218_v36 = vmul.f32 %v5979_v45, %v8371_v17  ;;  %v3491_v17 = vld [vmem:[%s8889_s8 + $0x38] sm:$0xff] }
 0x71f   :  { %4943 = vmatmul.mubr.msk.f32.gmra.mrb[44].mxu1 %vm143_vm0, %v8517_v26  ;;  %v3241_v11 = vmul.f32 %v8414_v57, %v3219_v50 }
 0x720   :  { %v3240_v14 = vmul.f32 %v8414_v57, %v3218_v36  ;;  %v5336_v57 = vpack.c.bf16 %v3491_v17, %v3490_v42 }
 0x721   :  { %v8531_v46 = vadd.f32 %v8421_v47, %v3241_v11 }
 0x722   :  { %v8528_v12 = vadd.f32 %v8421_v47, %v3240_v14  ;;  %5337 = vmatprep.subr.bf16.mxu0 %v5336_v57  ;;  %5343 = vmatprep.subr.bf16.mxu1 %v5336_v57  ;;  %v4132_v47 = vld [vmem:[%s8888_s7] ss:$0 sm:$0xff] }
 0x723   :  { %5339 = vmatpush3.bf16.msra.mxu0 %v5336_v57  ;;  %5347 = vmatpush3.bf16.msra.mxu1 %v5336_v57 }
 0x724   :  { %4945 = vmatprep.mubr.msk.f32.mxu1 %vm143_vm0, %v8528_v12 }
 0x725   :  { %4946 = vmatmul.mubr.msk.f32.gmra.mrb[46].mxu1 %vm143_vm0, %v8531_v46 }
 0x7c2   :  { %v4926_v54 = vpop.f32.mrb[32].mxu1 }
 0x7c3   :  { %v3395_v22 = vadd.f32 %v4926_v54, %v4132_v47  ;;  %v3389_v29 = vpop.f32.mrb[33].mxu1 }
 0x7c4   :  { %v3390_v10 = vadd.f32 %v4132_v47, %v3389_v29 }
 0x7c5   :  { %v3469_v61 = vmax.f32 %v3395_v22, 0.0  ;;  %v8565_v22 = vld [vmem:[%s8890_s9] ss:$0 sm:$0xff] }
 0x7c6   :  { %v3468_v0 = vmax.f32 %v3390_v10, 0.0 }
 0x7c8   :  { %4964 = vmatprep.mubr.msk.f32.mxu0 %vm3499_vm3, %v3468_v0 }
 0x7c9   :  { %4965 = vmatmul.mubr.msk.f32.vlgmr.msra.gmra.mrb[80].mxu0 %vm3499_vm3, %v3469_v61 }
 0x7ca   :  { %v4929_v6 = vpop.f32.mrb[34].mxu1 }
 0x7cb   :  { %v3405_v19 = vadd.f32 %v4929_v6, %v4132_v47  ;;  %v3399_v32 = vpop.f32.mrb[35].mxu1 }
 0x7cc   :  { %v3400_v56 = vadd.f32 %v4132_v47, %v3399_v32 }
 0x7cd   :  { %v3471_v51 = vmax.f32 %v3405_v19, 0.0 }
 0x7ce   :  { %v3470_v49 = vmax.f32 %v3400_v56, 0.0 }
 0x7d0   :  { %4967 = vmatprep.mubr.msk.f32.mxu0 %vm3499_vm3, %v3470_v49 }
 0x7d1   :  { %v4932_v13 = vpop.f32.mrb[36].mxu1  ;;  %4968 = vmatmul.mubr.msk.f32.gmra.mrb[82].mxu0 %vm3499_vm3, %v3471_v51 }
 0x7d2   :  { %v3415_v23 = vadd.f32 %v4932_v13, %v4132_v47  ;;  %v3409_v58 = vpop.f32.mrb[37].mxu1 }
 0x7d3   :  { %v3410_v59 = vadd.f32 %v4132_v47, %v3409_v58 }
 0x7d4   :  { %v3473_v62 = vmax.f32 %v3415_v23, 0.0 }
 0x7d5   :  { %v3472_v30 = vmax.f32 %v3410_v59, 0.0  ;;  %v4935_v44 = vpop.f32.mrb[38].mxu1 }
 0x7d6   :  { %v3425_v52 = vadd.f32 %v4935_v44, %v4132_v47  ;;  %v3419_v18 = vpop.f32.mrb[39].mxu1 }
 0x7d7   :  { %v3420_v28 = vadd.f32 %v4132_v47, %v3419_v18  ;;  %4970 = vmatprep.mubr.msk.f32.mxu0 %vm3499_vm3, %v3472_v30 }
 0x7d8   :  { %4971 = vmatmul.mubr.msk.f32.gmra.mrb[84].mxu0 %vm3499_vm3, %v3473_v62  ;;  %v3475_v55 = vmax.f32 %v3425_v52, 0.0 }
 0x7d9   :  { %v3474_v7 = vmax.f32 %v3420_v28, 0.0  ;;  %v4938_v3 = vpop.f32.mrb[40].mxu1 }
 0x7da   :  { %v3435_v60 = vadd.f32 %v4938_v3, %v4132_v47  ;;  %v3429_v33 = vpop.f32.mrb[41].mxu1 }
 0x7db   :  { %v3430_v9 = vadd.f32 %v4132_v47, %v3429_v33  ;;  %4973 = vmatprep.mubr.msk.f32.mxu0 %vm3499_vm3, %v3474_v7 }
 0x7dc   :  { %4974 = vmatmul.mubr.msk.f32.gmra.mrb[86].mxu0 %vm3499_vm3, %v3475_v55  ;;  %v3477_v1 = vmax.f32 %v3435_v60, 0.0 }
 0x7dd   :  { %v3476_v16 = vmax.f32 %v3430_v9, 0.0 }
 0x7df   :  { %4976 = vmatprep.mubr.msk.f32.mxu0 %vm3499_vm3, %v3476_v16 }
 0x7e0   :  { %4977 = vmatmul.mubr.msk.f32.gmra.mrb[88].mxu0 %vm3499_vm3, %v3477_v1 }
 0x7ee   :  { %v4941_v41 = vpop.f32.mrb[42].mxu1 }
 0x7ef   :  { %v3445_v53 = vadd.f32 %v4941_v41, %v4132_v47  ;;  %v3439_v48 = vpop.f32.mrb[43].mxu1 }
 0x7f0   :  { %v3440_v31 = vadd.f32 %v4132_v47, %v3439_v48 }
 0x7f1   :  { %v3479_v40 = vmax.f32 %v3445_v53, 0.0 }
 0x7f2   :  { %v3478_v27 = vmax.f32 %v3440_v31, 0.0  ;;  %v4944_v5 = vpop.f32.mrb[44].mxu1 }
 0x7f3   :  { %v3455_v63 = vadd.f32 %v4944_v5, %v4132_v47  ;;  %v3449_v35 = vpop.f32.mrb[45].mxu1 }
 0x7f4   :  { %v3450_v45 = vadd.f32 %v4132_v47, %v3449_v35  ;;  %4979 = vmatprep.mubr.msk.f32.mxu0 %vm3499_vm3, %v3478_v27 }
 0x7f5   :  { %4980 = vmatmul.mubr.msk.f32.gmra.mrb[90].mxu0 %vm3499_vm3, %v3479_v40  ;;  %v3481_v36 = vmax.f32 %v3455_v63, 0.0 }
 0x7f6   :  { %v3480_v50 = vmax.f32 %v3450_v45, 0.0 }
 0x7f8   :  { %v4947_v11 = vpop.f32.mrb[46].mxu1  ;;  %4982 = vmatprep.mubr.msk.f32.mxu0 %vm3499_vm3, %v3480_v50 }
 0x7f9   :  { %v3465_v14 = vadd.f32 %v4947_v11, %v4132_v47  ;;  %v3459_v42 = vpop.f32.mrb[47].mxu1  ;;  %4983 = vmatmul.mubr.msk.f32.gmra.mrb[92].mxu0 %vm3499_vm3, %v3481_v36 }
 0x7fa   :  { %v3460_v17 = vadd.f32 %v4132_v47, %v3459_v42 }
 0x7fb   :  { %v3483_v54 = vmax.f32 %v3465_v14, 0.0 }
 0x7fc   :  { %v3482_v57 = vmax.f32 %v3460_v17, 0.0 }
 0x7fe   :  { %4985 = vmatprep.mubr.msk.f32.mxu1 %vm3499_vm3, %v3482_v57 }
 0x7ff   :  { %4986 = vmatmul.mubr.msk.f32.vlgmr.msra.gmra.mrb[48].mxu1 %vm3499_vm3, %v3483_v54 }
 0x89c   :  { %v4966_v29 = vpop.f32.mrb[80].mxu0 }
 0x89d   :  { %v3620_v10 = vadd.f32 %v4966_v29, %v8565_v22  ;;  %v3614_v0 = vpop.f32.mrb[81].mxu0 }
 0x89e   :  { %v3615_v61 = vadd.f32 %v8565_v22, %v3614_v0 }
 0x89f   :  { %v8570_v6 = vadd.f32 %v3620_v10, %v8425_v8 }
 0x8a0   :  { %v8573_v47 = vadd.f32 %v3615_v61, %v8428_v15 }
 0x8a1   :  { %v3714_v19 = vsel %vm143_vm0, %v8570_v6, 0.0 }
 0x8a2   :  { %3715 = vadd.xlane.f32.xlu1 %v3714_v19  ;;  %v3711_v32 = vsel %vm143_vm0, %v8573_v47, 0.0 }
 0x8a3   :  { %3712 = vadd.xlane.f32.xlu0 %v3711_v32 }
 0x8a4   :  { %v4969_v56 = vpop.f32.mrb[82].mxu0 }
 0x8a5   :  { %v3630_v49 = vadd.f32 %v4969_v56, %v8565_v22  ;;  %v3624_v51 = vpop.f32.mrb[83].mxu0 }
 0x8a6   :  { %v3625_v13 = vadd.f32 %v8565_v22, %v3624_v51 }
 0x8a7   :  { %v8582_v8 = vadd.f32 %v3630_v49, %v8446_v21 }
 0x8a8   :  { %v8585_v15 = vadd.f32 %v3625_v13, %v8441_v34 }
 0x8a9   :  { %v3720_v23 = vsel %vm143_vm0, %v8582_v8, 0.0 }
 0x8aa   :  { %3721 = vadd.xlane.f32.xlu1 %v3720_v23  ;;  %v3717_v58 = vsel %vm143_vm0, %v8585_v15, 0.0 }
 0x8ab   :  { %3718 = vadd.xlane.f32.xlu0 %v3717_v58  ;;  %v4972_v59 = vpop.f32.mrb[84].mxu0 }
 0x8ac   :  { %v3640_v30 = vadd.f32 %v4972_v59, %v8565_v22  ;;  %v3634_v44 = vpop.f32.mrb[85].mxu0 }
 0x8ad   :  { %v3635_v62 = vadd.f32 %v8565_v22, %v3634_v44 }
 0x8ae   :  { %v8594_v21 = vadd.f32 %v3640_v30, %v8465_v4 }
 0x8af   :  { %v8597_v34 = vadd.f32 %v3635_v62, %v8455_v24  ;;  %v4975_v52 = vpop.f32.mrb[86].mxu0 }
 0x8b0   :  { %v3650_v18 = vadd.f32 %v4975_v52, %v8565_v22  ;;  %v3644_v28 = vpop.f32.mrb[87].mxu0  ;;  %v3726_v7 = vsel %vm143_vm0, %v8594_v21, 0.0 }
 0x8b1   :  { %v3645_v3 = vadd.f32 %v8565_v22, %v3644_v28  ;;  %3727 = vadd.xlane.f32.xlu1 %v3726_v7  ;;  %v3723_v55 = vsel %vm143_vm0, %v8597_v34, 0.0 }
 0x8b2   :  { %v8606_v60 = vadd.f32 %v3650_v18, %v8479_v2  ;;  %3724 = vadd.xlane.f32.xlu0 %v3723_v55 }
 0x8b3   :  { %v8609_v24 = vadd.f32 %v3645_v3, %v8469_v39  ;;  %v4978_v4 = vpop.f32.mrb[88].mxu0 }
 0x8b4   :  { %v3660_v33 = vadd.f32 %v4978_v4, %v8565_v22  ;;  %v3654_v9 = vpop.f32.mrb[89].mxu0  ;;  %v3732_v16 = vsel %vm143_vm0, %v8606_v60, 0.0 }
 0x8b5   :  { %v3655_v1 = vadd.f32 %v8565_v22, %v3654_v9  ;;  %3733 = vadd.xlane.f32.xlu1 %v3732_v16  ;;  %v3729_v41 = vsel %vm143_vm0, %v8609_v24, 0.0 }
 0x8b6   :  { %v8618_v2 = vadd.f32 %v3660_v33, %v8491_v43  ;;  %3730 = vadd.xlane.f32.xlu0 %v3729_v41 }
 0x8b7   :  { %v8621_v39 = vadd.f32 %v3655_v1, %v8483_v38 }
 0x8b8   :  { %v3738_v53 = vsel %vm143_vm0, %v8618_v2, 0.0 }
 0x8b9   :  { %3739 = vadd.xlane.f32.xlu1 %v3738_v53  ;;  %v3735_v48 = vsel %vm143_vm0, %v8621_v39, 0.0 }
 0x8ba   :  { %3736 = vadd.xlane.f32.xlu0 %v3735_v48 }
 0x8c8   :  { %v4981_v31 = vpop.f32.mrb[90].mxu0 }
 0x8c9   :  { %v3670_v27 = vadd.f32 %v4981_v31, %v8565_v22  ;;  %v3664_v5 = vpop.f32.mrb[91].mxu0 }
 0x8ca   :  { %v3665_v40 = vadd.f32 %v8565_v22, %v3664_v5 }
 0x8cb   :  { %v8630_v43 = vadd.f32 %v3670_v27, %v8505_v25 }
 0x8cc   :  { %v8633_v38 = vadd.f32 %v3665_v40, %v8501_v20  ;;  %v4984_v63 = vpop.f32.mrb[92].mxu0 }
 0x8cd   :  { %v3680_v35 = vadd.f32 %v4984_v63, %v8565_v22  ;;  %v3674_v45 = vpop.f32.mrb[93].mxu0  ;;  %v3744_v50 = vsel %vm143_vm0, %v8630_v43, 0.0 }
 0x8ce   :  { %v3675_v36 = vadd.f32 %v8565_v22, %v3674_v45  ;;  %3745 = vadd.xlane.f32.xlu1 %v3744_v50  ;;  %v3741_v11 = vsel %vm143_vm0, %v8633_v38, 0.0 }
 0x8cf   :  { %v8642_v14 = vadd.f32 %v3680_v35, %v8517_v26  ;;  %3742 = vadd.xlane.f32.xlu0 %v3741_v11 }
 0x8d0   :  { %v8645_v20 = vadd.f32 %v3675_v36, %v8514_v37 }
 0x8d1   :  { %v3750_v25 = vsel %vm143_vm0, %v8642_v14, 0.0 }
 0x8d2   :  { %3751 = vadd.xlane.f32.xlu1 %v3750_v25  ;;  %v4987_v42 = vpop.f32.mrb[48].mxu1  ;;  %v3747_v17 = vsel %vm143_vm0, %v8645_v20, 0.0 }
 0x8d3   :  { %v3690_v57 = vadd.f32 %v4987_v42, %v8565_v22  ;;  %3748 = vadd.xlane.f32.xlu0 %v3747_v17  ;;  %v3684_v54 = vpop.f32.mrb[49].mxu1 }
 0x8d4   :  { %v3685_v29 = vadd.f32 %v8565_v22, %v3684_v54 }
 0x8d5   :  { %v8654_v26 = vadd.f32 %v3690_v57, %v8531_v46 }
 0x8d6   :  { %v8657_v37 = vadd.f32 %v3685_v29, %v8528_v12 }
 0x8d7   :  { %v3756_v10 = vsel %vm143_vm0, %v8654_v26, 0.0 }
 0x8d8   :  { %3757 = vadd.xlane.f32.xlu1 %v3756_v10  ;;  %v3753_v0 = vsel %vm143_vm0, %v8657_v37, 0.0 }
 0x8d9   :  { %3754 = vadd.xlane.f32.xlu0 %v3753_v0 }
 0x92f   :  { %v3716_v61 = vpop.xlane.xlu1 %3715 }
 0x930   :  { %v3760_v19 = vmul.f32 0.03125, %v3716_v61  ;;  %v3713_v32 = vpop.xlane.xlu0 %3712 }
 0x931   :  { %v3759_v56 = vmul.f32 0.03125, %v3713_v32 }
 0x932   :  { %v8664_v22 = vsub.f32 %v8570_v6, %v3760_v19 }
 0x933   :  { %v8667_v46 = vsub.f32 %v8573_v47, %v3759_v56 }
 0x934   :  { %v3792_v12 = vmul.f32 %v8664_v22, %v8664_v22 }
 0x935   :  { %v3791_v49 = vmul.f32 %v8667_v46, %v8667_v46 }
 0x936   :  { %v3810_v51 = vsel %vm143_vm0, %v3792_v12, 0.0 }
 0x937   :  { %v3722_v13 = vpop.xlane.xlu1 %3721  ;;  %3811 = vadd.xlane.f32.xlu1 %v3810_v51  ;;  %v3807_v23 = vsel %vm143_vm0, %v3791_v49, 0.0 }
 0x938   :  { %v3762_v58 = vmul.f32 0.03125, %v3722_v13  ;;  %3808 = vadd.xlane.f32.xlu0 %v3807_v23  ;;  %v3719_v59 = vpop.xlane.xlu0 %3718 }
 0x939   :  { %v3761_v6 = vmul.f32 0.03125, %v3719_v59 }
 0x93a   :  { %v8676_v30 = vsub.f32 %v8582_v8, %v3762_v58 }
 0x93b   :  { %v8679_v47 = vsub.f32 %v8585_v15, %v3761_v6 }
 0x93c   :  { %v3794_v44 = vmul.f32 %v8676_v30, %v8676_v30 }
 0x93d   :  { %v3793_v62 = vmul.f32 %v8679_v47, %v8679_v47 }
 0x93e   :  { %v3728_v52 = vpop.xlane.xlu1 %3727  ;;  %v3816_v18 = vsel %vm143_vm0, %v3794_v44, 0.0 }
 0x93f   :  { %v3764_v28 = vmul.f32 0.03125, %v3728_v52  ;;  %3817 = vadd.xlane.f32.xlu1 %v3816_v18  ;;  %v3725_v7 = vpop.xlane.xlu0 %3724  ;;  %v3813_v3 = vsel %vm143_vm0, %v3793_v62, 0.0 }
 0x940   :  { %v3763_v55 = vmul.f32 0.03125, %v3725_v7  ;;  %3814 = vadd.xlane.f32.xlu0 %v3813_v3 }
 0x941   :  { %v8688_v8 = vsub.f32 %v8594_v21, %v3764_v28 }
 0x942   :  { %v8691_v15 = vsub.f32 %v8597_v34, %v3763_v55  ;;  %v3734_v4 = vpop.xlane.xlu1 %3733 }
 0x943   :  { %v3766_v33 = vmul.f32 0.03125, %v3734_v4  ;;  %v3731_v9 = vpop.xlane.xlu0 %3730  ;;  %v3796_v16 = vmul.f32 %v8688_v8, %v8688_v8 }
 0x944   :  { %v3765_v1 = vmul.f32 0.03125, %v3731_v9  ;;  %v3795_v41 = vmul.f32 %v8691_v15, %v8691_v15 }
 0x945   :  { %v8698_v53 = vsub.f32 %v8606_v60, %v3766_v33  ;;  %v3822_v48 = vsel %vm143_vm0, %v3796_v16, 0.0 }
 0x946   :  { %v8702_v21 = vsub.f32 %v8609_v24, %v3765_v1  ;;  %v3740_v34 = vpop.xlane.xlu1 %3739  ;;  %3823 = vadd.xlane.f32.xlu1 %v3822_v48  ;;  %v3819_v31 = vsel %vm143_vm0, %v3795_v41, 0.0 }
 0x947   :  { %v3768_v27 = vmul.f32 0.03125, %v3740_v34  ;;  %3820 = vadd.xlane.f32.xlu0 %v3819_v31  ;;  %v3737_v5 = vpop.xlane.xlu0 %3736  ;;  %v3798_v40 = vmul.f32 %v8698_v53, %v8698_v53 }
 0x948   :  { %v3767_v63 = vmul.f32 0.03125, %v3737_v5  ;;  %v3797_v60 = vmul.f32 %v8702_v21, %v8702_v21 }
 0x949   :  { %v8710_v35 = vsub.f32 %v8618_v2, %v3768_v27  ;;  %v3828_v24 = vsel %vm143_vm0, %v3798_v40, 0.0  ;;  %v8762_v27 = vld [vmem:[%s8893_s12] ss:$0 sm:$0xff] }
 0x94a   :  { %v8714_v45 = vsub.f32 %v8621_v39, %v3767_v63  ;;  %3829 = vadd.xlane.f32.xlu1 %v3828_v24  ;;  %v3825_v50 = vsel %vm143_vm0, %v3797_v60, 0.0 }
 0x94b   :  { %3826 = vadd.xlane.f32.xlu0 %v3825_v50  ;;  %v3800_v36 = vmul.f32 %v8710_v35, %v8710_v35  ;;  %v8768_v50 = vld [vmem:[%s8894_s13] ss:$0 sm:$0xff] }
 0x94c   :  { %v3799_v11 = vmul.f32 %v8714_v45, %v8714_v45 }
 0x94d   :  { %v3834_v25 = vsel %vm143_vm0, %v3800_v36, 0.0 }
 0x94e   :  { %3835 = vadd.xlane.f32.xlu1 %v3834_v25  ;;  %v3831_v2 = vsel %vm143_vm0, %v3799_v11, 0.0 }
 0x94f   :  { %3832 = vadd.xlane.f32.xlu0 %v3831_v2 }
 0x95b   :  { %v3746_v42 = vpop.xlane.xlu1 %3745 }
 0x95c   :  { %v3770_v17 = vmul.f32 0.03125, %v3746_v42  ;;  %v3743_v39 = vpop.xlane.xlu0 %3742 }
 0x95d   :  { %v3769_v57 = vmul.f32 0.03125, %v3743_v39 }
 0x95e   :  { %v8724_v54 = vsub.f32 %v8630_v43, %v3770_v17 }
 0x95f   :  { %v8727_v29 = vsub.f32 %v8633_v38, %v3769_v57  ;;  %v3752_v10 = vpop.xlane.xlu1 %3751 }
 0x960   :  { %v3772_v0 = vmul.f32 0.03125, %v3752_v10  ;;  %v3749_v61 = vpop.xlane.xlu0 %3748  ;;  %v3802_v19 = vmul.f32 %v8724_v54, %v8724_v54 }
 0x961   :  { %v3771_v32 = vmul.f32 0.03125, %v3749_v61  ;;  %v3801_v56 = vmul.f32 %v8727_v29, %v8727_v29 }
 0x962   :  { %v8734_v12 = vsub.f32 %v8642_v14, %v3772_v0  ;;  %v3840_v49 = vsel %vm143_vm0, %v3802_v19, 0.0 }
 0x963   :  { %v8738_v43 = vsub.f32 %v8645_v20, %v3771_v32  ;;  %3841 = vadd.xlane.f32.xlu1 %v3840_v49  ;;  %v3837_v38 = vsel %vm143_vm0, %v3801_v56, 0.0 }
 0x964   :  { %3838 = vadd.xlane.f32.xlu0 %v3837_v38  ;;  %v3804_v51 = vmul.f32 %v8734_v12, %v8734_v12 }
 0x965   :  { %v3758_v13 = vpop.xlane.xlu1 %3757  ;;  %v3803_v23 = vmul.f32 %v8738_v43, %v8738_v43 }
 0x966   :  { %v3774_v58 = vmul.f32 0.03125, %v3758_v13  ;;  %v3755_v59 = vpop.xlane.xlu0 %3754  ;;  %v3846_v14 = vsel %vm143_vm0, %v3804_v51, 0.0 }
 0x967   :  { %v3773_v6 = vmul.f32 0.03125, %v3755_v59  ;;  %3847 = vadd.xlane.f32.xlu1 %v3846_v14  ;;  %v3843_v20 = vsel %vm143_vm0, %v3803_v23, 0.0 }
 0x968   :  { %v8748_v44 = vsub.f32 %v8654_v26, %v3774_v58  ;;  %3844 = vadd.xlane.f32.xlu0 %v3843_v20 }
 0x969   :  { %v8751_v62 = vsub.f32 %v8657_v37, %v3773_v6 }
 0x96a   :  { %v3806_v52 = vmul.f32 %v8748_v44, %v8748_v44 }
 0x96b   :  { %v3805_v18 = vmul.f32 %v8751_v62, %v8751_v62 }
 0x96c   :  { %v3852_v28 = vsel %vm143_vm0, %v3806_v52, 0.0 }
 0x96d   :  { %3853 = vadd.xlane.f32.xlu1 %v3852_v28  ;;  %v3849_v7 = vsel %vm143_vm0, %v3805_v18, 0.0 }
 0x96e   :  { %3850 = vadd.xlane.f32.xlu0 %v3849_v7 }
 0x9c4   :  { %v3812_v3 = vpop.xlane.xlu1 %3811 }
 0x9c5   :  { %v3856_v55 = vmul.f32 0.03125, %v3812_v3  ;;  %v3809_v26 = vpop.xlane.xlu0 %3808 }
 0x9c6   :  { %v3855_v4 = vmul.f32 0.03125, %v3809_v26 }
 0x9c7   :  { %v3872_v33 = vadd.f32 1e-05, %v3856_v55 }
 0x9c8   :  { %v3871_v9 = vadd.f32 1e-05, %v3855_v4 }
 0x9c9   :  { %5980 = vrsqrt.f32 %v3872_v33 }
 0x9ca   :  { %5982 = vrsqrt.f32 %v3871_v9 }
 0x9cc   :  { %v3818_v37 = vpop.xlane.xlu1 %3817 }
 0x9cd   :  { %v3858_v16 = vmul.f32 0.03125, %v3818_v37  ;;  %v3815_v1 = vpop.xlane.xlu0 %3814 }
 0x9ce   :  { %v3857_v41 = vmul.f32 0.03125, %v3815_v1 }
 0x9cf   :  { %v3874_v48 = vadd.f32 1e-05, %v3858_v16 }
 0x9d0   :  { %v3873_v34 = vadd.f32 1e-05, %v3857_v41 }
 0x9d1   :  { %5984 = vrsqrt.f32 %v3874_v48 }
 0x9d2   :  { %5986 = vrsqrt.f32 %v3873_v34 }
 0x9d3   :  { %v5981_v31 = vpop.eup %5980  ;;  %v3824_v5 = vpop.xlane.xlu1 %3823 }
 0x9d4   :  { %v5983_v40 = vpop.eup %5982  ;;  %v3904_v63 = vmul.f32 %v5981_v31, %v8664_v22  ;;  %v3860_v60 = vmul.f32 0.03125, %v3824_v5  ;;  %v3821_v24 = vpop.xlane.xlu0 %3820 }
 0x9d5   :  { %v3903_v36 = vmul.f32 %v5983_v40, %v8667_v46  ;;  %v3859_v11 = vmul.f32 0.03125, %v3821_v24 }
 0x9d6   :  { %v3926_v25 = vmul.f32 %v8762_v27, %v3904_v63  ;;  %v3876_v2 = vadd.f32 1e-05, %v3860_v60 }
 0x9d7   :  { %v3925_v42 = vmul.f32 %v8762_v27, %v3903_v36  ;;  %v3875_v17 = vadd.f32 1e-05, %v3859_v11  ;;  %v3830_v39 = vpop.xlane.xlu1 %3829 }
 0x9d8   :  { %v3948_v57 = vadd.f32 %v8768_v50, %v3926_v25  ;;  %5988 = vrsqrt.f32 %v3876_v2  ;;  %v3862_v22 = vmul.f32 0.03125, %v3830_v39  ;;  %v3827_v10 = vpop.xlane.xlu0 %3826 }
 0x9d9   :  { %v3947_v0 = vadd.f32 %v8768_v50, %v3925_v42  ;;  %5990 = vrsqrt.f32 %v3875_v17  ;;  %v3861_v61 = vmul.f32 0.03125, %v3827_v10 }
 0x9da   :  { %3964 = vst.msk [vmem:[%s8895_s14 + $0x8] sm:$0xff] %vm143_vm0, %v3948_v57  ;;  %v3878_v46 = vadd.f32 1e-05, %v3862_v22 }
 0x9db   :  { %v5985_v19 = vpop.eup %5984  ;;  %3963 = vst.msk [vmem:[%s8895_s14] sm:$0xff] %vm143_vm0, %v3947_v0  ;;  %v3877_v32 = vadd.f32 1e-05, %v3861_v61  ;;  %v3836_v56 = vpop.xlane.xlu1 %3835 }
 0x9dc   :  { %v5987_v49 = vpop.eup %5986  ;;  %v3906_v38 = vmul.f32 %v5985_v19, %v8676_v30  ;;  %5992 = vrsqrt.f32 %v3878_v46  ;;  %v3864_v51 = vmul.f32 0.03125, %v3836_v56  ;;  %v3833_v13 = vpop.xlane.xlu0 %3832 }
 0x9dd   :  { %v3905_v23 = vmul.f32 %v5987_v49, %v8679_v47  ;;  %5994 = vrsqrt.f32 %v3877_v32  ;;  %v3863_v58 = vmul.f32 0.03125, %v3833_v13 }
 0x9de   :  { %v3928_v59 = vmul.f32 %v8762_v27, %v3906_v38  ;;  %v3880_v14 = vadd.f32 1e-05, %v3864_v51 }
 0x9df   :  { %v3927_v6 = vmul.f32 %v8762_v27, %v3905_v23  ;;  %v3879_v20 = vadd.f32 1e-05, %v3863_v58 }
 0x9e0   :  { %v3950_v52 = vadd.f32 %v8768_v50, %v3928_v59  ;;  %5996 = vrsqrt.f32 %v3880_v14 }
 0x9e1   :  { %v3949_v18 = vadd.f32 %v8768_v50, %v3927_v6  ;;  %5998 = vrsqrt.f32 %v3879_v20 }
 0x9e2   :  { %v5989_v30 = vpop.eup %5988  ;;  %3966 = vst.msk [vmem:[%s8895_s14 + $0x18] sm:$0xff] %vm143_vm0, %v3950_v52 }
 0x9e3   :  { %v5991_v47 = vpop.eup %5990  ;;  %3965 = vst.msk [vmem:[%s8895_s14 + $0x10] sm:$0xff] %vm143_vm0, %v3949_v18  ;;  %v3908_v28 = vmul.f32 %v5989_v30, %v8688_v8 }
 0x9e4   :  { %v3907_v7 = vmul.f32 %v5991_v47, %v8691_v15 }
 0x9e5   :  { %v3930_v3 = vmul.f32 %v8762_v27, %v3908_v28 }
 0x9e6   :  { %v5993_v55 = vpop.eup %5992  ;;  %v3929_v26 = vmul.f32 %v8762_v27, %v3907_v7 }
 0x9e7   :  { %v5995_v4 = vpop.eup %5994  ;;  %v3952_v33 = vadd.f32 %v8768_v50, %v3930_v3  ;;  %v3910_v9 = vmul.f32 %v5993_v55, %v8698_v53 }
 0x9e8   :  { %v3951_v37 = vadd.f32 %v8768_v50, %v3929_v26  ;;  %v3909_v16 = vmul.f32 %v5995_v4, %v8702_v21 }
 0x9e9   :  { %3968 = vst.msk [vmem:[%s8895_s14 + $0x28] sm:$0xff] %vm143_vm0, %v3952_v33  ;;  %v3932_v8 = vmul.f32 %v8762_v27, %v3910_v9 }
 0x9ea   :  { %v5997_v15 = vpop.eup %5996  ;;  %3967 = vst.msk [vmem:[%s8895_s14 + $0x20] sm:$0xff] %vm143_vm0, %v3951_v37  ;;  %v3931_v1 = vmul.f32 %v8762_v27, %v3909_v16 }
 0x9eb   :  { %v5999_v53 = vpop.eup %5998  ;;  %v3954_v41 = vadd.f32 %v8768_v50, %v3932_v8  ;;  %v3912_v21 = vmul.f32 %v5997_v15, %v8710_v35 }
 0x9ec   :  { %v3953_v48 = vadd.f32 %v8768_v50, %v3931_v1  ;;  %v3911_v34 = vmul.f32 %v5999_v53, %v8714_v45 }
 0x9ed   :  { %3970 = vst.msk [vmem:[%s8895_s14 + $0x38] sm:$0xff] %vm143_vm0, %v3954_v41  ;;  %v3934_v31 = vmul.f32 %v8762_v27, %v3912_v21 }
 0x9ee   :  { %3969 = vst.msk [vmem:[%s8895_s14 + $0x30] sm:$0xff] %vm143_vm0, %v3953_v48  ;;  %v3933_v5 = vmul.f32 %v8762_v27, %v3911_v34 }
 0x9ef   :  { %v3956_v35 = vadd.f32 %v8768_v50, %v3934_v31 }
 0x9f0   :  { %v3955_v40 = vadd.f32 %v8768_v50, %v3933_v5  ;;  %v3842_v63 = vpop.xlane.xlu1 %3841 }
 0x9f1   :  { %3972 = vst.msk [vmem:[%s8895_s14 + $0x48] sm:$0xff] %vm143_vm0, %v3956_v35  ;;  %v3866_v45 = vmul.f32 0.03125, %v3842_v63  ;;  %v3839_v60 = vpop.xlane.xlu0 %3838 }
 0x9f2   :  { %3971 = vst.msk [vmem:[%s8895_s14 + $0x40] sm:$0xff] %vm143_vm0, %v3955_v40  ;;  %v3865_v24 = vmul.f32 0.03125, %v3839_v60 }
 0x9f3   :  { %v3882_v36 = vadd.f32 1e-05, %v3866_v45 }
 0x9f4   :  { %v3881_v11 = vadd.f32 1e-05, %v3865_v24  ;;  %v3848_v25 = vpop.xlane.xlu1 %3847 }
 0x9f5   :  { %6000 = vrsqrt.f32 %v3882_v36  ;;  %v3868_v2 = vmul.f32 0.03125, %v3848_v25  ;;  %v3845_v42 = vpop.xlane.xlu0 %3844 }
 0x9f6   :  { %6002 = vrsqrt.f32 %v3881_v11  ;;  %v3867_v17 = vmul.f32 0.03125, %v3845_v42 }
 0x9f7   :  { %v3884_v39 = vadd.f32 1e-05, %v3868_v2 }
 0x9f8   :  { %v3883_v57 = vadd.f32 1e-05, %v3867_v17 }
 0x9f9   :  { %6004 = vrsqrt.f32 %v3884_v39 }
 0x9fa   :  { %6006 = vrsqrt.f32 %v3883_v57  ;;  %v3854_v22 = vpop.xlane.xlu1 %3853 }
 0x9fb   :  { %v3870_v10 = vmul.f32 0.03125, %v3854_v22  ;;  %v3851_v0 = vpop.xlane.xlu0 %3850 }
 0x9fc   :  { %v3869_v61 = vmul.f32 0.03125, %v3851_v0 }
 0x9fd   :  { %v3886_v46 = vadd.f32 1e-05, %v3870_v10 }
 0x9fe   :  { %v3885_v19 = vadd.f32 1e-05, %v3869_v61 }
 0x9ff   :  { %v6001_v32 = vpop.eup %6000  ;;  %6008 = vrsqrt.f32 %v3886_v46 }
 0xa00   :  { %v6003_v56 = vpop.eup %6002  ;;  %v3914_v49 = vmul.f32 %v6001_v32, %v8724_v54  ;;  %6010 = vrsqrt.f32 %v3885_v19 }
 0xa01   :  { %v3913_v38 = vmul.f32 %v6003_v56, %v8727_v29 }
 0xa02   :  { %v3936_v51 = vmul.f32 %v8762_v27, %v3914_v49 }
 0xa03   :  { %v6005_v13 = vpop.eup %6004  ;;  %v3935_v23 = vmul.f32 %v8762_v27, %v3913_v38 }
 0xa04   :  { %v6007_v58 = vpop.eup %6006  ;;  %v3958_v59 = vadd.f32 %v8768_v50, %v3936_v51  ;;  %v3916_v14 = vmul.f32 %v6005_v13, %v8734_v12 }
 0xa05   :  { %v3957_v6 = vadd.f32 %v8768_v50, %v3935_v23  ;;  %v3915_v20 = vmul.f32 %v6007_v58, %v8738_v43 }
 0xa06   :  { %3974 = vst.msk [vmem:[%s8895_s14 + $0x58] sm:$0xff] %vm143_vm0, %v3958_v59  ;;  %v3938_v54 = vmul.f32 %v8762_v27, %v3916_v14 }
 0xa07   :  { %3973 = vst.msk [vmem:[%s8895_s14 + $0x50] sm:$0xff] %vm143_vm0, %v3957_v6  ;;  %v3937_v29 = vmul.f32 %v8762_v27, %v3915_v20 }
 0xa08   :  { %v3960_v12 = vadd.f32 %v8768_v50, %v3938_v54 }
 0xa09   :  { %v6009_v52 = vpop.eup %6008  ;;  %v3959_v18 = vadd.f32 %v8768_v50, %v3937_v29 }
 0xa0a   :  { %v6011_v43 = vpop.eup %6010  ;;  %3976 = vst.msk [vmem:[%s8895_s14 + $0x68] sm:$0xff] %vm143_vm0, %v3960_v12  ;;  %v3918_v30 = vmul.f32 %v6009_v52, %v8748_v44 }
 0xa0b   :  { %3975 = vst.msk [vmem:[%s8895_s14 + $0x60] sm:$0xff] %vm143_vm0, %v3959_v18  ;;  %v3917_v47 = vmul.f32 %v6011_v43, %v8751_v62 }
 0xa0c   :  { %v3940_v28 = vmul.f32 %v8762_v27, %v3918_v30 }
 0xa0d   :  { %v3939_v7 = vmul.f32 %v8762_v27, %v3917_v47 }
 0xa0e   :  { %v3962_v3 = vadd.f32 %v8768_v50, %v3940_v28 }
 0xa0f   :  { %v3961_v55 = vadd.f32 %v8768_v50, %v3939_v7 }
 0xa10   :  { %3978 = vst.msk [vmem:[%s8895_s14 + $0x78] sm:$0xff] %vm143_vm0, %v3962_v3 }
 0xa11   :  { %3977 = vst.msk [vmem:[%s8895_s14 + $0x70] sm:$0xff] %vm143_vm0, %v3961_v55 }
 0xa12   :  { %3983 = vsyncpa [#allocation3], 1 }
 0xa13   :  { %3984 = vsyncpa [#allocation5], 1 }

</bundles_post_ra>
